<compile_context>
chip_gen: v5e
topology: v5e:2x2
jax: 0.10.0
libtpu: 0.0.40
codegen_flags: <defaults>
</compile_context>

<pallas_src>
import functools
import math

import jax
import jax.numpy as jnp
from jax.experimental import pallas as pl
from jax.experimental.pallas import tpu as pltpu

LN_EPS = 1e-12


# ----------------------------------------------------------------------------------------------
# In-kernel helpers (traced inside Pallas kernels)
# ----------------------------------------------------------------------------------------------

def _mm(a, b):
    """MXU matmul: bf16 operands, f32 accumulation."""
    return jnp.dot(a.astype(jnp.bfloat16), b.astype(jnp.bfloat16),
                   preferred_element_type=jnp.float32)


def _ln(x, g, b, eps):
    """Post-LN (biased variance, matching torch LayerNorm) in f32."""
    mu = jnp.mean(x, axis=-1, keepdims=True)
    var = jnp.mean(jnp.square(x - mu), axis=-1, keepdims=True)
    return (x - mu) * jax.lax.rsqrt(var + eps) * g + b


def _mh_attention(q, k, v, add_mask, n_head):
    """q:(Tq,D) k,v:(Tk,D). Heads are lane-slices. add_mask broadcasts to (Tq,Tk).
    Scale is already folded into the query projection weights."""
    D = q.shape[-1]
    dh = D // n_head
    outs = []
    for h in range(n_head):                       # static unrolled loop, n_head is 2..4
        sl = slice(h * dh, (h + 1) * dh)
        # q . k^T without an explicit transpose: contract last dims on both operands.
        s = jax.lax.dot_general(
            q[:, sl].astype(jnp.bfloat16), k[:, sl].astype(jnp.bfloat16),
            dimension_numbers=(((1,), (1,)), ((), ())),
            preferred_element_type=jnp.float32)
        s = s + add_mask                          # additive mask: 0 keep / -10000 masked
        s = s - jnp.max(s, axis=-1, keepdims=True)
        p = jnp.exp(s)
        p = p * pl.reciprocal(jnp.sum(p, axis=-1, keepdims=True), approx=True)
        outs.append(_mm(p, v[:, sl]))             # (Tq, dh)
    return jnp.concatenate(outs, axis=-1)         # (Tq, D)


# ----------------------------------------------------------------------------------------------
# Pallas kernels
# ----------------------------------------------------------------------------------------------

def _linear_kernel(x_ref, w_ref, b_ref, o_ref):
    y = _mm(x_ref[...], w_ref[...]) + b_ref[...]
    o_ref[...] = y.astype(o_ref.dtype)


def linear(x, w, b):
    """y = x @ w + b. x:(M,K) f32, w:(K,N) f32, b:(1,N) f32.  Tiled over M/N."""
    M, K = x.shape
    N = w.shape[1]
    tm = M if M <= 256 else 256
    tn = N if N <= 512 else 512
    # TODO(synk): K is kept untiled (small in this model); add a K-reduction axis for very large K.
    return pl.pallas_call(
        _linear_kernel,
        grid=(pl.cdiv(M, tm), pl.cdiv(N, tn)),
        out_shape=jax.ShapeDtypeStruct((M, N), jnp.float32),
        in_specs=[
            pl.BlockSpec((tm, K), lambda i, j: (i, 0)),
            pl.BlockSpec((K, tn), lambda i, j: (0, j)),
            pl.BlockSpec((1, tn), lambda i, j: (0, j)),
        ],
        out_specs=pl.BlockSpec((tm, tn), lambda i, j: (i, j)),
        compiler_params=pltpu.CompilerParams(
            dimension_semantics=("parallel", "parallel")),
    )(x, w, b)


def _enc_layer_kernel(x_ref, m_ref, wqkv_ref, bqkv_ref, wo_ref, bo_ref,
                      g1_ref, be1_ref, w1_ref, bb1_ref, w2_ref, bb2_ref,
                      g2_ref, be2_ref, o_ref, *, n_head, eps):
    x = x_ref[0]                                   # (T, D) f32
    D = x.shape[-1]
    add_mask = m_ref[0]                            # (1, T) additive
    # fused QKV projection (scale folded into the Q columns at init)
    qkv = _mm(x, wqkv_ref[...]) + bqkv_ref[...]    # (T, 3D)
    attn = _mh_attention(qkv[:, :D], qkv[:, D:2 * D], qkv[:, 2 * D:], add_mask, n_head)
    attn = _mm(attn, wo_ref[...]) + bo_ref[...]
    x1 = _ln(attn + x, g1_ref[...], be1_ref[...], eps)
    # fused FFN
    h = jnp.maximum(_mm(x1, w1_ref[...]) + bb1_ref[...], 0.0)
    y = _mm(h, w2_ref[...]) + bb2_ref[...]
    o_ref[0] = _ln(y + x1, g2_ref[...], be2_ref[...], eps).astype(o_ref.dtype)


def encoder_layer(x, add_mask, p, n_head):
    B, T, D = x.shape
    Hf = p["w1"].shape[1]
    a = p["attn"]
    wmap = lambda b: (0, 0)
    xmap = lambda b: (b, 0, 0)
    return pl.pallas_call(
        functools.partial(_enc_layer_kernel, n_head=n_head, eps=LN_EPS),
        grid=(B,),
        out_shape=jax.ShapeDtypeStruct((B, T, D), jnp.float32),
        in_specs=[
            pl.BlockSpec((1, T, D), xmap),
            pl.BlockSpec((1, 1, T), xmap),
            pl.BlockSpec((D, 3 * D), wmap), pl.BlockSpec((1, 3 * D), wmap),
            pl.BlockSpec((D, D), wmap), pl.BlockSpec((1, D), wmap),
            pl.BlockSpec((1, D), wmap), pl.BlockSpec((1, D), wmap),
            pl.BlockSpec((D, Hf), wmap), pl.BlockSpec((1, Hf), wmap),
            pl.BlockSpec((Hf, D), wmap), pl.BlockSpec((1, D), wmap),
            pl.BlockSpec((1, D), wmap), pl.BlockSpec((1, D), wmap),
        ],
        out_specs=pl.BlockSpec((1, T, D), xmap),
        compiler_params=pltpu.CompilerParams(dimension_semantics=("parallel",)),
    )(x, add_mask, a["wqkv"], a["bqkv"], a["wo"], a["bo"],
      p["g1"], p["be1"], p["w1"], p["bb1"], p["w2"], p["bb2"],
      p["g2"], p["be2"])


def _dec_layer_kernel(x_ref, enc_ref, tm_ref, sm_ref,
                      wqkv_ref, bqkv_ref, wos_ref, bos_ref, g1_ref, be1_ref,
                      wqc_ref, bqc_ref, wkvc_ref, bkvc_ref, woc_ref, boc_ref,
                      g2_ref, be2_ref,
                      w1_ref, bb1_ref, w2_ref, bb2_ref, g3_ref, be3_ref,
                      o_ref, *, n_head, eps):
    x = x_ref[0]                                   # (T, D)
    enc = enc_ref[0]                               # (Ne, D)
    D = x.shape[-1]
    # --- masked self-attention (fused QKV) ---
    qkv = _mm(x, wqkv_ref[...]) + bqkv_ref[...]
    a = _mh_attention(qkv[:, :D], qkv[:, D:2 * D], qkv[:, 2 * D:], tm_ref[0], n_head)
    a = _mm(a, wos_ref[...]) + bos_ref[...]
    x1 = _ln(a + x, g1_ref[...], be1_ref[...], eps)
    # --- cross-attention (fused KV from encoder tokens) ---
    qc = _mm(x1, wqc_ref[...]) + bqc_ref[...]      # (T, D)
    kv = _mm(enc, wkvc_ref[...]) + bkvc_ref[...]   # (Ne, 2D)
    c = _mh_attention(qc, kv[:, :D], kv[:, D:], sm_ref[0], n_head)
    c = _mm(c, woc_ref[...]) + boc_ref[...]
    x2 = _ln(c + x1, g2_ref[...], be2_ref[...], eps)
    # --- fused FFN ---
    h = jnp.maximum(_mm(x2, w1_ref[...]) + bb1_ref[...], 0.0)
    y = _mm(h, w2_ref[...]) + bb2_ref[...]
    o_ref[0] = _ln(y + x2, g3_ref[...], be3_ref[...], eps).astype(o_ref.dtype)


def decoder_layer(x, enc, trg_add, src_add, p, n_head):
    B, T, D = x.shape
    Ne = enc.shape[1]
    Hf = p["w1"].shape[1]
    wmap = lambda b: (0, 0)
    xmap = lambda b: (b, 0, 0)
    return pl.pallas_call(
        functools.partial(_dec_layer_kernel, n_head=n_head, eps=LN_EPS),
        grid=(B,),
        out_shape=jax.ShapeDtypeStruct((B, T, D), jnp.float32),
        in_specs=[
            pl.BlockSpec((1, T, D), xmap),
            pl.BlockSpec((1, Ne, D), xmap),
            pl.BlockSpec((1, T, T), xmap),
            pl.BlockSpec((1, 1, Ne), xmap),
            pl.BlockSpec((D, 3 * D), wmap), pl.BlockSpec((1, 3 * D), wmap),
            pl.BlockSpec((D, D), wmap), pl.BlockSpec((1, D), wmap),
            pl.BlockSpec((1, D), wmap), pl.BlockSpec((1, D), wmap),
            pl.BlockSpec((D, D), wmap), pl.BlockSpec((1, D), wmap),
            pl.BlockSpec((D, 2 * D), wmap), pl.BlockSpec((1, 2 * D), wmap),
            pl.BlockSpec((D, D), wmap), pl.BlockSpec((1, D), wmap),
            pl.BlockSpec((1, D), wmap), pl.BlockSpec((1, D), wmap),
            pl.BlockSpec((D, Hf), wmap), pl.BlockSpec((1, Hf), wmap),
            pl.BlockSpec((Hf, D), wmap), pl.BlockSpec((1, D), wmap),
            pl.BlockSpec((1, D), wmap), pl.BlockSpec((1, D), wmap),
        ],
        out_specs=pl.BlockSpec((1, T, D), xmap),
        compiler_params=pltpu.CompilerParams(dimension_semantics=("parallel",)),
    )(x, enc, trg_add, src_add,
      p["self"]["wqkv"], p["self"]["bqkv"], p["self"]["wo"], p["self"]["bo"],
      p["g1"], p["be1"],
      p["cross"]["wq"], p["cross"]["bq"], p["cross"]["wkv"], p["cross"]["bkv"],
      p["cross"]["wo"], p["cross"]["bo"],
      p["g2"], p["be2"],
      p["w1"], p["bb1"], p["w2"], p["bb2"], p["g3"], p["be3"])


# ----------------------------------------------------------------------------------------------
# Masks (plain JAX, tiny) — semantics identical to the PyTorch reference
# ----------------------------------------------------------------------------------------------

def make_src_mask(src, frame_patch_size):
    B, C, F, H, W = src.shape
    assert C == 1 and H == 1, "make_src_mask assumes channel and height dims of size 1"
    non_pad = (src != 0).sum(axis=-1)              # (B, C, F, H)
    m = non_pad > 0
    m = jnp.squeeze(m, axis=-1)                    # (B, C, F)
    m = m[:, None]                                 # (B, 1, C, F)
    if frame_patch_size > 1:
        m = m.reshape(B, 1, 1, F // frame_patch_size, frame_patch_size)
        m = m.max(axis=-1)                         # (B, 1, 1, F // fps)
    return m


def make_trg_mask(trg, pad_idx):
    B, T = trg.shape
    pad = (trg != pad_idx)[:, None, :, None]       # (B, 1, T, 1)
    sub = jnp.tril(jnp.ones((T, T), dtype=bool))   # (T, T)
    return pad & sub[None, None]                   # (B, 1, T, T)


def _additive_mask(m_bool):
    # masked_fill(mask == 0, -10000) equivalent as an additive bias (0 keep / -10000 masked)
    return jnp.where(m_bool, 0.0, -10000.0).astype(jnp.float32)


# ----------------------------------------------------------------------------------------------
# Forward pass
# ----------------------------------------------------------------------------------------------

def encoder_fwd(p, src, src_mask, cfg):
    B, C, F, H, W = src.shape
    fps, ips = cfg["frame_patch_size"], cfg["image_patch_size"]
    nf, nw = F // fps, W // ips
    # patchify: tokens ordered (frame_patch major, spatial_patch minor)
    x = src.reshape(B, C, nf, fps, H, nw, ips)
    x = x.transpose(0, 2, 5, 1, 3, 4, 6).reshape(B, nf * nw, C * fps * H * ips)
    D0 = cfg["dim"][0]
    x = linear(x.reshape(B * nf * nw, -1), p["pe_w"], p["pe_b"]).reshape(B, nf * nw, D0)
    x = x + p["pos"]

    mask = jnp.repeat(src_mask, nw, axis=-1)       # (B, 1, 1, N0) bool
    for s in range(len(cfg["dim"])):
        add_mask = _additive_mask(mask[:, 0])      # (B, 1, N) f32
        for lp in p["stages"][s]["layers"]:
            x = encoder_layer(x, add_mask, lp, cfg["n_head"][s])
        if s < len(cfg["dim"]) - 1:
            _, N, Dd = x.shape
            merged = x.reshape(B, N // 2, 2 * Dd)
            x = linear(merged.reshape(B * (N // 2), 2 * Dd),
                       p["stages"][s]["merge_w"], p["stages"][s]["merge_b"]
                       ).reshape(B, N // 2, cfg["dim"][s + 1])
            mask = mask.reshape(B, 1, 1, N // 2, 2).max(axis=-1)
    return x, mask


def decoder_fwd(p, trg, enc_src, trg_add, src_add, cfg):
    B, T = trg.shape
    D = cfg["dim"][-1]
    # TODO(synk): token-embedding gather stays in plain JAX (data-dependent gather).
    x = jnp.take(p["tok_emb"], trg, axis=0) + p["pos_enc"][:T][None]
    for lp in p["layers"]:
        x = decoder_layer(x, enc_src, trg_add, src_add, lp, cfg["n_head"][-1])
    logits = linear(x.reshape(B * T, D), p["out_w"], p["out_b"])      # lane-padded vocab
    return logits[:, :cfg["dec_voc_size"]].reshape(B, T, cfg["dec_voc_size"])


def hierarchical_transformer(params, src, trg, cfg):
    src_mask = make_src_mask(src, cfg["frame_patch_size"])
    trg_mask = make_trg_mask(trg, cfg["pad_idx"])
    enc_src, merge_mask = encoder_fwd(params["enc"], src, src_mask, cfg)
    trg_add = _additive_mask(trg_mask[:, 0])        # (B, T, T)
    cross_add = _additive_mask(merge_mask[:, 0])    # (B, 1, Ne)
    return decoder_fwd(params["dec"], trg, enc_src, trg_add, cross_add, cfg)


# ----------------------------------------------------------------------------------------------
# Deterministic parameter initialization (QKV fused, attention scale folded into Wq)
# ----------------------------------------------------------------------------------------------

def _dense(key, fan_in, fan_out):
    return jax.random.normal(key, (fan_in, fan_out), jnp.float32) * 0.02


def _init_self_attn(key, d, n_head):
    ks = jax.random.split(key, 4)
    scale = 1.0 / math.sqrt(d // n_head)
    wq, wk, wv, wo = (_dense(k, d, d) for k in ks)
    return {"wqkv": jnp.concatenate([wq * scale, wk, wv], axis=1),   # scale folded into Wq
            "bqkv": jnp.zeros((1, 3 * d), jnp.float32),
            "wo": wo, "bo": jnp.zeros((1, d), jnp.float32)}


def _init_cross_attn(key, d, n_head):
    ks = jax.random.split(key, 4)
    scale = 1.0 / math.sqrt(d // n_head)
    return {"wq": _dense(ks[0], d, d) * scale, "bq": jnp.zeros((1, d), jnp.float32),
            "wkv": jnp.concatenate([_dense(ks[1], d, d), _dense(ks[2], d, d)], axis=1),
            "bkv": jnp.zeros((1, 2 * d), jnp.float32),
            "wo": _dense(ks[3], d, d), "bo": jnp.zeros((1, d), jnp.float32)}


def _init_enc_layer(key, d, ratio, n_head):
    k1, k2, k3 = jax.random.split(key, 3)
    h = d * ratio
    ones = jnp.ones((1, d), jnp.float32)
    zeros = jnp.zeros((1, d), jnp.float32)
    return {"attn": _init_self_attn(k1, d, n_head),
            "g1": ones, "be1": zeros,
            "w1": _dense(k2, d, h), "bb1": jnp.zeros((1, h), jnp.float32),
            "w2": _dense(k3, h, d), "bb2": zeros,
            "g2": ones, "be2": zeros}


def _init_dec_layer(key, d, ratio, n_head):
    k1, k2, k3, k4 = jax.random.split(key, 4)
    h = d * ratio
    ones = jnp.ones((1, d), jnp.float32)
    zeros = jnp.zeros((1, d), jnp.float32)
    return {"self": _init_self_attn(k1, d, n_head),
            "g1": ones, "be1": zeros,
            "cross": _init_cross_attn(k2, d, n_head),
            "g2": ones, "be2": zeros,
            "w1": _dense(k3, d, h), "bb1": jnp.zeros((1, h), jnp.float32),
            "w2": _dense(k4, h, d), "bb2": zeros,
            "g3": ones, "be3": zeros}


def _sinusoid_pe(max_len, d):
    pos = jnp.arange(max_len, dtype=jnp.float32)[:, None]
    i = jnp.arange(0, d, 2, dtype=jnp.float32)
    ang = pos / jnp.power(10000.0, i / d)
    pe = jnp.zeros((max_len, d), jnp.float32)
    pe = pe.at[:, 0::2].set(jnp.sin(ang))
    pe = pe.at[:, 1::2].set(jnp.cos(ang))
    return pe


def init_params(key, cfg):
    fps, ips = cfg["frame_patch_size"], cfg["image_patch_size"]
    nf = cfg["max_frames"] // fps
    nw = cfg["image_size"] // ips
    patch_dim = 1 * fps * 1 * ips                  # C=1, H=1
    keys = jax.random.split(key, 8)

    # encoder
    stages = []
    kstage = jax.random.split(keys[0], len(cfg["dim"]))
    for s, d in enumerate(cfg["dim"]):
        klayers = jax.random.split(kstage[s], cfg["enc_layers"][s] + 1)
        layers = [_init_enc_layer(klayers[i], d, cfg["ffn_hidden_ratio"], cfg["n_head"][s])
                  for i in range(cfg["enc_layers"][s])]
        stage = {"layers": layers}
        if s < len(cfg["dim"]) - 1:
            stage["merge_w"] = _dense(klayers[-1], 2 * d, cfg["dim"][s + 1])
            stage["merge_b"] = jnp.zeros((1, cfg["dim"][s + 1]), jnp.float32)
        stages.append(stage)
    enc = {"pe_w": _dense(keys[1], patch_dim, cfg["dim"][0]),
           "pe_b": jnp.zeros((1, cfg["dim"][0]), jnp.float32),
           "pos": jax.random.normal(keys[2], (1, nf * nw, cfg["dim"][0]), jnp.float32) * 0.02,
           "stages": stages}

    # decoder
    d = cfg["dim"][-1]
    V = cfg["dec_voc_size"]
    Vpad = ((V + 127) // 128) * 128                # lane-dense vocab projection
    kd = jax.random.split(keys[3], cfg["dec_layers"])
    out_w = jnp.pad(_dense(keys[5], d, V), ((0, 0), (0, Vpad - V)))
    dec = {"tok_emb": jax.random.normal(keys[4], (V, d), jnp.float32) * 0.02,
           "pos_enc": _sinusoid_pe(cfg["max_len"], d),
           "layers": [_init_dec_layer(kd[i], d, cfg["ffn_hidden_ratio"], cfg["n_head"][-1])
                      for i in range(cfg["dec_layers"])],
           "out_w": out_w,
           "out_b": jnp.zeros((1, Vpad), jnp.float32)}
    return {"enc": enc, "dec": dec}


# ----------------------------------------------------------------------------------------------
# Main
# ----------------------------------------------------------------------------------------------

if __name__ == "__main__":
    cfg = dict(
        pad_idx=0,
        image_size=16,
        image_patch_size=4,
        max_frames=8,
        frame_patch_size=2,
        dim=[32, 64],
        ffn_hidden_ratio=2,
        n_head=[2, 4],
        drop_prob=0.0,          # eval mode: dropout is identity
        max_len=16,
        dec_voc_size=50,
        enc_layers=[1, 1],
        dec_layers=1,
    )

    key = jax.random.PRNGKey(0)
    k_src, k_trg, k_par = jax.random.split(key, 3)

    B, F, W, T = 2, cfg["max_frames"], cfg["image_size"], 8
    src = jax.random.normal(k_src, (B, 1, F, 1, W), jnp.float32)
    src = src.at[0, :, F - 2:, :, :].set(0.0)          # pad last two frames of batch 0
    trg = jax.random.randint(k_trg, (B, T), 1, cfg["dec_voc_size"])
    trg = trg.at[0, T - 2:].set(cfg["pad_idx"])        # pad last two target tokens of batch 0

    params = init_params(k_par, cfg)

    fwd = jax.jit(functools.partial(hierarchical_transformer, cfg=cfg))
    out = fwd(params, src, trg)
    out = jax.block_until_ready(out)

    assert out.shape == (B, T, cfg["dec_voc_size"])
    assert bool(jnp.all(jnp.isfinite(out)))
    print("KERNEL_OK")
</pallas_src>

<mosaic_0001>
module attributes {stable_mosaic.version = 11 : i64} {
  func.func @_linear_kernel(%arg0: i32, %arg1: i32, %arg2: memref<32x8xf32, #tpu.memory_space<vmem>>, %arg3: memref<8x32xf32, #tpu.memory_space<vmem>>, %arg4: memref<1x32xf32, #tpu.memory_space<vmem>>, %arg5: memref<32x32xf32, #tpu.memory_space<vmem>>) attributes {dimension_semantics = [#tpu.dimension_semantics<parallel>, #tpu.dimension_semantics<parallel>], iteration_bounds = array<i64: 1, 1>, scalar_prefetch = 0 : i64, scratch_operands = 0 : i64, tpu.core_type = #tpu.core_type<tc>, window_params = [{transform_indices = @transform_0, window_bounds = array<i64: 32, 8>}, {transform_indices = @transform_1, window_bounds = array<i64: 8, 32>}, {transform_indices = @transform_2, window_bounds = array<i64: 1, 32>}, {transform_indices = @transform_3, window_bounds = array<i64: 32, 32>}]} {
    %c0 = arith.constant 0 : index
    %c0_0 = arith.constant 0 : index
    %0 = vector.load %arg2[%c0, %c0_0] : memref<32x8xf32, #tpu.memory_space<vmem>>, vector<32x8xf32>
    %c0_1 = arith.constant 0 : index
    %c0_2 = arith.constant 0 : index
    %1 = vector.load %arg3[%c0_1, %c0_2] : memref<8x32xf32, #tpu.memory_space<vmem>>, vector<8x32xf32>
    %2 = arith.truncf %0 : vector<32x8xf32> to vector<32x8xbf16>
    %3 = arith.truncf %1 : vector<8x32xf32> to vector<8x32xbf16>
    %cst = arith.constant dense<0.000000e+00> : vector<32x32xf32>
    %4 = tpu.matmul %2, %3, %cst {dimension_numbers = #tpu.dot_dimension_numbers<[1], [0], [0], [1], [0, 0, 1, 1], [], []>} : vector<32x8xbf16>, vector<8x32xbf16>, vector<32x32xf32> -> vector<32x32xf32>
    %c0_3 = arith.constant 0 : index
    %c0_4 = arith.constant 0 : index
    %5 = vector.load %arg4[%c0_3, %c0_4] : memref<1x32xf32, #tpu.memory_space<vmem>>, vector<1x32xf32>
    %6 = vector.broadcast %5 : vector<1x32xf32> to vector<32x32xf32>
    %7 = arith.addf %4, %6 : vector<32x32xf32>
    %c0_5 = arith.constant 0 : index
    %c0_6 = arith.constant 0 : index
    %8 = vector.load %arg5[%c0_5, %c0_6] : memref<32x32xf32, #tpu.memory_space<vmem>>, vector<32x32xf32>
    tpu.vector_store %arg5[%c0_5, %c0_6], %7 {strides = array<i32>} : memref<32x32xf32, #tpu.memory_space<vmem>>, vector<32x32xf32>,
    return
  }
  func.func @transform_0(%arg0: i32, %arg1: i32) -> (i32, i32) {
    %c0_i32 = arith.constant 0 : i32
    %c0_i32_0 = arith.constant 0 : i32
    return %arg0, %c0_i32 : i32, i32
  }
  func.func @transform_1(%arg0: i32, %arg1: i32) -> (i32, i32) {
    %c0_i32 = arith.constant 0 : i32
    %c0_i32_0 = arith.constant 0 : i32
    return %c0_i32, %arg1 : i32, i32
  }
  func.func @transform_2(%arg0: i32, %arg1: i32) -> (i32, i32) {
    %c0_i32 = arith.constant 0 : i32
    %c0_i32_0 = arith.constant 0 : i32
    return %c0_i32, %arg1 : i32, i32
  }
  func.func @transform_3(%arg0: i32, %arg1: i32) -> (i32, i32) {
    %c0_i32 = arith.constant 0 : i32
    return %arg0, %arg1 : i32, i32
  }
}

module attributes {stable_mosaic.version = 11 : i64} {
  func.func @_linear_kernel(%arg0: i32, %arg1: i32, %arg2: memref<16x64xf32, #tpu.memory_space<vmem>>, %arg3: memref<64x64xf32, #tpu.memory_space<vmem>>, %arg4: memref<1x64xf32, #tpu.memory_space<vmem>>, %arg5: memref<16x64xf32, #tpu.memory_space<vmem>>) attributes {dimension_semantics = [#tpu.dimension_semantics<parallel>, #tpu.dimension_semantics<parallel>], iteration_bounds = array<i64: 1, 1>, scalar_prefetch = 0 : i64, scratch_operands = 0 : i64, tpu.core_type = #tpu.core_type<tc>, window_params = [{transform_indices = @transform_0, window_bounds = array<i64: 16, 64>}, {transform_indices = @transform_1, window_bounds = array<i64: 64, 64>}, {transform_indices = @transform_2, window_bounds = array<i64: 1, 64>}, {transform_indices = @transform_3, window_bounds = array<i64: 16, 64>}]} {
    %c0 = arith.constant 0 : index
    %c0_0 = arith.constant 0 : index
    %0 = vector.load %arg2[%c0, %c0_0] : memref<16x64xf32, #tpu.memory_space<vmem>>, vector<16x64xf32>
    %c0_1 = arith.constant 0 : index
    %c0_2 = arith.constant 0 : index
    %1 = vector.load %arg3[%c0_1, %c0_2] : memref<64x64xf32, #tpu.memory_space<vmem>>, vector<64x64xf32>
    %2 = arith.truncf %0 : vector<16x64xf32> to vector<16x64xbf16>
    %3 = arith.truncf %1 : vector<64x64xf32> to vector<64x64xbf16>
    %cst = arith.constant dense<0.000000e+00> : vector<16x64xf32>
    %4 = tpu.matmul %2, %3, %cst {dimension_numbers = #tpu.dot_dimension_numbers<[1], [0], [0], [1], [0, 0, 1, 1], [], []>} : vector<16x64xbf16>, vector<64x64xbf16>, vector<16x64xf32> -> vector<16x64xf32>
    %c0_3 = arith.constant 0 : index
    %c0_4 = arith.constant 0 : index
    %5 = vector.load %arg4[%c0_3, %c0_4] : memref<1x64xf32, #tpu.memory_space<vmem>>, vector<1x64xf32>
    %6 = vector.broadcast %5 : vector<1x64xf32> to vector<16x64xf32>
    %7 = arith.addf %4, %6 : vector<16x64xf32>
    %c0_5 = arith.constant 0 : index
    %c0_6 = arith.constant 0 : index
    %8 = vector.load %arg5[%c0_5, %c0_6] : memref<16x64xf32, #tpu.memory_space<vmem>>, vector<16x64xf32>
    tpu.vector_store %arg5[%c0_5, %c0_6], %7 {strides = array<i32>} : memref<16x64xf32, #tpu.memory_space<vmem>>, vector<16x64xf32>,
    return
  }
  func.func @transform_0(%arg0: i32, %arg1: i32) -> (i32, i32) {
    %c0_i32 = arith.constant 0 : i32
    %c0_i32_0 = arith.constant 0 : i32
    return %arg0, %c0_i32 : i32, i32
  }
  func.func @transform_1(%arg0: i32, %arg1: i32) -> (i32, i32) {
    %c0_i32 = arith.constant 0 : i32
    %c0_i32_0 = arith.constant 0 : i32
    return %c0_i32, %arg1 : i32, i32
  }
  func.func @transform_2(%arg0: i32, %arg1: i32) -> (i32, i32) {
    %c0_i32 = arith.constant 0 : i32
    %c0_i32_0 = arith.constant 0 : i32
    return %c0_i32, %arg1 : i32, i32
  }
  func.func @transform_3(%arg0: i32, %arg1: i32) -> (i32, i32) {
    %c0_i32 = arith.constant 0 : i32
    return %arg0, %arg1 : i32, i32
  }
}

module attributes {stable_mosaic.version = 11 : i64} {
  func.func @_enc_layer_kernel(%arg0: i32, %arg1: memref<1x16x32xf32, #tpu.memory_space<vmem>>, %arg2: memref<1x1x16xf32, #tpu.memory_space<vmem>>, %arg3: memref<32x96xf32, #tpu.memory_space<vmem>>, %arg4: memref<1x96xf32, #tpu.memory_space<vmem>>, %arg5: memref<32x32xf32, #tpu.memory_space<vmem>>, %arg6: memref<1x32xf32, #tpu.memory_space<vmem>>, %arg7: memref<1x32xf32, #tpu.memory_space<vmem>>, %arg8: memref<1x32xf32, #tpu.memory_space<vmem>>, %arg9: memref<32x64xf32, #tpu.memory_space<vmem>>, %arg10: memref<1x64xf32, #tpu.memory_space<vmem>>, %arg11: memref<64x32xf32, #tpu.memory_space<vmem>>, %arg12: memref<1x32xf32, #tpu.memory_space<vmem>>, %arg13: memref<1x32xf32, #tpu.memory_space<vmem>>, %arg14: memref<1x32xf32, #tpu.memory_space<vmem>>, %arg15: memref<1x16x32xf32, #tpu.memory_space<vmem>>) attributes {dimension_semantics = [#tpu.dimension_semantics<parallel>], iteration_bounds = array<i64: 2>, scalar_prefetch = 0 : i64, scratch_operands = 0 : i64, tpu.core_type = #tpu.core_type<tc>, window_params = [{transform_indices = @transform_0, window_bounds = array<i64: 1, 16, 32>}, {transform_indices = @transform_1, window_bounds = array<i64: 1, 1, 16>}, {pipeline_mode = #tpu.pipeline_mode<synchronous>, transform_indices = @transform_2, window_bounds = array<i64: 32, 96>}, {pipeline_mode = #tpu.pipeline_mode<synchronous>, transform_indices = @transform_3, window_bounds = array<i64: 1, 96>}, {pipeline_mode = #tpu.pipeline_mode<synchronous>, transform_indices = @transform_4, window_bounds = array<i64: 32, 32>}, {pipeline_mode = #tpu.pipeline_mode<synchronous>, transform_indices = @transform_5, window_bounds = array<i64: 1, 32>}, {pipeline_mode = #tpu.pipeline_mode<synchronous>, transform_indices = @transform_6, window_bounds = array<i64: 1, 32>}, {pipeline_mode = #tpu.pipeline_mode<synchronous>, transform_indices = @transform_7, window_bounds = array<i64: 1, 32>}, {pipeline_mode = #tpu.pipeline_mode<synchronous>, transform_indices = @transform_8, window_bounds = array<i64: 32, 64>}, {pipeline_mode = #tpu.pipeline_mode<synchronous>, transform_indices = @transform_9, window_bounds = array<i64: 1, 64>}, {pipeline_mode = #tpu.pipeline_mode<synchronous>, transform_indices = @transform_10, window_bounds = array<i64: 64, 32>}, {pipeline_mode = #tpu.pipeline_mode<synchronous>, transform_indices = @transform_11, window_bounds = array<i64: 1, 32>}, {pipeline_mode = #tpu.pipeline_mode<synchronous>, transform_indices = @transform_12, window_bounds = array<i64: 1, 32>}, {pipeline_mode = #tpu.pipeline_mode<synchronous>, transform_indices = @transform_13, window_bounds = array<i64: 1, 32>}, {transform_indices = @transform_14, window_bounds = array<i64: 1, 16, 32>}]} {
    %c0 = arith.constant 0 : index
    %c0_0 = arith.constant 0 : index
    %c0_1 = arith.constant 0 : index
    %0 = vector.load %arg1[%c0, %c0_0, %c0_1] : memref<1x16x32xf32, #tpu.memory_space<vmem>>, vector<1x16x32xf32>
    %1 = vector.shape_cast %0 : vector<1x16x32xf32> to vector<16x32xf32>
    %c0_2 = arith.constant 0 : index
    %c0_3 = arith.constant 0 : index
    %c0_4 = arith.constant 0 : index
    %2 = vector.load %arg2[%c0_2, %c0_3, %c0_4] : memref<1x1x16xf32, #tpu.memory_space<vmem>>, vector<1x1x16xf32>
    %3 = vector.shape_cast %2 : vector<1x1x16xf32> to vector<1x16xf32>
    %c0_5 = arith.constant 0 : index
    %c0_6 = arith.constant 0 : index
    %4 = vector.load %arg3[%c0_5, %c0_6] : memref<32x96xf32, #tpu.memory_space<vmem>>, vector<32x96xf32>
    %5 = arith.truncf %1 : vector<16x32xf32> to vector<16x32xbf16>
    %6 = arith.truncf %4 : vector<32x96xf32> to vector<32x96xbf16>
    %cst = arith.constant dense<0.000000e+00> : vector<16x96xf32>
    %7 = tpu.matmul %5, %6, %cst {dimension_numbers = #tpu.dot_dimension_numbers<[1], [0], [0], [1], [0, 0, 1, 1], [], []>} : vector<16x32xbf16>, vector<32x96xbf16>, vector<16x96xf32> -> vector<16x96xf32>
    %c0_7 = arith.constant 0 : index
    %c0_8 = arith.constant 0 : index
    %8 = vector.load %arg4[%c0_7, %c0_8] : memref<1x96xf32, #tpu.memory_space<vmem>>, vector<1x96xf32>
    %9 = vector.broadcast %8 : vector<1x96xf32> to vector<16x96xf32>
    %10 = arith.addf %7, %9 : vector<16x96xf32>
    %11 = vector.extract_strided_slice %10 {offsets = [0, 0], sizes = [16, 32], strides = [1, 1]} : vector<16x96xf32> to vector<16x32xf32>
    %12 = vector.extract_strided_slice %10 {offsets = [0, 32], sizes = [16, 32], strides = [1, 1]} : vector<16x96xf32> to vector<16x32xf32>
    %13 = vector.extract_strided_slice %10 {offsets = [0, 64], sizes = [16, 32], strides = [1, 1]} : vector<16x96xf32> to vector<16x32xf32>
    %14 = vector.extract_strided_slice %11 {offsets = [0, 0], sizes = [16, 16], strides = [1, 1]} : vector<16x32xf32> to vector<16x16xf32>
    %15 = arith.truncf %14 : vector<16x16xf32> to vector<16x16xbf16>
    %16 = vector.extract_strided_slice %12 {offsets = [0, 0], sizes = [16, 16], strides = [1, 1]} : vector<16x32xf32> to vector<16x16xf32>
    %17 = arith.truncf %16 : vector<16x16xf32> to vector<16x16xbf16>
    %cst_9 = arith.constant dense<0.000000e+00> : vector<16x16xf32>
    %18 = tpu.matmul %15, %17, %cst_9 {dimension_numbers = #tpu.dot_dimension_numbers<[1], [1], [0], [0], [0, 0, 1, 0], [], []>} : vector<16x16xbf16>, vector<16x16xbf16>, vector<16x16xf32> -> vector<16x16xf32>
    %19 = vector.broadcast %3 : vector<1x16xf32> to vector<16x16xf32>
    %20 = arith.addf %18, %19 : vector<16x16xf32>
    %cst_10 = arith.constant dense<0xFF800000> : vector<16xf32>
    %21 = vector.multi_reduction <maximumf>, %20, %cst_10 [1] : vector<16x16xf32> to vector<16xf32>
    %22 = vector.shape_cast %21 : vector<16xf32> to vector<16x1xf32>
    %23 = vector.broadcast %22 : vector<16x1xf32> to vector<16x16xf32>
    %24 = arith.subf %20, %23 : vector<16x16xf32>
    %25 = math.exp %24 : vector<16x16xf32>
    %cst_11 = arith.constant dense<0.000000e+00> : vector<16xf32>
    %26 = vector.multi_reduction <add>, %25, %cst_11 [1] : vector<16x16xf32> to vector<16xf32>
    %27 = vector.shape_cast %26 : vector<16xf32> to vector<16x1xf32>
    %28 = tpu.reciprocal %27 {approx = true} : vector<16x1xf32> -> vector<16x1xf32>
    %29 = vector.broadcast %28 : vector<16x1xf32> to vector<16x16xf32>
    %30 = arith.mulf %25, %29 : vector<16x16xf32>
    %31 = vector.extract_strided_slice %13 {offsets = [0, 0], sizes = [16, 16], strides = [1, 1]} : vector<16x32xf32> to vector<16x16xf32>
    %32 = arith.truncf %30 : vector<16x16xf32> to vector<16x16xbf16>
    %33 = arith.truncf %31 : vector<16x16xf32> to vector<16x16xbf16>
    %cst_12 = arith.constant dense<0.000000e+00> : vector<16x16xf32>
    %34 = tpu.matmul %32, %33, %cst_12 {dimension_numbers = #tpu.dot_dimension_numbers<[1], [0], [0], [1], [0, 0, 1, 1], [], []>} : vector<16x16xbf16>, vector<16x16xbf16>, vector<16x16xf32> -> vector<16x16xf32>
    %35 = vector.extract_strided_slice %11 {offsets = [0, 16], sizes = [16, 16], strides = [1, 1]} : vector<16x32xf32> to vector<16x16xf32>
    %36 = arith.truncf %35 : vector<16x16xf32> to vector<16x16xbf16>
    %37 = vector.extract_strided_slice %12 {offsets = [0, 16], sizes = [16, 16], strides = [1, 1]} : vector<16x32xf32> to vector<16x16xf32>
    %38 = arith.truncf %37 : vector<16x16xf32> to vector<16x16xbf16>
    %cst_13 = arith.constant dense<0.000000e+00> : vector<16x16xf32>
    %39 = tpu.matmul %36, %38, %cst_13 {dimension_numbers = #tpu.dot_dimension_numbers<[1], [1], [0], [0], [0, 0, 1, 0], [], []>} : vector<16x16xbf16>, vector<16x16xbf16>, vector<16x16xf32> -> vector<16x16xf32>
    %40 = vector.broadcast %3 : vector<1x16xf32> to vector<16x16xf32>
    %41 = arith.addf %39, %40 : vector<16x16xf32>
    %cst_14 = arith.constant dense<0xFF800000> : vector<16xf32>
    %42 = vector.multi_reduction <maximumf>, %41, %cst_14 [1] : vector<16x16xf32> to vector<16xf32>
    %43 = vector.shape_cast %42 : vector<16xf32> to vector<16x1xf32>
    %44 = vector.broadcast %43 : vector<16x1xf32> to vector<16x16xf32>
    %45 = arith.subf %41, %44 : vector<16x16xf32>
    %46 = math.exp %45 : vector<16x16xf32>
    %cst_15 = arith.constant dense<0.000000e+00> : vector<16xf32>
    %47 = vector.multi_reduction <add>, %46, %cst_15 [1] : vector<16x16xf32> to vector<16xf32>
    %48 = vector.shape_cast %47 : vector<16xf32> to vector<16x1xf32>
    %49 = tpu.reciprocal %48 {approx = true} : vector<16x1xf32> -> vector<16x1xf32>
    %50 = vector.broadcast %49 : vector<16x1xf32> to vector<16x16xf32>
    %51 = arith.mulf %46, %50 : vector<16x16xf32>
    %52 = vector.extract_strided_slice %13 {offsets = [0, 16], sizes = [16, 16], strides = [1, 1]} : vector<16x32xf32> to vector<16x16xf32>
    %53 = arith.truncf %51 : vector<16x16xf32> to vector<16x16xbf16>
    %54 = arith.truncf %52 : vector<16x16xf32> to vector<16x16xbf16>
    %cst_16 = arith.constant dense<0.000000e+00> : vector<16x16xf32>
    %55 = tpu.matmul %53, %54, %cst_16 {dimension_numbers = #tpu.dot_dimension_numbers<[1], [0], [0], [1], [0, 0, 1, 1], [], []>} : vector<16x16xbf16>, vector<16x16xbf16>, vector<16x16xf32> -> vector<16x16xf32>
    %56 = tpu.concatenate %34, %55 in 1 : vector<16x16xf32>, vector<16x16xf32> -> vector<16x32xf32>
    %c0_17 = arith.constant 0 : index
    %c0_18 = arith.constant 0 : index
    %57 = vector.load %arg5[%c0_17, %c0_18] : memref<32x32xf32, #tpu.memory_space<vmem>>, vector<32x32xf32>
    %58 = arith.truncf %56 : vector<16x32xf32> to vector<16x32xbf16>
    %59 = arith.truncf %57 : vector<32x32xf32> to vector<32x32xbf16>
    %cst_19 = arith.constant dense<0.000000e+00> : vector<16x32xf32>
    %60 = tpu.matmul %58, %59, %cst_19 {dimension_numbers = #tpu.dot_dimension_numbers<[1], [0], [0], [1], [0, 0, 1, 1], [], []>} : vector<16x32xbf16>, vector<32x32xbf16>, vector<16x32xf32> -> vector<16x32xf32>
    %c0_20 = arith.constant 0 : index
    %c0_21 = arith.constant 0 : index
    %61 = vector.load %arg6[%c0_20, %c0_21] : memref<1x32xf32, #tpu.memory_space<vmem>>, vector<1x32xf32>
    %62 = vector.broadcast %61 : vector<1x32xf32> to vector<16x32xf32>
    %63 = arith.addf %60, %62 : vector<16x32xf32>
    %64 = arith.addf %63, %1 : vector<16x32xf32>
    %c0_22 = arith.constant 0 : index
    %c0_23 = arith.constant 0 : index
    %65 = vector.load %arg7[%c0_22, %c0_23] : memref<1x32xf32, #tpu.memory_space<vmem>>, vector<1x32xf32>
    %c0_24 = arith.constant 0 : index
    %c0_25 = arith.constant 0 : index
    %66 = vector.load %arg8[%c0_24, %c0_25] : memref<1x32xf32, #tpu.memory_space<vmem>>, vector<1x32xf32>
    %cst_26 = arith.constant dense<0.000000e+00> : vector<16xf32>
    %67 = vector.multi_reduction <add>, %64, %cst_26 [1] : vector<16x32xf32> to vector<16xf32>
    %68 = vector.shape_cast %67 : vector<16xf32> to vector<16x1xf32>
    %cst_27 = arith.constant 3.200000e+01 : f32
    %69 = vector.broadcast %cst_27 : f32 to vector<16x1xf32>
    %70 = arith.divf %68, %69 : vector<16x1xf32>
    %71 = vector.broadcast %70 : vector<16x1xf32> to vector<16x32xf32>
    %72 = arith.subf %64, %71 : vector<16x32xf32>
    %73 = arith.mulf %72, %72 : vector<16x32xf32>
    %cst_28 = arith.constant dense<0.000000e+00> : vector<16xf32>
    %74 = vector.multi_reduction <add>, %73, %cst_28 [1] : vector<16x32xf32> to vector<16xf32>
    %75 = vector.shape_cast %74 : vector<16xf32> to vector<16x1xf32>
    %cst_29 = arith.constant 3.200000e+01 : f32
    %76 = vector.broadcast %cst_29 : f32 to vector<16x1xf32>
    %77 = arith.divf %75, %76 : vector<16x1xf32>
    %78 = vector.broadcast %70 : vector<16x1xf32> to vector<16x32xf32>
    %79 = arith.subf %64, %78 : vector<16x32xf32>
    %cst_30 = arith.constant 9.99999996E-13 : f32
    %80 = vector.broadcast %cst_30 : f32 to vector<16x1xf32>
    %81 = arith.addf %77, %80 : vector<16x1xf32>
    %82 = math.rsqrt %81 : vector<16x1xf32>
    %83 = vector.broadcast %82 : vector<16x1xf32> to vector<16x32xf32>
    %84 = arith.mulf %79, %83 : vector<16x32xf32>
    %85 = vector.broadcast %65 : vector<1x32xf32> to vector<16x32xf32>
    %86 = arith.mulf %84, %85 : vector<16x32xf32>
    %87 = vector.broadcast %66 : vector<1x32xf32> to vector<16x32xf32>
    %88 = arith.addf %86, %87 : vector<16x32xf32>
    %c0_31 = arith.constant 0 : index
    %c0_32 = arith.constant 0 : index
    %89 = vector.load %arg9[%c0_31, %c0_32] : memref<32x64xf32, #tpu.memory_space<vmem>>, vector<32x64xf32>
    %90 = arith.truncf %88 : vector<16x32xf32> to vector<16x32xbf16>
    %91 = arith.truncf %89 : vector<32x64xf32> to vector<32x64xbf16>
    %cst_33 = arith.constant dense<0.000000e+00> : vector<16x64xf32>
    %92 = tpu.matmul %90, %91, %cst_33 {dimension_numbers = #tpu.dot_dimension_numbers<[1], [0], [0], [1], [0, 0, 1, 1], [], []>} : vector<16x32xbf16>, vector<32x64xbf16>, vector<16x64xf32> -> vector<16x64xf32>
    %c0_34 = arith.constant 0 : index
    %c0_35 = arith.constant 0 : index
    %93 = vector.load %arg10[%c0_34, %c0_35] : memref<1x64xf32, #tpu.memory_space<vmem>>, vector<1x64xf32>
    %94 = vector.broadcast %93 : vector<1x64xf32> to vector<16x64xf32>
    %95 = arith.addf %92, %94 : vector<16x64xf32>
    %cst_36 = arith.constant 0.000000e+00 : f32
    %96 = vector.broadcast %cst_36 : f32 to vector<16x64xf32>
    %97 = arith.maximumf %95, %96 : vector<16x64xf32>
    %c0_37 = arith.constant 0 : index
    %c0_38 = arith.constant 0 : index
    %98 = vector.load %arg11[%c0_37, %c0_38] : memref<64x32xf32, #tpu.memory_space<vmem>>, vector<64x32xf32>
    %99 = arith.truncf %97 : vector<16x64xf32> to vector<16x64xbf16>
    %100 = arith.truncf %98 : vector<64x32xf32> to vector<64x32xbf16>
    %cst_39 = arith.constant dense<0.000000e+00> : vector<16x32xf32>
    %101 = tpu.matmul %99, %100, %cst_39 {dimension_numbers = #tpu.dot_dimension_numbers<[1], [0], [0], [1], [0, 0, 1, 1], [], []>} : vector<16x64xbf16>, vector<64x32xbf16>, vector<16x32xf32> -> vector<16x32xf32>
    %c0_40 = arith.constant 0 : index
    %c0_41 = arith.constant 0 : index
    %102 = vector.load %arg12[%c0_40, %c0_41] : memref<1x32xf32, #tpu.memory_space<vmem>>, vector<1x32xf32>
    %103 = vector.broadcast %102 : vector<1x32xf32> to vector<16x32xf32>
    %104 = arith.addf %101, %103 : vector<16x32xf32>
    %105 = arith.addf %104, %88 : vector<16x32xf32>
    %c0_42 = arith.constant 0 : index
    %c0_43 = arith.constant 0 : index
    %106 = vector.load %arg13[%c0_42, %c0_43] : memref<1x32xf32, #tpu.memory_space<vmem>>, vector<1x32xf32>
    %c0_44 = arith.constant 0 : index
    %c0_45 = arith.constant 0 : index
    %107 = vector.load %arg14[%c0_44, %c0_45] : memref<1x32xf32, #tpu.memory_space<vmem>>, vector<1x32xf32>
    %cst_46 = arith.constant dense<0.000000e+00> : vector<16xf32>
    %108 = vector.multi_reduction <add>, %105, %cst_46 [1] : vector<16x32xf32> to vector<16xf32>
    %109 = vector.shape_cast %108 : vector<16xf32> to vector<16x1xf32>
    %cst_47 = arith.constant 3.200000e+01 : f32
    %110 = vector.broadcast %cst_47 : f32 to vector<16x1xf32>
    %111 = arith.divf %109, %110 : vector<16x1xf32>
    %112 = vector.broadcast %111 : vector<16x1xf32> to vector<16x32xf32>
    %113 = arith.subf %105, %112 : vector<16x32xf32>
    %114 = arith.mulf %113, %113 : vector<16x32xf32>
    %cst_48 = arith.constant dense<0.000000e+00> : vector<16xf32>
    %115 = vector.multi_reduction <add>, %114, %cst_48 [1] : vector<16x32xf32> to vector<16xf32>
    %116 = vector.shape_cast %115 : vector<16xf32> to vector<16x1xf32>
    %cst_49 = arith.constant 3.200000e+01 : f32
    %117 = vector.broadcast %cst_49 : f32 to vector<16x1xf32>
    %118 = arith.divf %116, %117 : vector<16x1xf32>
    %119 = vector.broadcast %111 : vector<16x1xf32> to vector<16x32xf32>
    %120 = arith.subf %105, %119 : vector<16x32xf32>
    %cst_50 = arith.constant 9.99999996E-13 : f32
    %121 = vector.broadcast %cst_50 : f32 to vector<16x1xf32>
    %122 = arith.addf %118, %121 : vector<16x1xf32>
    %123 = math.rsqrt %122 : vector<16x1xf32>
    %124 = vector.broadcast %123 : vector<16x1xf32> to vector<16x32xf32>
    %125 = arith.mulf %120, %124 : vector<16x32xf32>
    %126 = vector.broadcast %106 : vector<1x32xf32> to vector<16x32xf32>
    %127 = arith.mulf %125, %126 : vector<16x32xf32>
    %128 = vector.broadcast %107 : vector<1x32xf32> to vector<16x32xf32>
    %129 = arith.addf %127, %128 : vector<16x32xf32>
    %c0_51 = arith.constant 0 : index
    %c0_52 = arith.constant 0 : index
    %c0_53 = arith.constant 0 : index
    %130 = vector.load %arg15[%c0_51, %c0_52, %c0_53] : memref<1x16x32xf32, #tpu.memory_space<vmem>>, vector<1x16x32xf32>
    %131 = vector.shape_cast %130 : vector<1x16x32xf32> to vector<16x32xf32>
    %132 = vector.shape_cast %129 : vector<16x32xf32> to vector<1x16x32xf32>
    tpu.vector_store %arg15[%c0_51, %c0_52, %c0_53], %132 {strides = array<i32>} : memref<1x16x32xf32, #tpu.memory_space<vmem>>, vector<1x16x32xf32>,
    return
  }
  func.func @transform_0(%arg0: i32) -> (i32, i32, i32) {
    %c0_i32 = arith.constant 0 : i32
    %c0_i32_0 = arith.constant 0 : i32
    %c0_i32_1 = arith.constant 0 : i32
    return %arg0, %c0_i32, %c0_i32_0 : i32, i32, i32
  }
  func.func @transform_1(%arg0: i32) -> (i32, i32, i32) {
    %c0_i32 = arith.constant 0 : i32
    %c0_i32_0 = arith.constant 0 : i32
    %c0_i32_1 = arith.constant 0 : i32
    return %arg0, %c0_i32, %c0_i32_0 : i32, i32, i32
  }
  func.func @transform_2(%arg0: i32) -> (i32, i32) {
    %c0_i32 = arith.constant 0 : i32
    %c0_i32_0 = arith.constant 0 : i32
    %c0_i32_1 = arith.constant 0 : i32
    return %c0_i32, %c0_i32_0 : i32, i32
  }
  func.func @transform_3(%arg0: i32) -> (i32, i32) {
    %c0_i32 = arith.constant 0 : i32
    %c0_i32_0 = arith.constant 0 : i32
    %c0_i32_1 = arith.constant 0 : i32
    return %c0_i32, %c0_i32_0 : i32, i32
  }
  func.func @transform_4(%arg0: i32) -> (i32, i32) {
    %c0_i32 = arith.constant 0 : i32
    %c0_i32_0 = arith.constant 0 : i32
    %c0_i32_1 = arith.constant 0 : i32
    return %c0_i32, %c0_i32_0 : i32, i32
  }
  func.func @transform_5(%arg0: i32) -> (i32, i32) {
    %c0_i32 = arith.constant 0 : i32
    %c0_i32_0 = arith.constant 0 : i32
    %c0_i32_1 = arith.constant 0 : i32
    return %c0_i32, %c0_i32_0 : i32, i32
  }
  func.func @transform_6(%arg0: i32) -> (i32, i32) {
    %c0_i32 = arith.constant 0 : i32
    %c0_i32_0 = arith.constant 0 : i32
    %c0_i32_1 = arith.constant 0 : i32
    return %c0_i32, %c0_i32_0 : i32, i32
  }
  func.func @transform_7(%arg0: i32) -> (i32, i32) {
    %c0_i32 = arith.constant 0 : i32
    %c0_i32_0 = arith.constant 0 : i32
    %c0_i32_1 = arith.constant 0 : i32
    return %c0_i32, %c0_i32_0 : i32, i32
  }
  func.func @transform_8(%arg0: i32) -> (i32, i32) {
    %c0_i32 = arith.constant 0 : i32
    %c0_i32_0 = arith.constant 0 : i32
    %c0_i32_1 = arith.constant 0 : i32
    return %c0_i32, %c0_i32_0 : i32, i32
  }
  func.func @transform_9(%arg0: i32) -> (i32, i32) {
    %c0_i32 = arith.constant 0 : i32
    %c0_i32_0 = arith.constant 0 : i32
    %c0_i32_1 = arith.constant 0 : i32
    return %c0_i32, %c0_i32_0 : i32, i32
  }
  func.func @transform_10(%arg0: i32) -> (i32, i32) {
    %c0_i32 = arith.constant 0 : i32
    %c0_i32_0 = arith.constant 0 : i32
    %c0_i32_1 = arith.constant 0 : i32
    return %c0_i32, %c0_i32_0 : i32, i32
  }
  func.func @transform_11(%arg0: i32) -> (i32, i32) {
    %c0_i32 = arith.constant 0 : i32
    %c0_i32_0 = arith.constant 0 : i32
    %c0_i32_1 = arith.constant 0 : i32
    return %c0_i32, %c0_i32_0 : i32, i32
  }
  func.func @transform_12(%arg0: i32) -> (i32, i32) {
    %c0_i32 = arith.constant 0 : i32
    %c0_i32_0 = arith.constant 0 : i32
    %c0_i32_1 = arith.constant 0 : i32
    return %c0_i32, %c0_i32_0 : i32, i32
  }
  func.func @transform_13(%arg0: i32) -> (i32, i32) {
    %c0_i32 = arith.constant 0 : i32
    %c0_i32_0 = arith.constant 0 : i32
    %c0_i32_1 = arith.constant 0 : i32
    return %c0_i32, %c0_i32_0 : i32, i32
  }
  func.func @transform_14(%arg0: i32) -> (i32, i32, i32) {
    %c0_i32 = arith.constant 0 : i32
    %c0_i32_0 = arith.constant 0 : i32
    %c0_i32_1 = arith.constant 0 : i32
    return %arg0, %c0_i32, %c0_i32_0 : i32, i32, i32
  }
}

module attributes {stable_mosaic.version = 11 : i64} {
  func.func @_enc_layer_kernel(%arg0: i32, %arg1: memref<1x8x64xf32, #tpu.memory_space<vmem>>, %arg2: memref<1x1x8xf32, #tpu.memory_space<vmem>>, %arg3: memref<64x192xf32, #tpu.memory_space<vmem>>, %arg4: memref<1x192xf32, #tpu.memory_space<vmem>>, %arg5: memref<64x64xf32, #tpu.memory_space<vmem>>, %arg6: memref<1x64xf32, #tpu.memory_space<vmem>>, %arg7: memref<1x64xf32, #tpu.memory_space<vmem>>, %arg8: memref<1x64xf32, #tpu.memory_space<vmem>>, %arg9: memref<64x128xf32, #tpu.memory_space<vmem>>, %arg10: memref<1x128xf32, #tpu.memory_space<vmem>>, %arg11: memref<128x64xf32, #tpu.memory_space<vmem>>, %arg12: memref<1x64xf32, #tpu.memory_space<vmem>>, %arg13: memref<1x64xf32, #tpu.memory_space<vmem>>, %arg14: memref<1x64xf32, #tpu.memory_space<vmem>>, %arg15: memref<1x8x64xf32, #tpu.memory_space<vmem>>) attributes {dimension_semantics = [#tpu.dimension_semantics<parallel>], iteration_bounds = array<i64: 2>, scalar_prefetch = 0 : i64, scratch_operands = 0 : i64, tpu.core_type = #tpu.core_type<tc>, window_params = [{transform_indices = @transform_0, window_bounds = array<i64: 1, 8, 64>}, {transform_indices = @transform_1, window_bounds = array<i64: 1, 1, 8>}, {pipeline_mode = #tpu.pipeline_mode<synchronous>, transform_indices = @transform_2, window_bounds = array<i64: 64, 192>}, {pipeline_mode = #tpu.pipeline_mode<synchronous>, transform_indices = @transform_3, window_bounds = array<i64: 1, 192>}, {pipeline_mode = #tpu.pipeline_mode<synchronous>, transform_indices = @transform_4, window_bounds = array<i64: 64, 64>}, {pipeline_mode = #tpu.pipeline_mode<synchronous>, transform_indices = @transform_5, window_bounds = array<i64: 1, 64>}, {pipeline_mode = #tpu.pipeline_mode<synchronous>, transform_indices = @transform_6, window_bounds = array<i64: 1, 64>}, {pipeline_mode = #tpu.pipeline_mode<synchronous>, transform_indices = @transform_7, window_bounds = array<i64: 1, 64>}, {pipeline_mode = #tpu.pipeline_mode<synchronous>, transform_indices = @transform_8, window_bounds = array<i64: 64, 128>}, {pipeline_mode = #tpu.pipeline_mode<synchronous>, transform_indices = @transform_9, window_bounds = array<i64: 1, 128>}, {pipeline_mode = #tpu.pipeline_mode<synchronous>, transform_indices = @transform_10, window_bounds = array<i64: 128, 64>}, {pipeline_mode = #tpu.pipeline_mode<synchronous>, transform_indices = @transform_11, window_bounds = array<i64: 1, 64>}, {pipeline_mode = #tpu.pipeline_mode<synchronous>, transform_indices = @transform_12, window_bounds = array<i64: 1, 64>}, {pipeline_mode = #tpu.pipeline_mode<synchronous>, transform_indices = @transform_13, window_bounds = array<i64: 1, 64>}, {transform_indices = @transform_14, window_bounds = array<i64: 1, 8, 64>}]} {
    %c0 = arith.constant 0 : index
    %c0_0 = arith.constant 0 : index
    %c0_1 = arith.constant 0 : index
    %0 = vector.load %arg1[%c0, %c0_0, %c0_1] : memref<1x8x64xf32, #tpu.memory_space<vmem>>, vector<1x8x64xf32>
    %1 = vector.shape_cast %0 : vector<1x8x64xf32> to vector<8x64xf32>
    %c0_2 = arith.constant 0 : index
    %c0_3 = arith.constant 0 : index
    %c0_4 = arith.constant 0 : index
    %2 = vector.load %arg2[%c0_2, %c0_3, %c0_4] : memref<1x1x8xf32, #tpu.memory_space<vmem>>, vector<1x1x8xf32>
    %3 = vector.shape_cast %2 : vector<1x1x8xf32> to vector<1x8xf32>
    %c0_5 = arith.constant 0 : index
    %c0_6 = arith.constant 0 : index
    %4 = vector.load %arg3[%c0_5, %c0_6] : memref<64x192xf32, #tpu.memory_space<vmem>>, vector<64x192xf32>
    %5 = arith.truncf %1 : vector<8x64xf32> to vector<8x64xbf16>
    %6 = arith.truncf %4 : vector<64x192xf32> to vector<64x192xbf16>
    %cst = arith.constant dense<0.000000e+00> : vector<8x192xf32>
    %7 = tpu.matmul %5, %6, %cst {dimension_numbers = #tpu.dot_dimension_numbers<[1], [0], [0], [1], [0, 0, 1, 1], [], []>} : vector<8x64xbf16>, vector<64x192xbf16>, vector<8x192xf32> -> vector<8x192xf32>
    %c0_7 = arith.constant 0 : index
    %c0_8 = arith.constant 0 : index
    %8 = vector.load %arg4[%c0_7, %c0_8] : memref<1x192xf32, #tpu.memory_space<vmem>>, vector<1x192xf32>
    %9 = vector.broadcast %8 : vector<1x192xf32> to vector<8x192xf32>
    %10 = arith.addf %7, %9 : vector<8x192xf32>
    %11 = vector.extract_strided_slice %10 {offsets = [0, 0], sizes = [8, 64], strides = [1, 1]} : vector<8x192xf32> to vector<8x64xf32>
    %12 = vector.extract_strided_slice %10 {offsets = [0, 64], sizes = [8, 64], strides = [1, 1]} : vector<8x192xf32> to vector<8x64xf32>
    %13 = vector.extract_strided_slice %10 {offsets = [0, 128], sizes = [8, 64], strides = [1, 1]} : vector<8x192xf32> to vector<8x64xf32>
    %14 = vector.extract_strided_slice %11 {offsets = [0, 0], sizes = [8, 16], strides = [1, 1]} : vector<8x64xf32> to vector<8x16xf32>
    %15 = arith.truncf %14 : vector<8x16xf32> to vector<8x16xbf16>
    %16 = vector.extract_strided_slice %12 {offsets = [0, 0], sizes = [8, 16], strides = [1, 1]} : vector<8x64xf32> to vector<8x16xf32>
    %17 = arith.truncf %16 : vector<8x16xf32> to vector<8x16xbf16>
    %cst_9 = arith.constant dense<0.000000e+00> : vector<8x8xf32>
    %18 = tpu.matmul %15, %17, %cst_9 {dimension_numbers = #tpu.dot_dimension_numbers<[1], [1], [0], [0], [0, 0, 1, 0], [], []>} : vector<8x16xbf16>, vector<8x16xbf16>, vector<8x8xf32> -> vector<8x8xf32>
    %19 = vector.broadcast %3 : vector<1x8xf32> to vector<8x8xf32>
    %20 = arith.addf %18, %19 : vector<8x8xf32>
    %cst_10 = arith.constant dense<0xFF800000> : vector<8xf32>
    %21 = vector.multi_reduction <maximumf>, %20, %cst_10 [1] : vector<8x8xf32> to vector<8xf32>
    %22 = vector.shape_cast %21 : vector<8xf32> to vector<8x1xf32>
    %23 = vector.broadcast %22 : vector<8x1xf32> to vector<8x8xf32>
    %24 = arith.subf %20, %23 : vector<8x8xf32>
    %25 = math.exp %24 : vector<8x8xf32>
    %cst_11 = arith.constant dense<0.000000e+00> : vector<8xf32>
    %26 = vector.multi_reduction <add>, %25, %cst_11 [1] : vector<8x8xf32> to vector<8xf32>
    %27 = vector.shape_cast %26 : vector<8xf32> to vector<8x1xf32>
    %28 = tpu.reciprocal %27 {approx = true} : vector<8x1xf32> -> vector<8x1xf32>
    %29 = vector.broadcast %28 : vector<8x1xf32> to vector<8x8xf32>
    %30 = arith.mulf %25, %29 : vector<8x8xf32>
    %31 = vector.extract_strided_slice %13 {offsets = [0, 0], sizes = [8, 16], strides = [1, 1]} : vector<8x64xf32> to vector<8x16xf32>
    %32 = arith.truncf %30 : vector<8x8xf32> to vector<8x8xbf16>
    %33 = arith.truncf %31 : vector<8x16xf32> to vector<8x16xbf16>
    %cst_12 = arith.constant dense<0.000000e+00> : vector<8x16xf32>
    %34 = tpu.matmul %32, %33, %cst_12 {dimension_numbers = #tpu.dot_dimension_numbers<[1], [0], [0], [1], [0, 0, 1, 1], [], []>} : vector<8x8xbf16>, vector<8x16xbf16>, vector<8x16xf32> -> vector<8x16xf32>
    %35 = vector.extract_strided_slice %11 {offsets = [0, 16], sizes = [8, 16], strides = [1, 1]} : vector<8x64xf32> to vector<8x16xf32>
    %36 = arith.truncf %35 : vector<8x16xf32> to vector<8x16xbf16>
    %37 = vector.extract_strided_slice %12 {offsets = [0, 16], sizes = [8, 16], strides = [1, 1]} : vector<8x64xf32> to vector<8x16xf32>
    %38 = arith.truncf %37 : vector<8x16xf32> to vector<8x16xbf16>
    %cst_13 = arith.constant dense<0.000000e+00> : vector<8x8xf32>
    %39 = tpu.matmul %36, %38, %cst_13 {dimension_numbers = #tpu.dot_dimension_numbers<[1], [1], [0], [0], [0, 0, 1, 0], [], []>} : vector<8x16xbf16>, vector<8x16xbf16>, vector<8x8xf32> -> vector<8x8xf32>
    %40 = vector.broadcast %3 : vector<1x8xf32> to vector<8x8xf32>
    %41 = arith.addf %39, %40 : vector<8x8xf32>
    %cst_14 = arith.constant dense<0xFF800000> : vector<8xf32>
    %42 = vector.multi_reduction <maximumf>, %41, %cst_14 [1] : vector<8x8xf32> to vector<8xf32>
    %43 = vector.shape_cast %42 : vector<8xf32> to vector<8x1xf32>
    %44 = vector.broadcast %43 : vector<8x1xf32> to vector<8x8xf32>
    %45 = arith.subf %41, %44 : vector<8x8xf32>
    %46 = math.exp %45 : vector<8x8xf32>
    %cst_15 = arith.constant dense<0.000000e+00> : vector<8xf32>
    %47 = vector.multi_reduction <add>, %46, %cst_15 [1] : vector<8x8xf32> to vector<8xf32>
    %48 = vector.shape_cast %47 : vector<8xf32> to vector<8x1xf32>
    %49 = tpu.reciprocal %48 {approx = true} : vector<8x1xf32> -> vector<8x1xf32>
    %50 = vector.broadcast %49 : vector<8x1xf32> to vector<8x8xf32>
    %51 = arith.mulf %46, %50 : vector<8x8xf32>
    %52 = vector.extract_strided_slice %13 {offsets = [0, 16], sizes = [8, 16], strides = [1, 1]} : vector<8x64xf32> to vector<8x16xf32>
    %53 = arith.truncf %51 : vector<8x8xf32> to vector<8x8xbf16>
    %54 = arith.truncf %52 : vector<8x16xf32> to vector<8x16xbf16>
    %cst_16 = arith.constant dense<0.000000e+00> : vector<8x16xf32>
    %55 = tpu.matmul %53, %54, %cst_16 {dimension_numbers = #tpu.dot_dimension_numbers<[1], [0], [0], [1], [0, 0, 1, 1], [], []>} : vector<8x8xbf16>, vector<8x16xbf16>, vector<8x16xf32> -> vector<8x16xf32>
    %56 = vector.extract_strided_slice %11 {offsets = [0, 32], sizes = [8, 16], strides = [1, 1]} : vector<8x64xf32> to vector<8x16xf32>
    %57 = arith.truncf %56 : vector<8x16xf32> to vector<8x16xbf16>
    %58 = vector.extract_strided_slice %12 {offsets = [0, 32], sizes = [8, 16], strides = [1, 1]} : vector<8x64xf32> to vector<8x16xf32>
    %59 = arith.truncf %58 : vector<8x16xf32> to vector<8x16xbf16>
    %cst_17 = arith.constant dense<0.000000e+00> : vector<8x8xf32>
    %60 = tpu.matmul %57, %59, %cst_17 {dimension_numbers = #tpu.dot_dimension_numbers<[1], [1], [0], [0], [0, 0, 1, 0], [], []>} : vector<8x16xbf16>, vector<8x16xbf16>, vector<8x8xf32> -> vector<8x8xf32>
    %61 = vector.broadcast %3 : vector<1x8xf32> to vector<8x8xf32>
    %62 = arith.addf %60, %61 : vector<8x8xf32>
    %cst_18 = arith.constant dense<0xFF800000> : vector<8xf32>
    %63 = vector.multi_reduction <maximumf>, %62, %cst_18 [1] : vector<8x8xf32> to vector<8xf32>
    %64 = vector.shape_cast %63 : vector<8xf32> to vector<8x1xf32>
    %65 = vector.broadcast %64 : vector<8x1xf32> to vector<8x8xf32>
    %66 = arith.subf %62, %65 : vector<8x8xf32>
    %67 = math.exp %66 : vector<8x8xf32>
    %cst_19 = arith.constant dense<0.000000e+00> : vector<8xf32>
    %68 = vector.multi_reduction <add>, %67, %cst_19 [1] : vector<8x8xf32> to vector<8xf32>
    %69 = vector.shape_cast %68 : vector<8xf32> to vector<8x1xf32>
    %70 = tpu.reciprocal %69 {approx = true} : vector<8x1xf32> -> vector<8x1xf32>
    %71 = vector.broadcast %70 : vector<8x1xf32> to vector<8x8xf32>
    %72 = arith.mulf %67, %71 : vector<8x8xf32>
    %73 = vector.extract_strided_slice %13 {offsets = [0, 32], sizes = [8, 16], strides = [1, 1]} : vector<8x64xf32> to vector<8x16xf32>
    %74 = arith.truncf %72 : vector<8x8xf32> to vector<8x8xbf16>
    %75 = arith.truncf %73 : vector<8x16xf32> to vector<8x16xbf16>
    %cst_20 = arith.constant dense<0.000000e+00> : vector<8x16xf32>
    %76 = tpu.matmul %74, %75, %cst_20 {dimension_numbers = #tpu.dot_dimension_numbers<[1], [0], [0], [1], [0, 0, 1, 1], [], []>} : vector<8x8xbf16>, vector<8x16xbf16>, vector<8x16xf32> -> vector<8x16xf32>
    %77 = vector.extract_strided_slice %11 {offsets = [0, 48], sizes = [8, 16], strides = [1, 1]} : vector<8x64xf32> to vector<8x16xf32>
    %78 = arith.truncf %77 : vector<8x16xf32> to vector<8x16xbf16>
    %79 = vector.extract_strided_slice %12 {offsets = [0, 48], sizes = [8, 16], strides = [1, 1]} : vector<8x64xf32> to vector<8x16xf32>
    %80 = arith.truncf %79 : vector<8x16xf32> to vector<8x16xbf16>
    %cst_21 = arith.constant dense<0.000000e+00> : vector<8x8xf32>
    %81 = tpu.matmul %78, %80, %cst_21 {dimension_numbers = #tpu.dot_dimension_numbers<[1], [1], [0], [0], [0, 0, 1, 0], [], []>} : vector<8x16xbf16>, vector<8x16xbf16>, vector<8x8xf32> -> vector<8x8xf32>
    %82 = vector.broadcast %3 : vector<1x8xf32> to vector<8x8xf32>
    %83 = arith.addf %81, %82 : vector<8x8xf32>
    %cst_22 = arith.constant dense<0xFF800000> : vector<8xf32>
    %84 = vector.multi_reduction <maximumf>, %83, %cst_22 [1] : vector<8x8xf32> to vector<8xf32>
    %85 = vector.shape_cast %84 : vector<8xf32> to vector<8x1xf32>
    %86 = vector.broadcast %85 : vector<8x1xf32> to vector<8x8xf32>
    %87 = arith.subf %83, %86 : vector<8x8xf32>
    %88 = math.exp %87 : vector<8x8xf32>
    %cst_23 = arith.constant dense<0.000000e+00> : vector<8xf32>
    %89 = vector.multi_reduction <add>, %88, %cst_23 [1] : vector<8x8xf32> to vector<8xf32>
    %90 = vector.shape_cast %89 : vector<8xf32> to vector<8x1xf32>
    %91 = tpu.reciprocal %90 {approx = true} : vector<8x1xf32> -> vector<8x1xf32>
    %92 = vector.broadcast %91 : vector<8x1xf32> to vector<8x8xf32>
    %93 = arith.mulf %88, %92 : vector<8x8xf32>
    %94 = vector.extract_strided_slice %13 {offsets = [0, 48], sizes = [8, 16], strides = [1, 1]} : vector<8x64xf32> to vector<8x16xf32>
    %95 = arith.truncf %93 : vector<8x8xf32> to vector<8x8xbf16>
    %96 = arith.truncf %94 : vector<8x16xf32> to vector<8x16xbf16>
    %cst_24 = arith.constant dense<0.000000e+00> : vector<8x16xf32>
    %97 = tpu.matmul %95, %96, %cst_24 {dimension_numbers = #tpu.dot_dimension_numbers<[1], [0], [0], [1], [0, 0, 1, 1], [], []>} : vector<8x8xbf16>, vector<8x16xbf16>, vector<8x16xf32> -> vector<8x16xf32>
    %98 = tpu.concatenate %34, %55, %76, %97 in 1 : vector<8x16xf32>, vector<8x16xf32>, vector<8x16xf32>, vector<8x16xf32> -> vector<8x64xf32>
    %c0_25 = arith.constant 0 : index
    %c0_26 = arith.constant 0 : index
    %99 = vector.load %arg5[%c0_25, %c0_26] : memref<64x64xf32, #tpu.memory_space<vmem>>, vector<64x64xf32>
    %100 = arith.truncf %98 : vector<8x64xf32> to vector<8x64xbf16>
    %101 = arith.truncf %99 : vector<64x64xf32> to vector<64x64xbf16>
    %cst_27 = arith.constant dense<0.000000e+00> : vector<8x64xf32>
    %102 = tpu.matmul %100, %101, %cst_27 {dimension_numbers = #tpu.dot_dimension_numbers<[1], [0], [0], [1], [0, 0, 1, 1], [], []>} : vector<8x64xbf16>, vector<64x64xbf16>, vector<8x64xf32> -> vector<8x64xf32>
    %c0_28 = arith.constant 0 : index
    %c0_29 = arith.constant 0 : index
    %103 = vector.load %arg6[%c0_28, %c0_29] : memref<1x64xf32, #tpu.memory_space<vmem>>, vector<1x64xf32>
    %104 = vector.broadcast %103 : vector<1x64xf32> to vector<8x64xf32>
    %105 = arith.addf %102, %104 : vector<8x64xf32>
    %106 = arith.addf %105, %1 : vector<8x64xf32>
    %c0_30 = arith.constant 0 : index
    %c0_31 = arith.constant 0 : index
    %107 = vector.load %arg7[%c0_30, %c0_31] : memref<1x64xf32, #tpu.memory_space<vmem>>, vector<1x64xf32>
    %c0_32 = arith.constant 0 : index
    %c0_33 = arith.constant 0 : index
    %108 = vector.load %arg8[%c0_32, %c0_33] : memref<1x64xf32, #tpu.memory_space<vmem>>, vector<1x64xf32>
    %cst_34 = arith.constant dense<0.000000e+00> : vector<8xf32>
    %109 = vector.multi_reduction <add>, %106, %cst_34 [1] : vector<8x64xf32> to vector<8xf32>
    %110 = vector.shape_cast %109 : vector<8xf32> to vector<8x1xf32>
    %cst_35 = arith.constant 6.400000e+01 : f32
    %111 = vector.broadcast %cst_35 : f32 to vector<8x1xf32>
    %112 = arith.divf %110, %111 : vector<8x1xf32>
    %113 = vector.broadcast %112 : vector<8x1xf32> to vector<8x64xf32>
    %114 = arith.subf %106, %113 : vector<8x64xf32>
    %115 = arith.mulf %114, %114 : vector<8x64xf32>
    %cst_36 = arith.constant dense<0.000000e+00> : vector<8xf32>
    %116 = vector.multi_reduction <add>, %115, %cst_36 [1] : vector<8x64xf32> to vector<8xf32>
    %117 = vector.shape_cast %116 : vector<8xf32> to vector<8x1xf32>
    %cst_37 = arith.constant 6.400000e+01 : f32
    %118 = vector.broadcast %cst_37 : f32 to vector<8x1xf32>
    %119 = arith.divf %117, %118 : vector<8x1xf32>
    %120 = vector.broadcast %112 : vector<8x1xf32> to vector<8x64xf32>
    %121 = arith.subf %106, %120 : vector<8x64xf32>
    %cst_38 = arith.constant 9.99999996E-13 : f32
    %122 = vector.broadcast %cst_38 : f32 to vector<8x1xf32>
    %123 = arith.addf %119, %122 : vector<8x1xf32>
    %124 = math.rsqrt %123 : vector<8x1xf32>
    %125 = vector.broadcast %124 : vector<8x1xf32> to vector<8x64xf32>
    %126 = arith.mulf %121, %125 : vector<8x64xf32>
    %127 = vector.broadcast %107 : vector<1x64xf32> to vector<8x64xf32>
    %128 = arith.mulf %126, %127 : vector<8x64xf32>
    %129 = vector.broadcast %108 : vector<1x64xf32> to vector<8x64xf32>
    %130 = arith.addf %128, %129 : vector<8x64xf32>
    %c0_39 = arith.constant 0 : index
    %c0_40 = arith.constant 0 : index
    %131 = vector.load %arg9[%c0_39, %c0_40] : memref<64x128xf32, #tpu.memory_space<vmem>>, vector<64x128xf32>
    %132 = arith.truncf %130 : vector<8x64xf32> to vector<8x64xbf16>
    %133 = arith.truncf %131 : vector<64x128xf32> to vector<64x128xbf16>
    %cst_41 = arith.constant dense<0.000000e+00> : vector<8x128xf32>
    %134 = tpu.matmul %132, %133, %cst_41 {dimension_numbers = #tpu.dot_dimension_numbers<[1], [0], [0], [1], [0, 0, 1, 1], [], []>} : vector<8x64xbf16>, vector<64x128xbf16>, vector<8x128xf32> -> vector<8x128xf32>
    %c0_42 = arith.constant 0 : index
    %c0_43 = arith.constant 0 : index
    %135 = vector.load %arg10[%c0_42, %c0_43] : memref<1x128xf32, #tpu.memory_space<vmem>>, vector<1x128xf32>
    %136 = vector.broadcast %135 : vector<1x128xf32> to vector<8x128xf32>
    %137 = arith.addf %134, %136 : vector<8x128xf32>
    %cst_44 = arith.constant 0.000000e+00 : f32
    %138 = vector.broadcast %cst_44 : f32 to vector<8x128xf32>
    %139 = arith.maximumf %137, %138 : vector<8x128xf32>
    %c0_45 = arith.constant 0 : index
    %c0_46 = arith.constant 0 : index
    %140 = vector.load %arg11[%c0_45, %c0_46] : memref<128x64xf32, #tpu.memory_space<vmem>>, vector<128x64xf32>
    %141 = arith.truncf %139 : vector<8x128xf32> to vector<8x128xbf16>
    %142 = arith.truncf %140 : vector<128x64xf32> to vector<128x64xbf16>
    %cst_47 = arith.constant dense<0.000000e+00> : vector<8x64xf32>
    %143 = tpu.matmul %141, %142, %cst_47 {dimension_numbers = #tpu.dot_dimension_numbers<[1], [0], [0], [1], [0, 0, 1, 1], [], []>} : vector<8x128xbf16>, vector<128x64xbf16>, vector<8x64xf32> -> vector<8x64xf32>
    %c0_48 = arith.constant 0 : index
    %c0_49 = arith.constant 0 : index
    %144 = vector.load %arg12[%c0_48, %c0_49] : memref<1x64xf32, #tpu.memory_space<vmem>>, vector<1x64xf32>
    %145 = vector.broadcast %144 : vector<1x64xf32> to vector<8x64xf32>
    %146 = arith.addf %143, %145 : vector<8x64xf32>
    %147 = arith.addf %146, %130 : vector<8x64xf32>
    %c0_50 = arith.constant 0 : index
    %c0_51 = arith.constant 0 : index
    %148 = vector.load %arg13[%c0_50, %c0_51] : memref<1x64xf32, #tpu.memory_space<vmem>>, vector<1x64xf32>
    %c0_52 = arith.constant 0 : index
    %c0_53 = arith.constant 0 : index
    %149 = vector.load %arg14[%c0_52, %c0_53] : memref<1x64xf32, #tpu.memory_space<vmem>>, vector<1x64xf32>
    %cst_54 = arith.constant dense<0.000000e+00> : vector<8xf32>
    %150 = vector.multi_reduction <add>, %147, %cst_54 [1] : vector<8x64xf32> to vector<8xf32>
    %151 = vector.shape_cast %150 : vector<8xf32> to vector<8x1xf32>
    %cst_55 = arith.constant 6.400000e+01 : f32
    %152 = vector.broadcast %cst_55 : f32 to vector<8x1xf32>
    %153 = arith.divf %151, %152 : vector<8x1xf32>
    %154 = vector.broadcast %153 : vector<8x1xf32> to vector<8x64xf32>
    %155 = arith.subf %147, %154 : vector<8x64xf32>
    %156 = arith.mulf %155, %155 : vector<8x64xf32>
    %cst_56 = arith.constant dense<0.000000e+00> : vector<8xf32>
    %157 = vector.multi_reduction <add>, %156, %cst_56 [1] : vector<8x64xf32> to vector<8xf32>
    %158 = vector.shape_cast %157 : vector<8xf32> to vector<8x1xf32>
    %cst_57 = arith.constant 6.400000e+01 : f32
    %159 = vector.broadcast %cst_57 : f32 to vector<8x1xf32>
    %160 = arith.divf %158, %159 : vector<8x1xf32>
    %161 = vector.broadcast %153 : vector<8x1xf32> to vector<8x64xf32>
    %162 = arith.subf %147, %161 : vector<8x64xf32>
    %cst_58 = arith.constant 9.99999996E-13 : f32
    %163 = vector.broadcast %cst_58 : f32 to vector<8x1xf32>
    %164 = arith.addf %160, %163 : vector<8x1xf32>
    %165 = math.rsqrt %164 : vector<8x1xf32>
    %166 = vector.broadcast %165 : vector<8x1xf32> to vector<8x64xf32>
    %167 = arith.mulf %162, %166 : vector<8x64xf32>
    %168 = vector.broadcast %148 : vector<1x64xf32> to vector<8x64xf32>
    %169 = arith.mulf %167, %168 : vector<8x64xf32>
    %170 = vector.broadcast %149 : vector<1x64xf32> to vector<8x64xf32>
    %171 = arith.addf %169, %170 : vector<8x64xf32>
    %c0_59 = arith.constant 0 : index
    %c0_60 = arith.constant 0 : index
    %c0_61 = arith.constant 0 : index
    %172 = vector.load %arg15[%c0_59, %c0_60, %c0_61] : memref<1x8x64xf32, #tpu.memory_space<vmem>>, vector<1x8x64xf32>
    %173 = vector.shape_cast %172 : vector<1x8x64xf32> to vector<8x64xf32>
    %174 = vector.shape_cast %171 : vector<8x64xf32> to vector<1x8x64xf32>
    tpu.vector_store %arg15[%c0_59, %c0_60, %c0_61], %174 {strides = array<i32>} : memref<1x8x64xf32, #tpu.memory_space<vmem>>, vector<1x8x64xf32>,
    return
  }
  func.func @transform_0(%arg0: i32) -> (i32, i32, i32) {
    %c0_i32 = arith.constant 0 : i32
    %c0_i32_0 = arith.constant 0 : i32
    %c0_i32_1 = arith.constant 0 : i32
    return %arg0, %c0_i32, %c0_i32_0 : i32, i32, i32
  }
  func.func @transform_1(%arg0: i32) -> (i32, i32, i32) {
    %c0_i32 = arith.constant 0 : i32
    %c0_i32_0 = arith.constant 0 : i32
    %c0_i32_1 = arith.constant 0 : i32
    return %arg0, %c0_i32, %c0_i32_0 : i32, i32, i32
  }
  func.func @transform_2(%arg0: i32) -> (i32, i32) {
    %c0_i32 = arith.constant 0 : i32
    %c0_i32_0 = arith.constant 0 : i32
    %c0_i32_1 = arith.constant 0 : i32
    return %c0_i32, %c0_i32_0 : i32, i32
  }
  func.func @transform_3(%arg0: i32) -> (i32, i32) {
    %c0_i32 = arith.constant 0 : i32
    %c0_i32_0 = arith.constant 0 : i32
    %c0_i32_1 = arith.constant 0 : i32
    return %c0_i32, %c0_i32_0 : i32, i32
  }
  func.func @transform_4(%arg0: i32) -> (i32, i32) {
    %c0_i32 = arith.constant 0 : i32
    %c0_i32_0 = arith.constant 0 : i32
    %c0_i32_1 = arith.constant 0 : i32
    return %c0_i32, %c0_i32_0 : i32, i32
  }
  func.func @transform_5(%arg0: i32) -> (i32, i32) {
    %c0_i32 = arith.constant 0 : i32
    %c0_i32_0 = arith.constant 0 : i32
    %c0_i32_1 = arith.constant 0 : i32
    return %c0_i32, %c0_i32_0 : i32, i32
  }
  func.func @transform_6(%arg0: i32) -> (i32, i32) {
    %c0_i32 = arith.constant 0 : i32
    %c0_i32_0 = arith.constant 0 : i32
    %c0_i32_1 = arith.constant 0 : i32
    return %c0_i32, %c0_i32_0 : i32, i32
  }
  func.func @transform_7(%arg0: i32) -> (i32, i32) {
    %c0_i32 = arith.constant 0 : i32
    %c0_i32_0 = arith.constant 0 : i32
    %c0_i32_1 = arith.constant 0 : i32
    return %c0_i32, %c0_i32_0 : i32, i32
  }
  func.func @transform_8(%arg0: i32) -> (i32, i32) {
    %c0_i32 = arith.constant 0 : i32
    %c0_i32_0 = arith.constant 0 : i32
    %c0_i32_1 = arith.constant 0 : i32
    return %c0_i32, %c0_i32_0 : i32, i32
  }
  func.func @transform_9(%arg0: i32) -> (i32, i32) {
    %c0_i32 = arith.constant 0 : i32
    %c0_i32_0 = arith.constant 0 : i32
    %c0_i32_1 = arith.constant 0 : i32
    return %c0_i32, %c0_i32_0 : i32, i32
  }
  func.func @transform_10(%arg0: i32) -> (i32, i32) {
    %c0_i32 = arith.constant 0 : i32
    %c0_i32_0 = arith.constant 0 : i32
    %c0_i32_1 = arith.constant 0 : i32
    return %c0_i32, %c0_i32_0 : i32, i32
  }
  func.func @transform_11(%arg0: i32) -> (i32, i32) {
    %c0_i32 = arith.constant 0 : i32
    %c0_i32_0 = arith.constant 0 : i32
    %c0_i32_1 = arith.constant 0 : i32
    return %c0_i32, %c0_i32_0 : i32, i32
  }
  func.func @transform_12(%arg0: i32) -> (i32, i32) {
    %c0_i32 = arith.constant 0 : i32
    %c0_i32_0 = arith.constant 0 : i32
    %c0_i32_1 = arith.constant 0 : i32
    return %c0_i32, %c0_i32_0 : i32, i32
  }
  func.func @transform_13(%arg0: i32) -> (i32, i32) {
    %c0_i32 = arith.constant 0 : i32
    %c0_i32_0 = arith.constant 0 : i32
    %c0_i32_1 = arith.constant 0 : i32
    return %c0_i32, %c0_i32_0 : i32, i32
  }
  func.func @transform_14(%arg0: i32) -> (i32, i32, i32) {
    %c0_i32 = arith.constant 0 : i32
    %c0_i32_0 = arith.constant 0 : i32
    %c0_i32_1 = arith.constant 0 : i32
    return %arg0, %c0_i32, %c0_i32_0 : i32, i32, i32
  }
}

module attributes {stable_mosaic.version = 11 : i64} {
  func.func @_linear_kernel(%arg0: i32, %arg1: i32, %arg2: memref<16x64xf32, #tpu.memory_space<vmem>>, %arg3: memref<64x128xf32, #tpu.memory_space<vmem>>, %arg4: memref<1x128xf32, #tpu.memory_space<vmem>>, %arg5: memref<16x128xf32, #tpu.memory_space<vmem>>) attributes {dimension_semantics = [#tpu.dimension_semantics<parallel>, #tpu.dimension_semantics<parallel>], iteration_bounds = array<i64: 1, 1>, scalar_prefetch = 0 : i64, scratch_operands = 0 : i64, tpu.core_type = #tpu.core_type<tc>, window_params = [{transform_indices = @transform_0, window_bounds = array<i64: 16, 64>}, {transform_indices = @transform_1, window_bounds = array<i64: 64, 128>}, {transform_indices = @transform_2, window_bounds = array<i64: 1, 128>}, {transform_indices = @transform_3, window_bounds = array<i64: 16, 128>}]} {
    %c0 = arith.constant 0 : index
    %c0_0 = arith.constant 0 : index
    %0 = vector.load %arg2[%c0, %c0_0] : memref<16x64xf32, #tpu.memory_space<vmem>>, vector<16x64xf32>
    %c0_1 = arith.constant 0 : index
    %c0_2 = arith.constant 0 : index
    %1 = vector.load %arg3[%c0_1, %c0_2] : memref<64x128xf32, #tpu.memory_space<vmem>>, vector<64x128xf32>
    %2 = arith.truncf %0 : vector<16x64xf32> to vector<16x64xbf16>
    %3 = arith.truncf %1 : vector<64x128xf32> to vector<64x128xbf16>
    %cst = arith.constant dense<0.000000e+00> : vector<16x128xf32>
    %4 = tpu.matmul %2, %3, %cst {dimension_numbers = #tpu.dot_dimension_numbers<[1], [0], [0], [1], [0, 0, 1, 1], [], []>} : vector<16x64xbf16>, vector<64x128xbf16>, vector<16x128xf32> -> vector<16x128xf32>
    %c0_3 = arith.constant 0 : index
    %c0_4 = arith.constant 0 : index
    %5 = vector.load %arg4[%c0_3, %c0_4] : memref<1x128xf32, #tpu.memory_space<vmem>>, vector<1x128xf32>
    %6 = vector.broadcast %5 : vector<1x128xf32> to vector<16x128xf32>
    %7 = arith.addf %4, %6 : vector<16x128xf32>
    %c0_5 = arith.constant 0 : index
    %c0_6 = arith.constant 0 : index
    %8 = vector.load %arg5[%c0_5, %c0_6] : memref<16x128xf32, #tpu.memory_space<vmem>>, vector<16x128xf32>
    tpu.vector_store %arg5[%c0_5, %c0_6], %7 {strides = array<i32>} : memref<16x128xf32, #tpu.memory_space<vmem>>, vector<16x128xf32>,
    return
  }
  func.func @transform_0(%arg0: i32, %arg1: i32) -> (i32, i32) {
    %c0_i32 = arith.constant 0 : i32
    %c0_i32_0 = arith.constant 0 : i32
    return %arg0, %c0_i32 : i32, i32
  }
  func.func @transform_1(%arg0: i32, %arg1: i32) -> (i32, i32) {
    %c0_i32 = arith.constant 0 : i32
    %c0_i32_0 = arith.constant 0 : i32
    return %c0_i32, %arg1 : i32, i32
  }
  func.func @transform_2(%arg0: i32, %arg1: i32) -> (i32, i32) {
    %c0_i32 = arith.constant 0 : i32
    %c0_i32_0 = arith.constant 0 : i32
    return %c0_i32, %arg1 : i32, i32
  }
  func.func @transform_3(%arg0: i32, %arg1: i32) -> (i32, i32) {
    %c0_i32 = arith.constant 0 : i32
    return %arg0, %arg1 : i32, i32
  }
}

module attributes {stable_mosaic.version = 11 : i64} {
  func.func @_dec_layer_kernel(%arg0: i32, %arg1: memref<1x8x64xf32, #tpu.memory_space<vmem>>, %arg2: memref<1x8x64xf32, #tpu.memory_space<vmem>>, %arg3: memref<1x8x8xf32, #tpu.memory_space<vmem>>, %arg4: memref<1x1x8xf32, #tpu.memory_space<vmem>>, %arg5: memref<64x192xf32, #tpu.memory_space<vmem>>, %arg6: memref<1x192xf32, #tpu.memory_space<vmem>>, %arg7: memref<64x64xf32, #tpu.memory_space<vmem>>, %arg8: memref<1x64xf32, #tpu.memory_space<vmem>>, %arg9: memref<1x64xf32, #tpu.memory_space<vmem>>, %arg10: memref<1x64xf32, #tpu.memory_space<vmem>>, %arg11: memref<64x64xf32, #tpu.memory_space<vmem>>, %arg12: memref<1x64xf32, #tpu.memory_space<vmem>>, %arg13: memref<64x128xf32, #tpu.memory_space<vmem>>, %arg14: memref<1x128xf32, #tpu.memory_space<vmem>>, %arg15: memref<64x64xf32, #tpu.memory_space<vmem>>, %arg16: memref<1x64xf32, #tpu.memory_space<vmem>>, %arg17: memref<1x64xf32, #tpu.memory_space<vmem>>, %arg18: memref<1x64xf32, #tpu.memory_space<vmem>>, %arg19: memref<64x128xf32, #tpu.memory_space<vmem>>, %arg20: memref<1x128xf32, #tpu.memory_space<vmem>>, %arg21: memref<128x64xf32, #tpu.memory_space<vmem>>, %arg22: memref<1x64xf32, #tpu.memory_space<vmem>>, %arg23: memref<1x64xf32, #tpu.memory_space<vmem>>, %arg24: memref<1x64xf32, #tpu.memory_space<vmem>>, %arg25: memref<1x8x64xf32, #tpu.memory_space<vmem>>) attributes {dimension_semantics = [#tpu.dimension_semantics<parallel>], iteration_bounds = array<i64: 2>, scalar_prefetch = 0 : i64, scratch_operands = 0 : i64, tpu.core_type = #tpu.core_type<tc>, window_params = [{transform_indices = @transform_0, window_bounds = array<i64: 1, 8, 64>}, {transform_indices = @transform_1, window_bounds = array<i64: 1, 8, 64>}, {transform_indices = @transform_2, window_bounds = array<i64: 1, 8, 8>}, {transform_indices = @transform_3, window_bounds = array<i64: 1, 1, 8>}, {pipeline_mode = #tpu.pipeline_mode<synchronous>, transform_indices = @transform_4, window_bounds = array<i64: 64, 192>}, {pipeline_mode = #tpu.pipeline_mode<synchronous>, transform_indices = @transform_5, window_bounds = array<i64: 1, 192>}, {pipeline_mode = #tpu.pipeline_mode<synchronous>, transform_indices = @transform_6, window_bounds = array<i64: 64, 64>}, {pipeline_mode = #tpu.pipeline_mode<synchronous>, transform_indices = @transform_7, window_bounds = array<i64: 1, 64>}, {pipeline_mode = #tpu.pipeline_mode<synchronous>, transform_indices = @transform_8, window_bounds = array<i64: 1, 64>}, {pipeline_mode = #tpu.pipeline_mode<synchronous>, transform_indices = @transform_9, window_bounds = array<i64: 1, 64>}, {pipeline_mode = #tpu.pipeline_mode<synchronous>, transform_indices = @transform_10, window_bounds = array<i64: 64, 64>}, {pipeline_mode = #tpu.pipeline_mode<synchronous>, transform_indices = @transform_11, window_bounds = array<i64: 1, 64>}, {pipeline_mode = #tpu.pipeline_mode<synchronous>, transform_indices = @transform_12, window_bounds = array<i64: 64, 128>}, {pipeline_mode = #tpu.pipeline_mode<synchronous>, transform_indices = @transform_13, window_bounds = array<i64: 1, 128>}, {pipeline_mode = #tpu.pipeline_mode<synchronous>, transform_indices = @transform_14, window_bounds = array<i64: 64, 64>}, {pipeline_mode = #tpu.pipeline_mode<synchronous>, transform_indices = @transform_15, window_bounds = array<i64: 1, 64>}, {pipeline_mode = #tpu.pipeline_mode<synchronous>, transform_indices = @transform_16, window_bounds = array<i64: 1, 64>}, {pipeline_mode = #tpu.pipeline_mode<synchronous>, transform_indices = @transform_17, window_bounds = array<i64: 1, 64>}, {pipeline_mode = #tpu.pipeline_mode<synchronous>, transform_indices = @transform_18, window_bounds = array<i64: 64, 128>}, {pipeline_mode = #tpu.pipeline_mode<synchronous>, transform_indices = @transform_19, window_bounds = array<i64: 1, 128>}, {pipeline_mode = #tpu.pipeline_mode<synchronous>, transform_indices = @transform_20, window_bounds = array<i64: 128, 64>}, {pipeline_mode = #tpu.pipeline_mode<synchronous>, transform_indices = @transform_21, window_bounds = array<i64: 1, 64>}, {pipeline_mode = #tpu.pipeline_mode<synchronous>, transform_indices = @transform_22, window_bounds = array<i64: 1, 64>}, {pipeline_mode = #tpu.pipeline_mode<synchronous>, transform_indices = @transform_23, window_bounds = array<i64: 1, 64>}, {transform_indices = @transform_24, window_bounds = array<i64: 1, 8, 64>}]} {
    %c0 = arith.constant 0 : index
    %c0_0 = arith.constant 0 : index
    %c0_1 = arith.constant 0 : index
    %0 = vector.load %arg1[%c0, %c0_0, %c0_1] : memref<1x8x64xf32, #tpu.memory_space<vmem>>, vector<1x8x64xf32>
    %1 = vector.shape_cast %0 : vector<1x8x64xf32> to vector<8x64xf32>
    %c0_2 = arith.constant 0 : index
    %c0_3 = arith.constant 0 : index
    %c0_4 = arith.constant 0 : index
    %2 = vector.load %arg2[%c0_2, %c0_3, %c0_4] : memref<1x8x64xf32, #tpu.memory_space<vmem>>, vector<1x8x64xf32>
    %3 = vector.shape_cast %2 : vector<1x8x64xf32> to vector<8x64xf32>
    %c0_5 = arith.constant 0 : index
    %c0_6 = arith.constant 0 : index
    %4 = vector.load %arg5[%c0_5, %c0_6] : memref<64x192xf32, #tpu.memory_space<vmem>>, vector<64x192xf32>
    %5 = arith.truncf %1 : vector<8x64xf32> to vector<8x64xbf16>
    %6 = arith.truncf %4 : vector<64x192xf32> to vector<64x192xbf16>
    %cst = arith.constant dense<0.000000e+00> : vector<8x192xf32>
    %7 = tpu.matmul %5, %6, %cst {dimension_numbers = #tpu.dot_dimension_numbers<[1], [0], [0], [1], [0, 0, 1, 1], [], []>} : vector<8x64xbf16>, vector<64x192xbf16>, vector<8x192xf32> -> vector<8x192xf32>
    %c0_7 = arith.constant 0 : index
    %c0_8 = arith.constant 0 : index
    %8 = vector.load %arg6[%c0_7, %c0_8] : memref<1x192xf32, #tpu.memory_space<vmem>>, vector<1x192xf32>
    %9 = vector.broadcast %8 : vector<1x192xf32> to vector<8x192xf32>
    %10 = arith.addf %7, %9 : vector<8x192xf32>
    %11 = vector.extract_strided_slice %10 {offsets = [0, 0], sizes = [8, 64], strides = [1, 1]} : vector<8x192xf32> to vector<8x64xf32>
    %12 = vector.extract_strided_slice %10 {offsets = [0, 64], sizes = [8, 64], strides = [1, 1]} : vector<8x192xf32> to vector<8x64xf32>
    %13 = vector.extract_strided_slice %10 {offsets = [0, 128], sizes = [8, 64], strides = [1, 1]} : vector<8x192xf32> to vector<8x64xf32>
    %c0_9 = arith.constant 0 : index
    %c0_10 = arith.constant 0 : index
    %c0_11 = arith.constant 0 : index
    %14 = vector.load %arg3[%c0_9, %c0_10, %c0_11] : memref<1x8x8xf32, #tpu.memory_space<vmem>>, vector<1x8x8xf32>
    %15 = vector.shape_cast %14 : vector<1x8x8xf32> to vector<8x8xf32>
    %16 = vector.extract_strided_slice %11 {offsets = [0, 0], sizes = [8, 16], strides = [1, 1]} : vector<8x64xf32> to vector<8x16xf32>
    %17 = arith.truncf %16 : vector<8x16xf32> to vector<8x16xbf16>
    %18 = vector.extract_strided_slice %12 {offsets = [0, 0], sizes = [8, 16], strides = [1, 1]} : vector<8x64xf32> to vector<8x16xf32>
    %19 = arith.truncf %18 : vector<8x16xf32> to vector<8x16xbf16>
    %cst_12 = arith.constant dense<0.000000e+00> : vector<8x8xf32>
    %20 = tpu.matmul %17, %19, %cst_12 {dimension_numbers = #tpu.dot_dimension_numbers<[1], [1], [0], [0], [0, 0, 1, 0], [], []>} : vector<8x16xbf16>, vector<8x16xbf16>, vector<8x8xf32> -> vector<8x8xf32>
    %21 = arith.addf %20, %15 : vector<8x8xf32>
    %cst_13 = arith.constant dense<0xFF800000> : vector<8xf32>
    %22 = vector.multi_reduction <maximumf>, %21, %cst_13 [1] : vector<8x8xf32> to vector<8xf32>
    %23 = vector.shape_cast %22 : vector<8xf32> to vector<8x1xf32>
    %24 = vector.broadcast %23 : vector<8x1xf32> to vector<8x8xf32>
    %25 = arith.subf %21, %24 : vector<8x8xf32>
    %26 = math.exp %25 : vector<8x8xf32>
    %cst_14 = arith.constant dense<0.000000e+00> : vector<8xf32>
    %27 = vector.multi_reduction <add>, %26, %cst_14 [1] : vector<8x8xf32> to vector<8xf32>
    %28 = vector.shape_cast %27 : vector<8xf32> to vector<8x1xf32>
    %29 = tpu.reciprocal %28 {approx = true} : vector<8x1xf32> -> vector<8x1xf32>
    %30 = vector.broadcast %29 : vector<8x1xf32> to vector<8x8xf32>
    %31 = arith.mulf %26, %30 : vector<8x8xf32>
    %32 = vector.extract_strided_slice %13 {offsets = [0, 0], sizes = [8, 16], strides = [1, 1]} : vector<8x64xf32> to vector<8x16xf32>
    %33 = arith.truncf %31 : vector<8x8xf32> to vector<8x8xbf16>
    %34 = arith.truncf %32 : vector<8x16xf32> to vector<8x16xbf16>
    %cst_15 = arith.constant dense<0.000000e+00> : vector<8x16xf32>
    %35 = tpu.matmul %33, %34, %cst_15 {dimension_numbers = #tpu.dot_dimension_numbers<[1], [0], [0], [1], [0, 0, 1, 1], [], []>} : vector<8x8xbf16>, vector<8x16xbf16>, vector<8x16xf32> -> vector<8x16xf32>
    %36 = vector.extract_strided_slice %11 {offsets = [0, 16], sizes = [8, 16], strides = [1, 1]} : vector<8x64xf32> to vector<8x16xf32>
    %37 = arith.truncf %36 : vector<8x16xf32> to vector<8x16xbf16>
    %38 = vector.extract_strided_slice %12 {offsets = [0, 16], sizes = [8, 16], strides = [1, 1]} : vector<8x64xf32> to vector<8x16xf32>
    %39 = arith.truncf %38 : vector<8x16xf32> to vector<8x16xbf16>
    %cst_16 = arith.constant dense<0.000000e+00> : vector<8x8xf32>
    %40 = tpu.matmul %37, %39, %cst_16 {dimension_numbers = #tpu.dot_dimension_numbers<[1], [1], [0], [0], [0, 0, 1, 0], [], []>} : vector<8x16xbf16>, vector<8x16xbf16>, vector<8x8xf32> -> vector<8x8xf32>
    %41 = arith.addf %40, %15 : vector<8x8xf32>
    %cst_17 = arith.constant dense<0xFF800000> : vector<8xf32>
    %42 = vector.multi_reduction <maximumf>, %41, %cst_17 [1] : vector<8x8xf32> to vector<8xf32>
    %43 = vector.shape_cast %42 : vector<8xf32> to vector<8x1xf32>
    %44 = vector.broadcast %43 : vector<8x1xf32> to vector<8x8xf32>
    %45 = arith.subf %41, %44 : vector<8x8xf32>
    %46 = math.exp %45 : vector<8x8xf32>
    %cst_18 = arith.constant dense<0.000000e+00> : vector<8xf32>
    %47 = vector.multi_reduction <add>, %46, %cst_18 [1] : vector<8x8xf32> to vector<8xf32>
    %48 = vector.shape_cast %47 : vector<8xf32> to vector<8x1xf32>
    %49 = tpu.reciprocal %48 {approx = true} : vector<8x1xf32> -> vector<8x1xf32>
    %50 = vector.broadcast %49 : vector<8x1xf32> to vector<8x8xf32>
    %51 = arith.mulf %46, %50 : vector<8x8xf32>
    %52 = vector.extract_strided_slice %13 {offsets = [0, 16], sizes = [8, 16], strides = [1, 1]} : vector<8x64xf32> to vector<8x16xf32>
    %53 = arith.truncf %51 : vector<8x8xf32> to vector<8x8xbf16>
    %54 = arith.truncf %52 : vector<8x16xf32> to vector<8x16xbf16>
    %cst_19 = arith.constant dense<0.000000e+00> : vector<8x16xf32>
    %55 = tpu.matmul %53, %54, %cst_19 {dimension_numbers = #tpu.dot_dimension_numbers<[1], [0], [0], [1], [0, 0, 1, 1], [], []>} : vector<8x8xbf16>, vector<8x16xbf16>, vector<8x16xf32> -> vector<8x16xf32>
    %56 = vector.extract_strided_slice %11 {offsets = [0, 32], sizes = [8, 16], strides = [1, 1]} : vector<8x64xf32> to vector<8x16xf32>
    %57 = arith.truncf %56 : vector<8x16xf32> to vector<8x16xbf16>
    %58 = vector.extract_strided_slice %12 {offsets = [0, 32], sizes = [8, 16], strides = [1, 1]} : vector<8x64xf32> to vector<8x16xf32>
    %59 = arith.truncf %58 : vector<8x16xf32> to vector<8x16xbf16>
    %cst_20 = arith.constant dense<0.000000e+00> : vector<8x8xf32>
    %60 = tpu.matmul %57, %59, %cst_20 {dimension_numbers = #tpu.dot_dimension_numbers<[1], [1], [0], [0], [0, 0, 1, 0], [], []>} : vector<8x16xbf16>, vector<8x16xbf16>, vector<8x8xf32> -> vector<8x8xf32>
    %61 = arith.addf %60, %15 : vector<8x8xf32>
    %cst_21 = arith.constant dense<0xFF800000> : vector<8xf32>
    %62 = vector.multi_reduction <maximumf>, %61, %cst_21 [1] : vector<8x8xf32> to vector<8xf32>
    %63 = vector.shape_cast %62 : vector<8xf32> to vector<8x1xf32>
    %64 = vector.broadcast %63 : vector<8x1xf32> to vector<8x8xf32>
    %65 = arith.subf %61, %64 : vector<8x8xf32>
    %66 = math.exp %65 : vector<8x8xf32>
    %cst_22 = arith.constant dense<0.000000e+00> : vector<8xf32>
    %67 = vector.multi_reduction <add>, %66, %cst_22 [1] : vector<8x8xf32> to vector<8xf32>
    %68 = vector.shape_cast %67 : vector<8xf32> to vector<8x1xf32>
    %69 = tpu.reciprocal %68 {approx = true} : vector<8x1xf32> -> vector<8x1xf32>
    %70 = vector.broadcast %69 : vector<8x1xf32> to vector<8x8xf32>
    %71 = arith.mulf %66, %70 : vector<8x8xf32>
    %72 = vector.extract_strided_slice %13 {offsets = [0, 32], sizes = [8, 16], strides = [1, 1]} : vector<8x64xf32> to vector<8x16xf32>
    %73 = arith.truncf %71 : vector<8x8xf32> to vector<8x8xbf16>
    %74 = arith.truncf %72 : vector<8x16xf32> to vector<8x16xbf16>
    %cst_23 = arith.constant dense<0.000000e+00> : vector<8x16xf32>
    %75 = tpu.matmul %73, %74, %cst_23 {dimension_numbers = #tpu.dot_dimension_numbers<[1], [0], [0], [1], [0, 0, 1, 1], [], []>} : vector<8x8xbf16>, vector<8x16xbf16>, vector<8x16xf32> -> vector<8x16xf32>
    %76 = vector.extract_strided_slice %11 {offsets = [0, 48], sizes = [8, 16], strides = [1, 1]} : vector<8x64xf32> to vector<8x16xf32>
    %77 = arith.truncf %76 : vector<8x16xf32> to vector<8x16xbf16>
    %78 = vector.extract_strided_slice %12 {offsets = [0, 48], sizes = [8, 16], strides = [1, 1]} : vector<8x64xf32> to vector<8x16xf32>
    %79 = arith.truncf %78 : vector<8x16xf32> to vector<8x16xbf16>
    %cst_24 = arith.constant dense<0.000000e+00> : vector<8x8xf32>
    %80 = tpu.matmul %77, %79, %cst_24 {dimension_numbers = #tpu.dot_dimension_numbers<[1], [1], [0], [0], [0, 0, 1, 0], [], []>} : vector<8x16xbf16>, vector<8x16xbf16>, vector<8x8xf32> -> vector<8x8xf32>
    %81 = arith.addf %80, %15 : vector<8x8xf32>
    %cst_25 = arith.constant dense<0xFF800000> : vector<8xf32>
    %82 = vector.multi_reduction <maximumf>, %81, %cst_25 [1] : vector<8x8xf32> to vector<8xf32>
    %83 = vector.shape_cast %82 : vector<8xf32> to vector<8x1xf32>
    %84 = vector.broadcast %83 : vector<8x1xf32> to vector<8x8xf32>
    %85 = arith.subf %81, %84 : vector<8x8xf32>
    %86 = math.exp %85 : vector<8x8xf32>
    %cst_26 = arith.constant dense<0.000000e+00> : vector<8xf32>
    %87 = vector.multi_reduction <add>, %86, %cst_26 [1] : vector<8x8xf32> to vector<8xf32>
    %88 = vector.shape_cast %87 : vector<8xf32> to vector<8x1xf32>
    %89 = tpu.reciprocal %88 {approx = true} : vector<8x1xf32> -> vector<8x1xf32>
    %90 = vector.broadcast %89 : vector<8x1xf32> to vector<8x8xf32>
    %91 = arith.mulf %86, %90 : vector<8x8xf32>
    %92 = vector.extract_strided_slice %13 {offsets = [0, 48], sizes = [8, 16], strides = [1, 1]} : vector<8x64xf32> to vector<8x16xf32>
    %93 = arith.truncf %91 : vector<8x8xf32> to vector<8x8xbf16>
    %94 = arith.truncf %92 : vector<8x16xf32> to vector<8x16xbf16>
    %cst_27 = arith.constant dense<0.000000e+00> : vector<8x16xf32>
    %95 = tpu.matmul %93, %94, %cst_27 {dimension_numbers = #tpu.dot_dimension_numbers<[1], [0], [0], [1], [0, 0, 1, 1], [], []>} : vector<8x8xbf16>, vector<8x16xbf16>, vector<8x16xf32> -> vector<8x16xf32>
    %96 = tpu.concatenate %35, %55, %75, %95 in 1 : vector<8x16xf32>, vector<8x16xf32>, vector<8x16xf32>, vector<8x16xf32> -> vector<8x64xf32>
    %c0_28 = arith.constant 0 : index
    %c0_29 = arith.constant 0 : index
    %97 = vector.load %arg7[%c0_28, %c0_29] : memref<64x64xf32, #tpu.memory_space<vmem>>, vector<64x64xf32>
    %98 = arith.truncf %96 : vector<8x64xf32> to vector<8x64xbf16>
    %99 = arith.truncf %97 : vector<64x64xf32> to vector<64x64xbf16>
    %cst_30 = arith.constant dense<0.000000e+00> : vector<8x64xf32>
    %100 = tpu.matmul %98, %99, %cst_30 {dimension_numbers = #tpu.dot_dimension_numbers<[1], [0], [0], [1], [0, 0, 1, 1], [], []>} : vector<8x64xbf16>, vector<64x64xbf16>, vector<8x64xf32> -> vector<8x64xf32>
    %c0_31 = arith.constant 0 : index
    %c0_32 = arith.constant 0 : index
    %101 = vector.load %arg8[%c0_31, %c0_32] : memref<1x64xf32, #tpu.memory_space<vmem>>, vector<1x64xf32>
    %102 = vector.broadcast %101 : vector<1x64xf32> to vector<8x64xf32>
    %103 = arith.addf %100, %102 : vector<8x64xf32>
    %104 = arith.addf %103, %1 : vector<8x64xf32>
    %c0_33 = arith.constant 0 : index
    %c0_34 = arith.constant 0 : index
    %105 = vector.load %arg9[%c0_33, %c0_34] : memref<1x64xf32, #tpu.memory_space<vmem>>, vector<1x64xf32>
    %c0_35 = arith.constant 0 : index
    %c0_36 = arith.constant 0 : index
    %106 = vector.load %arg10[%c0_35, %c0_36] : memref<1x64xf32, #tpu.memory_space<vmem>>, vector<1x64xf32>
    %cst_37 = arith.constant dense<0.000000e+00> : vector<8xf32>
    %107 = vector.multi_reduction <add>, %104, %cst_37 [1] : vector<8x64xf32> to vector<8xf32>
    %108 = vector.shape_cast %107 : vector<8xf32> to vector<8x1xf32>
    %cst_38 = arith.constant 6.400000e+01 : f32
    %109 = vector.broadcast %cst_38 : f32 to vector<8x1xf32>
    %110 = arith.divf %108, %109 : vector<8x1xf32>
    %111 = vector.broadcast %110 : vector<8x1xf32> to vector<8x64xf32>
    %112 = arith.subf %104, %111 : vector<8x64xf32>
    %113 = arith.mulf %112, %112 : vector<8x64xf32>
    %cst_39 = arith.constant dense<0.000000e+00> : vector<8xf32>
    %114 = vector.multi_reduction <add>, %113, %cst_39 [1] : vector<8x64xf32> to vector<8xf32>
    %115 = vector.shape_cast %114 : vector<8xf32> to vector<8x1xf32>
    %cst_40 = arith.constant 6.400000e+01 : f32
    %116 = vector.broadcast %cst_40 : f32 to vector<8x1xf32>
    %117 = arith.divf %115, %116 : vector<8x1xf32>
    %118 = vector.broadcast %110 : vector<8x1xf32> to vector<8x64xf32>
    %119 = arith.subf %104, %118 : vector<8x64xf32>
    %cst_41 = arith.constant 9.99999996E-13 : f32
    %120 = vector.broadcast %cst_41 : f32 to vector<8x1xf32>
    %121 = arith.addf %117, %120 : vector<8x1xf32>
    %122 = math.rsqrt %121 : vector<8x1xf32>
    %123 = vector.broadcast %122 : vector<8x1xf32> to vector<8x64xf32>
    %124 = arith.mulf %119, %123 : vector<8x64xf32>
    %125 = vector.broadcast %105 : vector<1x64xf32> to vector<8x64xf32>
    %126 = arith.mulf %124, %125 : vector<8x64xf32>
    %127 = vector.broadcast %106 : vector<1x64xf32> to vector<8x64xf32>
    %128 = arith.addf %126, %127 : vector<8x64xf32>
    %c0_42 = arith.constant 0 : index
    %c0_43 = arith.constant 0 : index
    %129 = vector.load %arg11[%c0_42, %c0_43] : memref<64x64xf32, #tpu.memory_space<vmem>>, vector<64x64xf32>
    %130 = arith.truncf %128 : vector<8x64xf32> to vector<8x64xbf16>
    %131 = arith.truncf %129 : vector<64x64xf32> to vector<64x64xbf16>
    %cst_44 = arith.constant dense<0.000000e+00> : vector<8x64xf32>
    %132 = tpu.matmul %130, %131, %cst_44 {dimension_numbers = #tpu.dot_dimension_numbers<[1], [0], [0], [1], [0, 0, 1, 1], [], []>} : vector<8x64xbf16>, vector<64x64xbf16>, vector<8x64xf32> -> vector<8x64xf32>
    %c0_45 = arith.constant 0 : index
    %c0_46 = arith.constant 0 : index
    %133 = vector.load %arg12[%c0_45, %c0_46] : memref<1x64xf32, #tpu.memory_space<vmem>>, vector<1x64xf32>
    %134 = vector.broadcast %133 : vector<1x64xf32> to vector<8x64xf32>
    %135 = arith.addf %132, %134 : vector<8x64xf32>
    %c0_47 = arith.constant 0 : index
    %c0_48 = arith.constant 0 : index
    %136 = vector.load %arg13[%c0_47, %c0_48] : memref<64x128xf32, #tpu.memory_space<vmem>>, vector<64x128xf32>
    %137 = arith.truncf %3 : vector<8x64xf32> to vector<8x64xbf16>
    %138 = arith.truncf %136 : vector<64x128xf32> to vector<64x128xbf16>
    %cst_49 = arith.constant dense<0.000000e+00> : vector<8x128xf32>
    %139 = tpu.matmul %137, %138, %cst_49 {dimension_numbers = #tpu.dot_dimension_numbers<[1], [0], [0], [1], [0, 0, 1, 1], [], []>} : vector<8x64xbf16>, vector<64x128xbf16>, vector<8x128xf32> -> vector<8x128xf32>
    %c0_50 = arith.constant 0 : index
    %c0_51 = arith.constant 0 : index
    %140 = vector.load %arg14[%c0_50, %c0_51] : memref<1x128xf32, #tpu.memory_space<vmem>>, vector<1x128xf32>
    %141 = vector.broadcast %140 : vector<1x128xf32> to vector<8x128xf32>
    %142 = arith.addf %139, %141 : vector<8x128xf32>
    %143 = vector.extract_strided_slice %142 {offsets = [0, 0], sizes = [8, 64], strides = [1, 1]} : vector<8x128xf32> to vector<8x64xf32>
    %144 = vector.extract_strided_slice %142 {offsets = [0, 64], sizes = [8, 64], strides = [1, 1]} : vector<8x128xf32> to vector<8x64xf32>
    %c0_52 = arith.constant 0 : index
    %c0_53 = arith.constant 0 : index
    %c0_54 = arith.constant 0 : index
    %145 = vector.load %arg4[%c0_52, %c0_53, %c0_54] : memref<1x1x8xf32, #tpu.memory_space<vmem>>, vector<1x1x8xf32>
    %146 = vector.shape_cast %145 : vector<1x1x8xf32> to vector<1x8xf32>
    %147 = vector.extract_strided_slice %135 {offsets = [0, 0], sizes = [8, 16], strides = [1, 1]} : vector<8x64xf32> to vector<8x16xf32>
    %148 = arith.truncf %147 : vector<8x16xf32> to vector<8x16xbf16>
    %149 = vector.extract_strided_slice %143 {offsets = [0, 0], sizes = [8, 16], strides = [1, 1]} : vector<8x64xf32> to vector<8x16xf32>
    %150 = arith.truncf %149 : vector<8x16xf32> to vector<8x16xbf16>
    %cst_55 = arith.constant dense<0.000000e+00> : vector<8x8xf32>
    %151 = tpu.matmul %148, %150, %cst_55 {dimension_numbers = #tpu.dot_dimension_numbers<[1], [1], [0], [0], [0, 0, 1, 0], [], []>} : vector<8x16xbf16>, vector<8x16xbf16>, vector<8x8xf32> -> vector<8x8xf32>
    %152 = vector.broadcast %146 : vector<1x8xf32> to vector<8x8xf32>
    %153 = arith.addf %151, %152 : vector<8x8xf32>
    %cst_56 = arith.constant dense<0xFF800000> : vector<8xf32>
    %154 = vector.multi_reduction <maximumf>, %153, %cst_56 [1] : vector<8x8xf32> to vector<8xf32>
    %155 = vector.shape_cast %154 : vector<8xf32> to vector<8x1xf32>
    %156 = vector.broadcast %155 : vector<8x1xf32> to vector<8x8xf32>
    %157 = arith.subf %153, %156 : vector<8x8xf32>
    %158 = math.exp %157 : vector<8x8xf32>
    %cst_57 = arith.constant dense<0.000000e+00> : vector<8xf32>
    %159 = vector.multi_reduction <add>, %158, %cst_57 [1] : vector<8x8xf32> to vector<8xf32>
    %160 = vector.shape_cast %159 : vector<8xf32> to vector<8x1xf32>
    %161 = tpu.reciprocal %160 {approx = true} : vector<8x1xf32> -> vector<8x1xf32>
    %162 = vector.broadcast %161 : vector<8x1xf32> to vector<8x8xf32>
    %163 = arith.mulf %158, %162 : vector<8x8xf32>
    %164 = vector.extract_strided_slice %144 {offsets = [0, 0], sizes = [8, 16], strides = [1, 1]} : vector<8x64xf32> to vector<8x16xf32>
    %165 = arith.truncf %163 : vector<8x8xf32> to vector<8x8xbf16>
    %166 = arith.truncf %164 : vector<8x16xf32> to vector<8x16xbf16>
    %cst_58 = arith.constant dense<0.000000e+00> : vector<8x16xf32>
    %167 = tpu.matmul %165, %166, %cst_58 {dimension_numbers = #tpu.dot_dimension_numbers<[1], [0], [0], [1], [0, 0, 1, 1], [], []>} : vector<8x8xbf16>, vector<8x16xbf16>, vector<8x16xf32> -> vector<8x16xf32>
    %168 = vector.extract_strided_slice %135 {offsets = [0, 16], sizes = [8, 16], strides = [1, 1]} : vector<8x64xf32> to vector<8x16xf32>
    %169 = arith.truncf %168 : vector<8x16xf32> to vector<8x16xbf16>
    %170 = vector.extract_strided_slice %143 {offsets = [0, 16], sizes = [8, 16], strides = [1, 1]} : vector<8x64xf32> to vector<8x16xf32>
    %171 = arith.truncf %170 : vector<8x16xf32> to vector<8x16xbf16>
    %cst_59 = arith.constant dense<0.000000e+00> : vector<8x8xf32>
    %172 = tpu.matmul %169, %171, %cst_59 {dimension_numbers = #tpu.dot_dimension_numbers<[1], [1], [0], [0], [0, 0, 1, 0], [], []>} : vector<8x16xbf16>, vector<8x16xbf16>, vector<8x8xf32> -> vector<8x8xf32>
    %173 = vector.broadcast %146 : vector<1x8xf32> to vector<8x8xf32>
    %174 = arith.addf %172, %173 : vector<8x8xf32>
    %cst_60 = arith.constant dense<0xFF800000> : vector<8xf32>
    %175 = vector.multi_reduction <maximumf>, %174, %cst_60 [1] : vector<8x8xf32> to vector<8xf32>
    %176 = vector.shape_cast %175 : vector<8xf32> to vector<8x1xf32>
    %177 = vector.broadcast %176 : vector<8x1xf32> to vector<8x8xf32>
    %178 = arith.subf %174, %177 : vector<8x8xf32>
    %179 = math.exp %178 : vector<8x8xf32>
    %cst_61 = arith.constant dense<0.000000e+00> : vector<8xf32>
    %180 = vector.multi_reduction <add>, %179, %cst_61 [1] : vector<8x8xf32> to vector<8xf32>
    %181 = vector.shape_cast %180 : vector<8xf32> to vector<8x1xf32>
    %182 = tpu.reciprocal %181 {approx = true} : vector<8x1xf32> -> vector<8x1xf32>
    %183 = vector.broadcast %182 : vector<8x1xf32> to vector<8x8xf32>
    %184 = arith.mulf %179, %183 : vector<8x8xf32>
    %185 = vector.extract_strided_slice %144 {offsets = [0, 16], sizes = [8, 16], strides = [1, 1]} : vector<8x64xf32> to vector<8x16xf32>
    %186 = arith.truncf %184 : vector<8x8xf32> to vector<8x8xbf16>
    %187 = arith.truncf %185 : vector<8x16xf32> to vector<8x16xbf16>
    %cst_62 = arith.constant dense<0.000000e+00> : vector<8x16xf32>
    %188 = tpu.matmul %186, %187, %cst_62 {dimension_numbers = #tpu.dot_dimension_numbers<[1], [0], [0], [1], [0, 0, 1, 1], [], []>} : vector<8x8xbf16>, vector<8x16xbf16>, vector<8x16xf32> -> vector<8x16xf32>
    %189 = vector.extract_strided_slice %135 {offsets = [0, 32], sizes = [8, 16], strides = [1, 1]} : vector<8x64xf32> to vector<8x16xf32>
    %190 = arith.truncf %189 : vector<8x16xf32> to vector<8x16xbf16>
    %191 = vector.extract_strided_slice %143 {offsets = [0, 32], sizes = [8, 16], strides = [1, 1]} : vector<8x64xf32> to vector<8x16xf32>
    %192 = arith.truncf %191 : vector<8x16xf32> to vector<8x16xbf16>
    %cst_63 = arith.constant dense<0.000000e+00> : vector<8x8xf32>
    %193 = tpu.matmul %190, %192, %cst_63 {dimension_numbers = #tpu.dot_dimension_numbers<[1], [1], [0], [0], [0, 0, 1, 0], [], []>} : vector<8x16xbf16>, vector<8x16xbf16>, vector<8x8xf32> -> vector<8x8xf32>
    %194 = vector.broadcast %146 : vector<1x8xf32> to vector<8x8xf32>
    %195 = arith.addf %193, %194 : vector<8x8xf32>
    %cst_64 = arith.constant dense<0xFF800000> : vector<8xf32>
    %196 = vector.multi_reduction <maximumf>, %195, %cst_64 [1] : vector<8x8xf32> to vector<8xf32>
    %197 = vector.shape_cast %196 : vector<8xf32> to vector<8x1xf32>
    %198 = vector.broadcast %197 : vector<8x1xf32> to vector<8x8xf32>
    %199 = arith.subf %195, %198 : vector<8x8xf32>
    %200 = math.exp %199 : vector<8x8xf32>
    %cst_65 = arith.constant dense<0.000000e+00> : vector<8xf32>
    %201 = vector.multi_reduction <add>, %200, %cst_65 [1] : vector<8x8xf32> to vector<8xf32>
    %202 = vector.shape_cast %201 : vector<8xf32> to vector<8x1xf32>
    %203 = tpu.reciprocal %202 {approx = true} : vector<8x1xf32> -> vector<8x1xf32>
    %204 = vector.broadcast %203 : vector<8x1xf32> to vector<8x8xf32>
    %205 = arith.mulf %200, %204 : vector<8x8xf32>
    %206 = vector.extract_strided_slice %144 {offsets = [0, 32], sizes = [8, 16], strides = [1, 1]} : vector<8x64xf32> to vector<8x16xf32>
    %207 = arith.truncf %205 : vector<8x8xf32> to vector<8x8xbf16>
    %208 = arith.truncf %206 : vector<8x16xf32> to vector<8x16xbf16>
    %cst_66 = arith.constant dense<0.000000e+00> : vector<8x16xf32>
    %209 = tpu.matmul %207, %208, %cst_66 {dimension_numbers = #tpu.dot_dimension_numbers<[1], [0], [0], [1], [0, 0, 1, 1], [], []>} : vector<8x8xbf16>, vector<8x16xbf16>, vector<8x16xf32> -> vector<8x16xf32>
    %210 = vector.extract_strided_slice %135 {offsets = [0, 48], sizes = [8, 16], strides = [1, 1]} : vector<8x64xf32> to vector<8x16xf32>
    %211 = arith.truncf %210 : vector<8x16xf32> to vector<8x16xbf16>
    %212 = vector.extract_strided_slice %143 {offsets = [0, 48], sizes = [8, 16], strides = [1, 1]} : vector<8x64xf32> to vector<8x16xf32>
    %213 = arith.truncf %212 : vector<8x16xf32> to vector<8x16xbf16>
    %cst_67 = arith.constant dense<0.000000e+00> : vector<8x8xf32>
    %214 = tpu.matmul %211, %213, %cst_67 {dimension_numbers = #tpu.dot_dimension_numbers<[1], [1], [0], [0], [0, 0, 1, 0], [], []>} : vector<8x16xbf16>, vector<8x16xbf16>, vector<8x8xf32> -> vector<8x8xf32>
    %215 = vector.broadcast %146 : vector<1x8xf32> to vector<8x8xf32>
    %216 = arith.addf %214, %215 : vector<8x8xf32>
    %cst_68 = arith.constant dense<0xFF800000> : vector<8xf32>
    %217 = vector.multi_reduction <maximumf>, %216, %cst_68 [1] : vector<8x8xf32> to vector<8xf32>
    %218 = vector.shape_cast %217 : vector<8xf32> to vector<8x1xf32>
    %219 = vector.broadcast %218 : vector<8x1xf32> to vector<8x8xf32>
    %220 = arith.subf %216, %219 : vector<8x8xf32>
    %221 = math.exp %220 : vector<8x8xf32>
    %cst_69 = arith.constant dense<0.000000e+00> : vector<8xf32>
    %222 = vector.multi_reduction <add>, %221, %cst_69 [1] : vector<8x8xf32> to vector<8xf32>
    %223 = vector.shape_cast %222 : vector<8xf32> to vector<8x1xf32>
    %224 = tpu.reciprocal %223 {approx = true} : vector<8x1xf32> -> vector<8x1xf32>
    %225 = vector.broadcast %224 : vector<8x1xf32> to vector<8x8xf32>
    %226 = arith.mulf %221, %225 : vector<8x8xf32>
    %227 = vector.extract_strided_slice %144 {offsets = [0, 48], sizes = [8, 16], strides = [1, 1]} : vector<8x64xf32> to vector<8x16xf32>
    %228 = arith.truncf %226 : vector<8x8xf32> to vector<8x8xbf16>
    %229 = arith.truncf %227 : vector<8x16xf32> to vector<8x16xbf16>
    %cst_70 = arith.constant dense<0.000000e+00> : vector<8x16xf32>
    %230 = tpu.matmul %228, %229, %cst_70 {dimension_numbers = #tpu.dot_dimension_numbers<[1], [0], [0], [1], [0, 0, 1, 1], [], []>} : vector<8x8xbf16>, vector<8x16xbf16>, vector<8x16xf32> -> vector<8x16xf32>
    %231 = tpu.concatenate %167, %188, %209, %230 in 1 : vector<8x16xf32>, vector<8x16xf32>, vector<8x16xf32>, vector<8x16xf32> -> vector<8x64xf32>
    %c0_71 = arith.constant 0 : index
    %c0_72 = arith.constant 0 : index
    %232 = vector.load %arg15[%c0_71, %c0_72] : memref<64x64xf32, #tpu.memory_space<vmem>>, vector<64x64xf32>
    %233 = arith.truncf %231 : vector<8x64xf32> to vector<8x64xbf16>
    %234 = arith.truncf %232 : vector<64x64xf32> to vector<64x64xbf16>
    %cst_73 = arith.constant dense<0.000000e+00> : vector<8x64xf32>
    %235 = tpu.matmul %233, %234, %cst_73 {dimension_numbers = #tpu.dot_dimension_numbers<[1], [0], [0], [1], [0, 0, 1, 1], [], []>} : vector<8x64xbf16>, vector<64x64xbf16>, vector<8x64xf32> -> vector<8x64xf32>
    %c0_74 = arith.constant 0 : index
    %c0_75 = arith.constant 0 : index
    %236 = vector.load %arg16[%c0_74, %c0_75] : memref<1x64xf32, #tpu.memory_space<vmem>>, vector<1x64xf32>
    %237 = vector.broadcast %236 : vector<1x64xf32> to vector<8x64xf32>
    %238 = arith.addf %235, %237 : vector<8x64xf32>
    %239 = arith.addf %238, %128 : vector<8x64xf32>
    %c0_76 = arith.constant 0 : index
    %c0_77 = arith.constant 0 : index
    %240 = vector.load %arg17[%c0_76, %c0_77] : memref<1x64xf32, #tpu.memory_space<vmem>>, vector<1x64xf32>
    %c0_78 = arith.constant 0 : index
    %c0_79 = arith.constant 0 : index
    %241 = vector.load %arg18[%c0_78, %c0_79] : memref<1x64xf32, #tpu.memory_space<vmem>>, vector<1x64xf32>
    %cst_80 = arith.constant dense<0.000000e+00> : vector<8xf32>
    %242 = vector.multi_reduction <add>, %239, %cst_80 [1] : vector<8x64xf32> to vector<8xf32>
    %243 = vector.shape_cast %242 : vector<8xf32> to vector<8x1xf32>
    %cst_81 = arith.constant 6.400000e+01 : f32
    %244 = vector.broadcast %cst_81 : f32 to vector<8x1xf32>
    %245 = arith.divf %243, %244 : vector<8x1xf32>
    %246 = vector.broadcast %245 : vector<8x1xf32> to vector<8x64xf32>
    %247 = arith.subf %239, %246 : vector<8x64xf32>
    %248 = arith.mulf %247, %247 : vector<8x64xf32>
    %cst_82 = arith.constant dense<0.000000e+00> : vector<8xf32>
    %249 = vector.multi_reduction <add>, %248, %cst_82 [1] : vector<8x64xf32> to vector<8xf32>
    %250 = vector.shape_cast %249 : vector<8xf32> to vector<8x1xf32>
    %cst_83 = arith.constant 6.400000e+01 : f32
    %251 = vector.broadcast %cst_83 : f32 to vector<8x1xf32>
    %252 = arith.divf %250, %251 : vector<8x1xf32>
    %253 = vector.broadcast %245 : vector<8x1xf32> to vector<8x64xf32>
    %254 = arith.subf %239, %253 : vector<8x64xf32>
    %cst_84 = arith.constant 9.99999996E-13 : f32
    %255 = vector.broadcast %cst_84 : f32 to vector<8x1xf32>
    %256 = arith.addf %252, %255 : vector<8x1xf32>
    %257 = math.rsqrt %256 : vector<8x1xf32>
    %258 = vector.broadcast %257 : vector<8x1xf32> to vector<8x64xf32>
    %259 = arith.mulf %254, %258 : vector<8x64xf32>
    %260 = vector.broadcast %240 : vector<1x64xf32> to vector<8x64xf32>
    %261 = arith.mulf %259, %260 : vector<8x64xf32>
    %262 = vector.broadcast %241 : vector<1x64xf32> to vector<8x64xf32>
    %263 = arith.addf %261, %262 : vector<8x64xf32>
    %c0_85 = arith.constant 0 : index
    %c0_86 = arith.constant 0 : index
    %264 = vector.load %arg19[%c0_85, %c0_86] : memref<64x128xf32, #tpu.memory_space<vmem>>, vector<64x128xf32>
    %265 = arith.truncf %263 : vector<8x64xf32> to vector<8x64xbf16>
    %266 = arith.truncf %264 : vector<64x128xf32> to vector<64x128xbf16>
    %cst_87 = arith.constant dense<0.000000e+00> : vector<8x128xf32>
    %267 = tpu.matmul %265, %266, %cst_87 {dimension_numbers = #tpu.dot_dimension_numbers<[1], [0], [0], [1], [0, 0, 1, 1], [], []>} : vector<8x64xbf16>, vector<64x128xbf16>, vector<8x128xf32> -> vector<8x128xf32>
    %c0_88 = arith.constant 0 : index
    %c0_89 = arith.constant 0 : index
    %268 = vector.load %arg20[%c0_88, %c0_89] : memref<1x128xf32, #tpu.memory_space<vmem>>, vector<1x128xf32>
    %269 = vector.broadcast %268 : vector<1x128xf32> to vector<8x128xf32>
    %270 = arith.addf %267, %269 : vector<8x128xf32>
    %cst_90 = arith.constant 0.000000e+00 : f32
    %271 = vector.broadcast %cst_90 : f32 to vector<8x128xf32>
    %272 = arith.maximumf %270, %271 : vector<8x128xf32>
    %c0_91 = arith.constant 0 : index
    %c0_92 = arith.constant 0 : index
    %273 = vector.load %arg21[%c0_91, %c0_92] : memref<128x64xf32, #tpu.memory_space<vmem>>, vector<128x64xf32>
    %274 = arith.truncf %272 : vector<8x128xf32> to vector<8x128xbf16>
    %275 = arith.truncf %273 : vector<128x64xf32> to vector<128x64xbf16>
    %cst_93 = arith.constant dense<0.000000e+00> : vector<8x64xf32>
    %276 = tpu.matmul %274, %275, %cst_93 {dimension_numbers = #tpu.dot_dimension_numbers<[1], [0], [0], [1], [0, 0, 1, 1], [], []>} : vector<8x128xbf16>, vector<128x64xbf16>, vector<8x64xf32> -> vector<8x64xf32>
    %c0_94 = arith.constant 0 : index
    %c0_95 = arith.constant 0 : index
    %277 = vector.load %arg22[%c0_94, %c0_95] : memref<1x64xf32, #tpu.memory_space<vmem>>, vector<1x64xf32>
    %278 = vector.broadcast %277 : vector<1x64xf32> to vector<8x64xf32>
    %279 = arith.addf %276, %278 : vector<8x64xf32>
    %280 = arith.addf %279, %263 : vector<8x64xf32>
    %c0_96 = arith.constant 0 : index
    %c0_97 = arith.constant 0 : index
    %281 = vector.load %arg23[%c0_96, %c0_97] : memref<1x64xf32, #tpu.memory_space<vmem>>, vector<1x64xf32>
    %c0_98 = arith.constant 0 : index
    %c0_99 = arith.constant 0 : index
    %282 = vector.load %arg24[%c0_98, %c0_99] : memref<1x64xf32, #tpu.memory_space<vmem>>, vector<1x64xf32>
    %cst_100 = arith.constant dense<0.000000e+00> : vector<8xf32>
    %283 = vector.multi_reduction <add>, %280, %cst_100 [1] : vector<8x64xf32> to vector<8xf32>
    %284 = vector.shape_cast %283 : vector<8xf32> to vector<8x1xf32>
    %cst_101 = arith.constant 6.400000e+01 : f32
    %285 = vector.broadcast %cst_101 : f32 to vector<8x1xf32>
    %286 = arith.divf %284, %285 : vector<8x1xf32>
    %287 = vector.broadcast %286 : vector<8x1xf32> to vector<8x64xf32>
    %288 = arith.subf %280, %287 : vector<8x64xf32>
    %289 = arith.mulf %288, %288 : vector<8x64xf32>
    %cst_102 = arith.constant dense<0.000000e+00> : vector<8xf32>
    %290 = vector.multi_reduction <add>, %289, %cst_102 [1] : vector<8x64xf32> to vector<8xf32>
    %291 = vector.shape_cast %290 : vector<8xf32> to vector<8x1xf32>
    %cst_103 = arith.constant 6.400000e+01 : f32
    %292 = vector.broadcast %cst_103 : f32 to vector<8x1xf32>
    %293 = arith.divf %291, %292 : vector<8x1xf32>
    %294 = vector.broadcast %286 : vector<8x1xf32> to vector<8x64xf32>
    %295 = arith.subf %280, %294 : vector<8x64xf32>
    %cst_104 = arith.constant 9.99999996E-13 : f32
    %296 = vector.broadcast %cst_104 : f32 to vector<8x1xf32>
    %297 = arith.addf %293, %296 : vector<8x1xf32>
    %298 = math.rsqrt %297 : vector<8x1xf32>
    %299 = vector.broadcast %298 : vector<8x1xf32> to vector<8x64xf32>
    %300 = arith.mulf %295, %299 : vector<8x64xf32>
    %301 = vector.broadcast %281 : vector<1x64xf32> to vector<8x64xf32>
    %302 = arith.mulf %300, %301 : vector<8x64xf32>
    %303 = vector.broadcast %282 : vector<1x64xf32> to vector<8x64xf32>
    %304 = arith.addf %302, %303 : vector<8x64xf32>
    %c0_105 = arith.constant 0 : index
    %c0_106 = arith.constant 0 : index
    %c0_107 = arith.constant 0 : index
    %305 = vector.load %arg25[%c0_105, %c0_106, %c0_107] : memref<1x8x64xf32, #tpu.memory_space<vmem>>, vector<1x8x64xf32>
    %306 = vector.shape_cast %305 : vector<1x8x64xf32> to vector<8x64xf32>
    %307 = vector.shape_cast %304 : vector<8x64xf32> to vector<1x8x64xf32>
    tpu.vector_store %arg25[%c0_105, %c0_106, %c0_107], %307 {strides = array<i32>} : memref<1x8x64xf32, #tpu.memory_space<vmem>>, vector<1x8x64xf32>,
    return
  }
  func.func @transform_0(%arg0: i32) -> (i32, i32, i32) {
    %c0_i32 = arith.constant 0 : i32
    %c0_i32_0 = arith.constant 0 : i32
    %c0_i32_1 = arith.constant 0 : i32
    return %arg0, %c0_i32, %c0_i32_0 : i32, i32, i32
  }
  func.func @transform_1(%arg0: i32) -> (i32, i32, i32) {
    %c0_i32 = arith.constant 0 : i32
    %c0_i32_0 = arith.constant 0 : i32
    %c0_i32_1 = arith.constant 0 : i32
    return %arg0, %c0_i32, %c0_i32_0 : i32, i32, i32
  }
  func.func @transform_2(%arg0: i32) -> (i32, i32, i32) {
    %c0_i32 = arith.constant 0 : i32
    %c0_i32_0 = arith.constant 0 : i32
    %c0_i32_1 = arith.constant 0 : i32
    return %arg0, %c0_i32, %c0_i32_0 : i32, i32, i32
  }
  func.func @transform_3(%arg0: i32) -> (i32, i32, i32) {
    %c0_i32 = arith.constant 0 : i32
    %c0_i32_0 = arith.constant 0 : i32
    %c0_i32_1 = arith.constant 0 : i32
    return %arg0, %c0_i32, %c0_i32_0 : i32, i32, i32
  }
  func.func @transform_4(%arg0: i32) -> (i32, i32) {
    %c0_i32 = arith.constant 0 : i32
    %c0_i32_0 = arith.constant 0 : i32
    %c0_i32_1 = arith.constant 0 : i32
    return %c0_i32, %c0_i32_0 : i32, i32
  }
  func.func @transform_5(%arg0: i32) -> (i32, i32) {
    %c0_i32 = arith.constant 0 : i32
    %c0_i32_0 = arith.constant 0 : i32
    %c0_i32_1 = arith.constant 0 : i32
    return %c0_i32, %c0_i32_0 : i32, i32
  }
  func.func @transform_6(%arg0: i32) -> (i32, i32) {
    %c0_i32 = arith.constant 0 : i32
    %c0_i32_0 = arith.constant 0 : i32
    %c0_i32_1 = arith.constant 0 : i32
    return %c0_i32, %c0_i32_0 : i32, i32
  }
  func.func @transform_7(%arg0: i32) -> (i32, i32) {
    %c0_i32 = arith.constant 0 : i32
    %c0_i32_0 = arith.constant 0 : i32
    %c0_i32_1 = arith.constant 0 : i32
    return %c0_i32, %c0_i32_0 : i32, i32
  }
  func.func @transform_8(%arg0: i32) -> (i32, i32) {
    %c0_i32 = arith.constant 0 : i32
    %c0_i32_0 = arith.constant 0 : i32
    %c0_i32_1 = arith.constant 0 : i32
    return %c0_i32, %c0_i32_0 : i32, i32
  }
  func.func @transform_9(%arg0: i32) -> (i32, i32) {
    %c0_i32 = arith.constant 0 : i32
    %c0_i32_0 = arith.constant 0 : i32
    %c0_i32_1 = arith.constant 0 : i32
    return %c0_i32, %c0_i32_0 : i32, i32
  }
  func.func @transform_10(%arg0: i32) -> (i32, i32) {
    %c0_i32 = arith.constant 0 : i32
    %c0_i32_0 = arith.constant 0 : i32
    %c0_i32_1 = arith.constant 0 : i32
    return %c0_i32, %c0_i32_0 : i32, i32
  }
  func.func @transform_11(%arg0: i32) -> (i32, i32) {
    %c0_i32 = arith.constant 0 : i32
    %c0_i32_0 = arith.constant 0 : i32
    %c0_i32_1 = arith.constant 0 : i32
    return %c0_i32, %c0_i32_0 : i32, i32
  }
  func.func @transform_12(%arg0: i32) -> (i32, i32) {
    %c0_i32 = arith.constant 0 : i32
    %c0_i32_0 = arith.constant 0 : i32
    %c0_i32_1 = arith.constant 0 : i32
    return %c0_i32, %c0_i32_0 : i32, i32
  }
  func.func @transform_13(%arg0: i32) -> (i32, i32) {
    %c0_i32 = arith.constant 0 : i32
    %c0_i32_0 = arith.constant 0 : i32
    %c0_i32_1 = arith.constant 0 : i32
    return %c0_i32, %c0_i32_0 : i32, i32
  }
  func.func @transform_14(%arg0: i32) -> (i32, i32) {
    %c0_i32 = arith.constant 0 : i32
    %c0_i32_0 = arith.constant 0 : i32
    %c0_i32_1 = arith.constant 0 : i32
    return %c0_i32, %c0_i32_0 : i32, i32
  }
  func.func @transform_15(%arg0: i32) -> (i32, i32) {
    %c0_i32 = arith.constant 0 : i32
    %c0_i32_0 = arith.constant 0 : i32
    %c0_i32_1 = arith.constant 0 : i32
    return %c0_i32, %c0_i32_0 : i32, i32
  }
  func.func @transform_16(%arg0: i32) -> (i32, i32) {
    %c0_i32 = arith.constant 0 : i32
    %c0_i32_0 = arith.constant 0 : i32
    %c0_i32_1 = arith.constant 0 : i32
    return %c0_i32, %c0_i32_0 : i32, i32
  }
  func.func @transform_17(%arg0: i32) -> (i32, i32) {
    %c0_i32 = arith.constant 0 : i32
    %c0_i32_0 = arith.constant 0 : i32
    %c0_i32_1 = arith.constant 0 : i32
    return %c0_i32, %c0_i32_0 : i32, i32
  }
  func.func @transform_18(%arg0: i32) -> (i32, i32) {
    %c0_i32 = arith.constant 0 : i32
    %c0_i32_0 = arith.constant 0 : i32
    %c0_i32_1 = arith.constant 0 : i32
    return %c0_i32, %c0_i32_0 : i32, i32
  }
  func.func @transform_19(%arg0: i32) -> (i32, i32) {
    %c0_i32 = arith.constant 0 : i32
    %c0_i32_0 = arith.constant 0 : i32
    %c0_i32_1 = arith.constant 0 : i32
    return %c0_i32, %c0_i32_0 : i32, i32
  }
  func.func @transform_20(%arg0: i32) -> (i32, i32) {
    %c0_i32 = arith.constant 0 : i32
    %c0_i32_0 = arith.constant 0 : i32
    %c0_i32_1 = arith.constant 0 : i32
    return %c0_i32, %c0_i32_0 : i32, i32
  }
  func.func @transform_21(%arg0: i32) -> (i32, i32) {
    %c0_i32 = arith.constant 0 : i32
    %c0_i32_0 = arith.constant 0 : i32
    %c0_i32_1 = arith.constant 0 : i32
    return %c0_i32, %c0_i32_0 : i32, i32
  }
  func.func @transform_22(%arg0: i32) -> (i32, i32) {
    %c0_i32 = arith.constant 0 : i32
    %c0_i32_0 = arith.constant 0 : i32
    %c0_i32_1 = arith.constant 0 : i32
    return %c0_i32, %c0_i32_0 : i32, i32
  }
  func.func @transform_23(%arg0: i32) -> (i32, i32) {
    %c0_i32 = arith.constant 0 : i32
    %c0_i32_0 = arith.constant 0 : i32
    %c0_i32_1 = arith.constant 0 : i32
    return %c0_i32, %c0_i32_0 : i32, i32
  }
  func.func @transform_24(%arg0: i32) -> (i32, i32, i32) {
    %c0_i32 = arith.constant 0 : i32
    %c0_i32_0 = arith.constant 0 : i32
    %c0_i32_1 = arith.constant 0 : i32
    return %arg0, %c0_i32, %c0_i32_0 : i32, i32, i32
  }
}

</mosaic_0001>

<bundles_post_ra>
// kernel: hierarchical_transformer.8
= control target key start
LH: loop header
LB: loop body
LE: loop exit
PB: predicated region body
PF: predicated region fallthrough
CT: control target
= control target key end

     0   :  { %vm34_vm0 = vcmask 523264   ;;  %s119_s1 = inlined_call_operand.vmem [shape: f32[64,64], index: 1, kind: input, shape index: {}]   ;;  %s120_s2 = inlined_call_operand.vmem [shape: f32[1,64], index: 2, kind: input, shape index: {}]   ;;  %s121_s0 = inlined_call_operand.vmem [shape: f32[16,64], index: 0, kind: input, shape index: {}]   ;;  %s122_s3 = inlined_call_operand.vmem [shape: f32[16,64], index: 3, kind: output, shape index: {}]  }
   0x1   :  { %v23_v0 = vld [vmem:[%s119_s1 + $0x30] sm:$0xff]  ;;  %v24_v1 = vld [vmem:[%s119_s1 + $0x38] sm:$0xff]  ;;  %v21_v2 = vld [vmem:[%s119_s1 + $0x20] sm:$0xff] }
   0x2   :  { %v29_v3 = vpack.c.bf16 %v24_v1, %v23_v0  ;;  %v22_v4 = vld [vmem:[%s119_s1 + $0x28] sm:$0xff]  ;;  %v19_v6 = vld [vmem:[%s119_s1 + $0x10] sm:$0xff]  ;;  %v20_v7 = vld [vmem:[%s119_s1 + $0x18] sm:$0xff] }
   0x3   :  { %v28_v5 = vpack.c.bf16 %v22_v4, %v21_v2  ;;  %v27_v8 = vpack.c.bf16 %v20_v7, %v19_v6  ;;  %v17_v9 = vld [vmem:[%s119_s1] sm:$0xff]  ;;  %v18_v10 = vld [vmem:[%s119_s1 + $0x8] sm:$0xff] }
   0x4   :  { %42 = vmatpush.bf16.msra.mxu0 %v29_v3  ;;  %v26_v11 = vpack.c.bf16 %v18_v10, %v17_v9  ;;  %v15_v12 = vld [vmem:[%s121_s0] sm:$0xff]  ;;  %v16_v13 = vld [vmem:[%s121_s0 + $0x8] sm:$0xff] }
   0x5   :  { %v25_v14 = vpack.c.bf16 %v16_v13, %v15_v12  ;;  %v59_v15 = vld [vmem:[%s120_s2] ss:$0 sm:$0xff] }
   0x8   :  { %43 = vmatpush.bf16.msra.mxu0 %v28_v5 }
   0xc   :  { %44 = vmatpush.bf16.msra.mxu0 %v27_v8 }
  0x10   :  { %45 = vmatpush.bf16.msra.mxu0 %v26_v11 }
  0x13   :  { %58 = vmatmul.msk.bf16.vlgmr.msra.gmra.mxu0 %vm34_vm0, %v25_v14 }
  0x90   :  { %v47_v16 = vpop.f32.mrf.mxu0 }
  0x91   :  { %v48_v17 = vadd.f32 %v59_v15, %v47_v16 }
  0x93   :  { %52 = vst.msk [vmem:[%s122_s3] sm:$0xff] %vm34_vm0, %v48_v17 }
  0x98   :  { %v49_v18 = vpop.f32.mrf.mxu0 }
  0x99   :  { %v50_v19 = vadd.f32 %v59_v15, %v49_v18 }
  0x9b   :  { %53 = vst.msk [vmem:[%s122_s3 + $0x8] sm:$0xff] %vm34_vm0, %v50_v19 }

// kernel: hierarchical_transformer.6
= control target key start
LH: loop header
LB: loop body
LE: loop exit
PB: predicated region body
PF: predicated region fallthrough
CT: control target
= control target key end

     0   :  { %vm34_vm0 = vcmask 1043456   ;;  %vm27_vm1 = vcmask 64512   ;;  %vm57_vm2 = vcmask 261120   ;;  %s120_s1 = inlined_call_operand.vmem [shape: f32[8,32], index: 1, kind: input, shape index: {}]   ;;  %s121_s0 = inlined_call_operand.vmem [shape: f32[32,8], index: 0, kind: input, shape index: {}]   ;;  %s122_s2 = inlined_call_operand.vmem [shape: f32[1,32], index: 2, kind: input, shape index: {}]   ;;  %s123_s3 = inlined_call_operand.vmem [shape: f32[32,32], index: 3, kind: output, shape index: {}]  }
   0x1   :  { %v19_v0 = vld [vmem:[%s120_s1] sm:$0xff]  ;;  %v16_v2 = vld [vmem:[%s121_s0 + $0x8] sm:$0xff]  ;;  %v17_v4 = vld [vmem:[%s121_s0 + $0x10] sm:$0xff] }
   0x2   :  { %v15_v1 = vld [vmem:[%s121_s0] sm:$0xff]  ;;  %v22_v3 = vpack.c.bf16 %v19_v0, %v19_v0  ;;  %v18_v5 = vld [vmem:[%s121_s0 + $0x18] sm:$0xff] }
   0x3   :  { %v20_v7 = vpack.c.bf16 %v16_v2, %v15_v1  ;;  %v21_v8 = vpack.c.bf16 %v18_v5, %v17_v4  ;;  %v69_v9 = vld [vmem:[%s122_s2] ss:$0 sm:$0xff] }
   0x4   :  { %v36_v6 = vsel %vm34_vm0, %v22_v3, 0 }
   0x5   :  { %45 = vmatpush.bf16.msra.mxu0 %v36_v6  ;;  %68 = vmatpush.bf16.msra.mxu1 %v36_v6 }
   0x8   :  { %66 = vmatmul.msk.bf16.vlgmr.msra.gmra.mxu0 %vm27_vm1, %v20_v7  ;;  %67 = vmatmul.msk.bf16.vlgmr.msra.gmra.mxu1 %vm27_vm1, %v21_v8 }
  0x85   :  { %v47_v10 = vpop.f32.mrf.mxu0  ;;  %v52_v11 = vpop.f32.mrf.mxu1 }
  0x86   :  { %v48_v12 = vadd.f32 %v69_v9, %v47_v10  ;;  %v53_v13 = vadd.f32 %v69_v9, %v52_v11 }
  0x88   :  { %58 = vst.msk [vmem:[%s123_s3] sm:$0xff] %vm57_vm2, %v48_v12 }
  0x89   :  { %60 = vst.msk [vmem:[%s123_s3 + $0x10] sm:$0xff] %vm57_vm2, %v53_v13 }
  0x8d   :  { %v49_v14 = vpop.f32.mrf.mxu0  ;;  %v54_v15 = vpop.f32.mrf.mxu1 }
  0x8e   :  { %v50_v16 = vadd.f32 %v69_v9, %v49_v14  ;;  %v55_v17 = vadd.f32 %v69_v9, %v54_v15 }
  0x90   :  { %59 = vst.msk [vmem:[%s123_s3 + $0x8] sm:$0xff] %vm57_vm2, %v50_v16 }
  0x91   :  { %61 = vst.msk [vmem:[%s123_s3 + $0x18] sm:$0xff] %vm57_vm2, %v55_v17 }

// kernel: hierarchical_transformer.7
= control target key start
LH: loop header
LB: loop body
LE: loop exit
PB: predicated region body
PF: predicated region fallthrough
CT: control target
= control target key end

     0   :  { %s1111_s29 = smov 0   ;;  %s1270_s0 = inlined_call_operand.vmem [shape: f32[2,16,32], index: 0, kind: input, shape index: {}]   ;;  %s1271_s1 = inlined_call_operand.vmem [shape: f32[2,1,16], index: 1, kind: input, shape index: {}]   ;;  %s1272_s2 = inlined_call_operand.vmem [shape: f32[32,96], index: 2, kind: input, shape index: {}]   ;;  %s1273_s3 = inlined_call_operand.vmem [shape: f32[1,96], index: 3, kind: input, shape index: {}]   ;;  %s1274_s4 = inlined_call_operand.vmem [shape: f32[32,32], index: 4, kind: input, shape index: {}]   ;;  %s1275_s5 = inlined_call_operand.vmem [shape: f32[1,32], index: 5, kind: input, shape index: {}]   ;;  %s1276_s6 = inlined_call_operand.vmem [shape: f32[1,32], index: 6, kind: input, shape index: {}]   ;;  %s1277_s7 = inlined_call_operand.vmem [shape: f32[1,32], index: 7, kind: input, shape index: {}]   ;;  %s1278_s8 = inlined_call_operand.vmem [shape: f32[32,64], index: 8, kind: input, shape index: {}]   ;;  %s1279_s9 = inlined_call_operand.vmem [shape: f32[1,64], index: 9, kind: input, shape index: {}]   ;;  %s1280_s10 = inlined_call_operand.vmem [shape: f32[64,32], index: 10, kind: input, shape index: {}]   ;;  %s1281_s11 = inlined_call_operand.vmem [shape: f32[1,32], index: 11, kind: input, shape index: {}]   ;;  %s1282_s12 = inlined_call_operand.vmem [shape: f32[1,32], index: 12, kind: input, shape index: {}]   ;;  %s1283_s13 = inlined_call_operand.vmem [shape: f32[1,32], index: 13, kind: input, shape index: {}]   ;;  %s1284_s14 = inlined_call_operand.vmem [shape: f32[2,16,32], index: 14, kind: output, shape index: {}]  }
   0x1 LB: > { %s945_s30 = sadd.s32 4294967295, %s1027_s29   ;;  %p949_p0 = scmp.ge.s32.totalorder %s1027_s29, 1  ;;  %s1027_s29 = sphi %s1111_s29, %s24_s29  }
   0x2   : > { %p420_p1 = scmp.lt.s32.totalorder %s1027_s29, 3 }
   0x4   : > { %p421_p2 = pnand %p949_p0, %p420_p1 }
   0x5   : > { %p469_p3 = scmp.lt.s32.totalorder (!%p421_p2), %s945_s30, 1  ;;  %s1029_s15 = smov (!%p421_p2), 112  }
   0x6   : > { %424 = sbr.rel (%p421_p2) target bundleno = 1976 (0x7b8), region = 76  ;;  %s1030_s16 = smov (!%p421_p2), 96  }
   0x7   : > { %s1031_s20 = smov (!%p421_p2), 80   ;;  %s1032_s21 = smov (!%p421_p2), 48  }
   0x8   : > { %s1033_s22 = smov (!%p421_p2), 64   ;;  %s1034_s18 = smov (!%p421_p2), 16  }
   0xb   : > { %v488_v0 = vld [vmem:[%s1272_s2 + $0x10] sm:$0xff]  ;;  %v489_v1 = vld [vmem:[%s1272_s2 + $0x18] sm:$0xff]  ;;  %v486_v2 = vld [vmem:[%s1272_s2] sm:$0xff]  ;;  %s1286_s30 = smov (!%p469_p3, %s945_s30), 1  ;;  %vm497_vm0 = vcmask 261120   ;;  %vm522_vm1 = vcmask 130048  }
   0xc   : > { %v492_v3 = vpack.c.bf16 %v489_v1, %v488_v0  ;;  %v487_v4 = vld [vmem:[%s1272_s2 + $0x8] sm:$0xff]  ;;  %s964_s23 = sshll.u32 %s1286_s30, 4  ;;  %v986_v10 = vld [vmem:[%s1273_s3] ss:$0 sm:$0xff]  ;;  %s476_s19 = scalar_lea.vmem %s1271_s1, %s1286_s30  ;;  %vm803_vm9 = vcmask 523264  }
   0xd   : > { %v491_v5 = vpack.c.bf16 %v487_v4, %v486_v2  ;;  %s473_s26 = scalar_lea.vmem %s1270_s0, %s964_s23  ;;  %v987_v20 = vld [vmem:[%s476_s19] ss:$0 sm:$0xff] }
   0xe   : > { %507 = vmatpush.bf16.msra.mxu0 %v492_v3  ;;  %v1139_v6 = vld [vmem:[%s473_s26] sm:$0xff]  ;;  %v1141_v7 = vld [vmem:[%s473_s26 + $0x8] sm:$0xff] }
   0xf   : > { %v490_v8 = vpack.c.bf16 %v1141_v7, %v1139_v6 }
  0x12   : > { %508 = vmatpush.bf16.msra.mxu0 %v491_v5  ;;  %v665_v5 = vld [vmem:[%s1274_s4 + $0x10] sm:$0xff] }
  0x15   : > { %954 = vmatmul.msk.bf16.vlgmr.msra.gmra.mxu0 %vm497_vm0, %v490_v8  ;;  %v666_v8 = vld [vmem:[%s1274_s4 + $0x18] sm:$0xff] }
  0x92   : > { %v510_v9 = vpop.f32.mrf.mxu0 }
  0x93   : > { %v511_v12 = vadd.f32 %v986_v10, %v510_v9  ;;  %v663_v9 = vld [vmem:[%s1274_s4] sm:$0xff] }
  0x9a   : > { %v512_v11 = vpop.f32.mrf.mxu0 }
  0x9b   : > { %v513_v13 = vadd.f32 %v986_v10, %v512_v11  ;;  %v669_v10 = vpack.c.bf16 %v666_v8, %v665_v5  ;;  %v664_v11 = vld [vmem:[%s1274_s4 + $0x8] sm:$0xff] }
  0x9d   : > { %v515_v14 = vpack.c.bf16 %v513_v13, %v511_v12  ;;  %683 = vmatpush.bf16.msrb.mxu0 %v669_v10  ;;  %v668_v13 = vpack.c.bf16 %v664_v11, %v663_v9 }
  0x9f   : > { %586 = vrot.lane.b32.xlu1 %v515_v14, %s1029_s15  ;;  %520 = vrot.lane.b32.xlu0 %v515_v14, %s1030_s16 }
  0xa1   : > { %684 = vmatpush.bf16.msrb.mxu0 %v668_v13 }
  0xa7   : > { %588 = vrot.lane.b32.xlu0 %v515_v14, %s1031_s20  ;;  %s481_s20 = scalar_lea.vmem %s1284_s14, %s964_s23 }
 0x111   : > { %v521_v15 = vpop.permute.xlu0 %520  ;;  %v587_v19 = vpop.permute.xlu1 %586 }
 0x112   : > { %v527_v16 = vsel %vm522_vm1, %v521_v15, 0 }
 0x113   : > { %536 = vmatpush.bf16.xpose.msra.mxu1 %v527_v16 }
 0x119   : > { %v589_v17 = vpop.permute.xlu0 %588 }
 0x11a   : > { %955 = vmatmul.msk.bf16.vlgmr.msra.gmra.mxu1 %vm522_vm1, %v515_v14  ;;  %v594_v18 = vsel %vm522_vm1, %v589_v17, 0 }
 0x11b   : > { %603 = vmatpush.bf16.xpose.msra.mxu3 %v594_v18 }
 0x122   : > { %957 = vmatmul.msk.bf16.vlgmr.msra.gmra.mxu3 %vm522_vm1, %v587_v19 }
 0x197   : > { %v538_v21 = vpop.f32.mrf.mxu1 }
 0x198   : > { %v539_v22 = vadd.f32 %v987_v20, %v538_v21 }
 0x19a   : > { %v543_v23 = vsel %vm522_vm1, %v539_v22, -inf }
 0x19b   : > { %544 = vmax.xlane.f32.xlu1 %v543_v23 }
 0x19f   : > { %v540_v27 = vpop.f32.mrf.mxu1 }
 0x1a0   : > { %v541_v28 = vadd.f32 %v987_v20, %v540_v27 }
 0x1a2   : > { %v546_v32 = vsel %vm522_vm1, %v541_v28, -inf }
 0x1a5   : > { %v605_v24 = vpop.f32.mrf.mxu3 }
 0x1a6   : > { %v606_v25 = vadd.f32 %v987_v20, %v605_v24  ;;  %v988_v24 = vld [vmem:[%s1275_s5] ss:$0 sm:$0xff] }
 0x1a8   : > { %v610_v26 = vsel %vm522_vm1, %v606_v25, -inf }
 0x1a9   : > { %611 = vmax.xlane.f32.xlu2 %v610_v26 }
 0x1ad   : > { %v607_v29 = vpop.f32.mrf.mxu3 }
 0x1ae   : > { %v608_v30 = vadd.f32 %v987_v20, %v607_v29 }
 0x1b0   : > { %v613_v31 = vsel %vm522_vm1, %v608_v30, -inf }
 0x1b1   : > { %614 = vmax.xlane.f32.xlu0 %v613_v31  ;;  %547 = vmax.xlane.f32.xlu2 %v546_v32 }
 0x1c5   : > { %633 = vrot.lane.b32.xlu0 %v515_v14, %s1032_s21 }
 0x20e   : > { %v545_v33 = vpop.xlane.xlu1 %544 }
 0x20f   : > { %v549_v34 = vsub.f32 %v539_v22, %v545_v33  ;;  %v1035_v33 = vmov 32.0  }
 0x211   : > { %v551_v35 = vmul.f32 1.442695, %v549_v34 }
 0x213   : > { %995 = vpow2.f32 %v551_v35 }
 0x219   : > { %v996_v36 = vpop.eup %995 }
 0x21a   : > { %v555_v37 = vsel %vm522_vm1, %v996_v36, 0.0 }
 0x21b   : > { %556 = vadd.xlane.f32.xlu2 %v555_v37 }
 0x21c   : > { %v612_v38 = vpop.xlane.xlu2 %611 }
 0x21d   : > { %v616_v39 = vsub.f32 %v606_v25, %v612_v38 }
 0x21f   : > { %v618_v40 = vmul.f32 1.442695, %v616_v39 }
 0x221   : > { %997 = vpow2.f32 %v618_v40 }
 0x224   : > { %v548_v41 = vpop.xlane.xlu2 %547  ;;  %v615_v48 = vpop.xlane.xlu0 %614 }
 0x225   : > { %v550_v42 = vsub.f32 %v541_v28, %v548_v41  ;;  %v617_v49 = vsub.f32 %v608_v30, %v615_v48  ;;  %v758_v48 = vld [vmem:[%s1278_s8 + $0x10] sm:$0xff] }
 0x227   : > { %v998_v43 = vpop.eup %997  ;;  %v553_v44 = vmul.f32 1.442695, %v550_v42  ;;  %v620_v50 = vmul.f32 1.442695, %v617_v49  ;;  %v759_v49 = vld [vmem:[%s1278_s8 + $0x18] sm:$0xff] }
 0x228   : > { %v622_v45 = vsel %vm522_vm1, %v998_v43, 0.0 }
 0x229   : > { %623 = vadd.xlane.f32.xlu1 %v622_v45  ;;  %999 = vpow2.f32 %v553_v44 }
 0x22a   : > { %1001 = vpow2.f32 %v620_v50  ;;  %v762_v50 = vpack.c.bf16 %v759_v49, %v758_v48 }
 0x22c   : > { %776 = vmatpush.bf16.msrb.mxu1 %v762_v50 }
 0x22f   : > { %v1000_v46 = vpop.eup %999 }
 0x230   : > { %v558_v47 = vsel %vm522_vm1, %v1000_v46, 0.0  ;;  %v1002_v51 = vpop.eup %1001 }
 0x231   : > { %559 = vadd.xlane.f32.xlu2 %v558_v47  ;;  %v625_v52 = vsel %vm522_vm1, %v1002_v51, 0.0 }
 0x237   : > { %v634_v60 = vpop.permute.xlu0 %633 }
 0x249   : > { %566 = vrot.lane.b32.xlu2 %v515_v14, %s1033_s22 }
 0x272   : > { %626 = vadd.xlane.f32.xlu2 %v625_v52  ;;  %v757_v52 = vld [vmem:[%s1278_s8 + $0x8] sm:$0xff] }
 0x28e   : > { %v557_v53 = vpop.xlane.xlu2 %556 }
 0x28f   : > { %1003 = vrcp.f32 %v557_v53 }
 0x295   : > { %v1004_v55 = vpop.eup %1003 }
 0x296   : > { %v563_v58 = vmul.f32 %v1004_v55, %v996_v36 }
 0x29c   : > { %v624_v62 = vpop.xlane.xlu1 %623 }
 0x2a4   : > { %v560_v54 = vpop.xlane.xlu2 %559 }
 0x2a5   : > { %1005 = vrcp.f32 %v560_v54 }
 0x2a6   : > { %1007 = vrcp.f32 %v624_v62 }
 0x2ab   : > { %v1006_v56 = vpop.eup %1005 }
 0x2ac   : > { %v567_v57 = vpop.permute.xlu2 %566  ;;  %v564_v59 = vmul.f32 %v1006_v56, %v1000_v46  ;;  %v1008_v0 = vpop.eup %1007 }
 0x2ad   : > { %579 = vmatpush.bf16.msra.mxu2 %v567_v57  ;;  %v630_v2 = vmul.f32 %v1008_v0, %v998_v43  ;;  %v792_v57 = vld [vmem:[%s1280_s10 + $0x30] sm:$0xff] }
 0x2ae   : > { %v565_v61 = vpack.c.bf16 %v564_v59, %v563_v58  ;;  %v793_v58 = vld [vmem:[%s1280_s10 + $0x38] sm:$0xff] }
 0x2b0   : > { %956 = vmatmul.msk.bf16.vlgmr.msra.gmra.mxu2 %vm522_vm1, %v565_v61 }
 0x2b1   : > { %646 = vmatpush.bf16.msrb.mxu2 %v634_v60  ;;  %v798_v60 = vpack.c.bf16 %v793_v58, %v792_v57 }
 0x2b3   : > { %811 = vmatpush.bf16.msrb.mxu3 %v798_v60 }
 0x2e5   : > { %v627_v63 = vpop.xlane.xlu2 %626 }
 0x2e6   : > { %1009 = vrcp.f32 %v627_v63 }
 0x2e7   : > { %1011 = vrcp.f32 %v1035_v33 }
 0x2ec   : > { %v1010_v1 = vpop.eup %1009 }
 0x2ed   : > { %v631_v3 = vmul.f32 %v1010_v1, %v1002_v51  ;;  %v1012_v34 = vpop.eup %1011  ;;  %v756_v51 = vld [vmem:[%s1278_s8] sm:$0xff] }
 0x2ee   : > { %v702_v35 = vmul.f32 32.0, %v1012_v34  ;;  %vm706_vm2 = vweird.f32 %v1012_v34  ;;  %v761_v54 = vpack.c.bf16 %v757_v52, %v756_v51 }
 0x2ef   : > { %v632_v4 = vpack.c.bf16 %v631_v3, %v630_v2 }
 0x2f0   : > { %v703_v36 = vsub.f32 1.0, %v702_v35  ;;  %777 = vmatpush.bf16.msrb.mxu1 %v761_v54 }
 0x2f1   : > { %958 = vmatmul.msk.bf16.vlgmr.msrb.gmra.mxu2 %vm522_vm1, %v632_v4 }
 0x2f2   : > { %v704_v37 = vmul.f32 %v1012_v34, %v703_v36 }
 0x2f4   : > { %v705_v38 = vadd.f32 %v1012_v34, %v704_v37 }
 0x2f6   : > { %v1189_v39 = vsel %vm706_vm2, %v1012_v34, %v705_v38  ;;  %v991_v34 = vld [vmem:[%s1279_s9] ss:$0 sm:$0xff] }
 0x333   : > { %v581_v12 = vpop.f32.mrf.mxu2 }
 0x33b   : > { %v583_v14 = vpop.f32.mrf.mxu2 }
 0x374   : > { %v648_v15 = vpop.f32.mrf.mxu2 }
 0x37c   : > { %v650_v16 = vpop.f32.mrf.mxu2 }
 0x37d   : > { %v981_v17 = vpack.i.bf16 %v650_v16, %v648_v15 }
 0x37f   : > { %982 = vrot.lane.b32.xlu1 %v981_v17, %s1034_s18 }
 0x3f1   : > { %v983_v18 = vpop.permute.xlu1 %982 }
 0x3f2   : > { %v985_v19 = vunpack.i.h.bf16 %v983_v18  ;;  %v984_v20 = vunpack.i.l.bf16 %v983_v18 }
 0x3f4   : > { %v662_v21 = vsel %vm522_vm1, %v583_v14, %v985_v19  ;;  %v661_v22 = vsel %vm522_vm1, %v581_v12, %v984_v20  ;;  %v989_v14 = vld [vmem:[%s1276_s6] ss:$0 sm:$0xff] }
 0x3f5   : > { %v667_v23 = vpack.c.bf16 %v662_v21, %v661_v22  ;;  %v990_v19 = vld [vmem:[%s1277_s7] ss:$0 sm:$0xff] }
 0x3f7   : > { %959 = vmatmul.msk.bf16.vlgmr.msrb.gmra.mxu0 %vm497_vm0, %v667_v23 }
 0x474   : > { %v686_v25 = vpop.f32.mrf.mxu0 }
 0x475   : > { %v687_v26 = vadd.f32 %v988_v24, %v686_v25  ;;  %v791_v25 = vld [vmem:[%s1280_s10 + $0x28] sm:$0xff] }
 0x477   : > { %v691_v27 = vadd.f32 %v687_v26, %v1139_v6 }
 0x479   : > { %v695_v28 = vsel %vm497_vm0, %v691_v27, 0.0 }
 0x47a   : > { %696 = vadd.xlane.f32.xlu0 %v695_v28  ;;  %v789_v28 = vld [vmem:[%s1280_s10 + $0x18] sm:$0xff] }
 0x47c   : > { %v688_v29 = vpop.f32.mrf.mxu0 }
 0x47d   : > { %v689_v30 = vadd.f32 %v988_v24, %v688_v29  ;;  %v790_v24 = vld [vmem:[%s1280_s10 + $0x20] sm:$0xff] }
 0x47e   : > { %v797_v26 = vpack.c.bf16 %v791_v25, %v790_v24 }
 0x47f   : > { %v692_v31 = vadd.f32 %v689_v30, %v1141_v7  ;;  %v786_v30 = vld [vmem:[%s1280_s10] sm:$0xff] }
 0x480   : > { %812 = vmatpush.bf16.msrb.mxu3 %v797_v26 }
 0x481   : > { %v698_v32 = vsel %vm497_vm0, %v692_v31, 0.0 }
 0x482   : > { %699 = vadd.xlane.f32.xlu1 %v698_v32 }
 0x4ed   : > { %v697_v6 = vpop.xlane.xlu0 %696 }
 0x4ee   : > { %v708_v40 = vmul.f32 %v1189_v39, %v697_v6 }
 0x4f0   : > { %v710_v41 = vsub.f32 %v691_v27, %v708_v40  ;;  %v788_v27 = vld [vmem:[%s1280_s10 + $0x10] sm:$0xff] }
 0x4f1   : > { %v796_v29 = vpack.c.bf16 %v789_v28, %v788_v27 }
 0x4f2   : > { %v712_v42 = vmul.f32 %v710_v41, %v710_v41 }
 0x4f3   : > { %813 = vmatpush.bf16.msrb.mxu3 %v796_v29 }
 0x4f4   : > { %v714_v7 = vsel %vm497_vm0, %v712_v42, 0.0 }
 0x4f5   : > { %v700_v43 = vpop.xlane.xlu1 %699  ;;  %715 = vadd.xlane.f32.xlu2 %v714_v7 }
 0x4f6   : > { %v709_v44 = vmul.f32 %v1189_v39, %v700_v43 }
 0x4f8   : > { %v711_v45 = vsub.f32 %v692_v31, %v709_v44  ;;  %v787_v31 = vld [vmem:[%s1280_s10 + $0x8] sm:$0xff] }
 0x4f9   : > { %v795_v32 = vpack.c.bf16 %v787_v31, %v786_v30 }
 0x4fa   : > { %v713_v46 = vmul.f32 %v711_v45, %v711_v45 }
 0x4fb   : > { %814 = vmatpush.bf16.msrb.mxu3 %v795_v32 }
 0x4fc   : > { %v717_v47 = vsel %vm497_vm0, %v713_v46, 0.0 }
 0x4fd   : > { %718 = vadd.xlane.f32.xlu2 %v717_v47 }
 0x568   : > { %v716_v53 = vpop.xlane.xlu2 %715 }
 0x569   : > { %v720_v55 = vmul.f32 %v716_v53, %v1189_v39 }
 0x56b   : > { %v722_v56 = vadd.f32 1e-12, %v720_v55 }
 0x56d   : > { %1013 = vrsqrt.f32 %v722_v56  ;;  %vm730_vm4 = vweird.f32 %v722_v56 }
 0x570   : > { %v719_v59 = vpop.xlane.xlu2 %718 }
 0x571   : > { %v721_v61 = vmul.f32 %v719_v59, %v1189_v39 }
 0x573   : > { %v1014_v62 = vpop.eup %1013  ;;  %v723_v63 = vadd.f32 1e-12, %v721_v61 }
 0x574   : > { %v725_v0 = vmul.f32 %v1014_v62, %v722_v56  ;;  %vm731_vm3 = vweird.f32 %v1014_v62 }
 0x575   : > { %1015 = vrsqrt.f32 %v723_v63  ;;  %vm732_vm5 = vmor %vm730_vm4, %vm731_vm3  ;;  %vm740_vm7 = vweird.f32 %v723_v63 }
 0x576   : > { %v726_v1 = vmul.f32 %v1014_v62, %v725_v0 }
 0x578   : > { %v727_v2 = vmul.f32 0.5, %v726_v1 }
 0x57a   : > { %v728_v3 = vsub.f32 1.5, %v727_v2 }
 0x57b   : > { %v1016_v4 = vpop.eup %1015 }
 0x57c   : > { %v729_v5 = vmul.f32 %v1014_v62, %v728_v3  ;;  %v735_v8 = vmul.f32 %v1016_v4, %v723_v63  ;;  %vm741_vm6 = vweird.f32 %v1016_v4 }
 0x57d   : > { %vm742_vm8 = vmor %vm740_vm7, %vm741_vm6 }
 0x57e   : > { %v736_v9 = vmul.f32 %v1016_v4, %v735_v8  ;;  %v733_v10 = vsel %vm732_vm5, %v1014_v62, %v729_v5 }
 0x57f   : > { %v744_v13 = vmul.f32 %v733_v10, %v710_v41  ;;  %v992_v41 = vld [vmem:[%s1281_s11] ss:$0 sm:$0xff] }
 0x580   : > { %v737_v11 = vmul.f32 0.5, %v736_v9 }
 0x581   : > { %v749_v18 = vmul.f32 %v989_v14, %v744_v13  ;;  %v994_v13 = vld [vmem:[%s1283_s13] ss:$0 sm:$0xff] }
 0x582   : > { %v738_v12 = vsub.f32 1.5, %v737_v11  ;;  %v993_v11 = vld [vmem:[%s1282_s12] ss:$0 sm:$0xff] }
 0x583   : > { %v754_v21 = vadd.f32 %v990_v19, %v749_v18 }
 0x584   : > { %v739_v15 = vmul.f32 %v1016_v4, %v738_v12 }
 0x586   : > { %v743_v16 = vsel %vm742_vm8, %v1016_v4, %v739_v15 }
 0x587   : > { %v745_v17 = vmul.f32 %v743_v16, %v711_v45 }
 0x589   : > { %v750_v20 = vmul.f32 %v989_v14, %v745_v17 }
 0x58b   : > { %v755_v22 = vadd.f32 %v990_v19, %v750_v20 }
 0x58d   : > { %v760_v23 = vpack.c.bf16 %v755_v22, %v754_v21 }
 0x58f   : > { %960 = vmatmul.msk.bf16.vlgmr.msrb.gmra.mxu1 %vm497_vm0, %v760_v23 }
 0x60c   : > { %v779_v33 = vpop.f32.mrf.mxu1 }
 0x60d   : > { %v780_v35 = vadd.f32 %v991_v34, %v779_v33 }
 0x60f   : > { %v784_v38 = vmax.f32 %v780_v35, 0.0 }
 0x614   : > { %v781_v36 = vpop.f32.mrf.mxu1 }
 0x615   : > { %v782_v37 = vadd.f32 %v991_v34, %v781_v36 }
 0x617   : > { %v785_v6 = vmax.f32 %v782_v37, 0.0 }
 0x619   : > { %v794_v40 = vpack.c.bf16 %v785_v6, %v784_v38 }
 0x61b   : > { %961 = vmatmul.msk.bf16.vlgmr.msrb.gmra.mxu3 %vm803_vm9, %v794_v40 }
 0x69e   : > { %v816_v42 = vpop.f32.mrf.mxu3 }
 0x69f   : > { %v817_v7 = vadd.f32 %v992_v41, %v816_v42 }
 0x6a1   : > { %v821_v43 = vadd.f32 %v817_v7, %v754_v21 }
 0x6a3   : > { %v825_v44 = vsel %vm497_vm0, %v821_v43, 0.0 }
 0x6a4   : > { %826 = vadd.xlane.f32.xlu2 %v825_v44 }
 0x6a6   : > { %v818_v45 = vpop.f32.mrf.mxu3 }
 0x6a7   : > { %v819_v46 = vadd.f32 %v992_v41, %v818_v45 }
 0x6a9   : > { %v822_v47 = vadd.f32 %v819_v46, %v755_v22 }
 0x6ab   : > { %v828_v48 = vsel %vm497_vm0, %v822_v47, 0.0 }
 0x6ac   : > { %829 = vadd.xlane.f32.xlu0 %v828_v48 }
 0x717   : > { %v827_v49 = vpop.xlane.xlu2 %826 }
 0x718   : > { %v831_v50 = vmul.f32 %v827_v49, %v1189_v39 }
 0x71a   : > { %v833_v51 = vsub.f32 %v821_v43, %v831_v50 }
 0x71c   : > { %v835_v52 = vmul.f32 %v833_v51, %v833_v51 }
 0x71e   : > { %v837_v53 = vsel %vm497_vm0, %v835_v52, 0.0 }
 0x71f   : > { %v830_v54 = vpop.xlane.xlu0 %829  ;;  %838 = vadd.xlane.f32.xlu2 %v837_v53 }
 0x720   : > { %v832_v55 = vmul.f32 %v830_v54, %v1189_v39 }
 0x722   : > { %v834_v56 = vsub.f32 %v822_v47, %v832_v55 }
 0x724   : > { %v836_v57 = vmul.f32 %v834_v56, %v834_v56 }
 0x726   : > { %v840_v58 = vsel %vm497_vm0, %v836_v57, 0.0 }
 0x727   : > { %841 = vadd.xlane.f32.xlu1 %v840_v58 }
 0x792   : > { %v839_v59 = vpop.xlane.xlu2 %838 }
 0x793   : > { %v843_v60 = vmul.f32 %v839_v59, %v1189_v39 }
 0x795   : > { %v845_v61 = vadd.f32 1e-12, %v843_v60 }
 0x797   : > { %1017 = vrsqrt.f32 %v845_v61  ;;  %vm853_vm11 = vweird.f32 %v845_v61 }
 0x79a   : > { %v842_v62 = vpop.xlane.xlu1 %841 }
 0x79b   : > { %v844_v63 = vmul.f32 %v842_v62, %v1189_v39 }
 0x79d   : > { %v1018_v0 = vpop.eup %1017  ;;  %v846_v1 = vadd.f32 1e-12, %v844_v63 }
 0x79e   : > { %v848_v2 = vmul.f32 %v1018_v0, %v845_v61  ;;  %vm854_vm10 = vweird.f32 %v1018_v0 }
 0x79f   : > { %1019 = vrsqrt.f32 %v846_v1  ;;  %vm855_vm12 = vmor %vm853_vm11, %vm854_vm10  ;;  %vm863_vm14 = vweird.f32 %v846_v1 }
 0x7a0   : > { %v849_v3 = vmul.f32 %v1018_v0, %v848_v2 }
 0x7a2   : > { %v850_v4 = vmul.f32 0.5, %v849_v3 }
 0x7a4   : > { %v851_v5 = vsub.f32 1.5, %v850_v4 }
 0x7a5   : > { %v1020_v8 = vpop.eup %1019 }
 0x7a6   : > { %v852_v9 = vmul.f32 %v1018_v0, %v851_v5  ;;  %v858_v10 = vmul.f32 %v1020_v8, %v846_v1  ;;  %vm864_vm13 = vweird.f32 %v1020_v8 }
 0x7a7   : > { %vm865_vm15 = vmor %vm863_vm14, %vm864_vm13 }
 0x7a8   : > { %v856_v12 = vsel %vm855_vm12, %v1018_v0, %v852_v9  ;;  %v859_v39 = vmul.f32 %v1020_v8, %v858_v10 }
 0x7a9   : > { %v867_v14 = vmul.f32 %v856_v12, %v833_v51 }
 0x7aa   : > { %v860_v15 = vmul.f32 0.5, %v859_v39 }
 0x7ab   : > { %v872_v16 = vmul.f32 %v993_v11, %v867_v14 }
 0x7ac   : > { %v861_v17 = vsub.f32 1.5, %v860_v15 }
 0x7ad   : > { %v877_v18 = vadd.f32 %v994_v13, %v872_v16 }
 0x7ae   : > { %v862_v19 = vmul.f32 %v1020_v8, %v861_v17 }
 0x7af   : > { %879 = vst.msk [vmem:[%s481_s20] sm:$0xff] %vm497_vm0, %v877_v18 }
 0x7b0   : > { %v866_v20 = vsel %vm865_vm15, %v1020_v8, %v862_v19 }
 0x7b1   : > { %v868_v21 = vmul.f32 %v866_v20, %v834_v56 }
 0x7b3   : > { %v873_v22 = vmul.f32 %v993_v11, %v868_v21 }
 0x7b5   : > { %v878_v23 = vadd.f32 %v994_v13, %v873_v22 }
 0x7b7   : > { %880 = vst.msk [vmem:[%s481_s20 + $0x8] sm:$0xff] %vm497_vm0, %v878_v23 }
 0x7b8 PF: > { %s24_s29 = sadd.s32 1, %s1027_s29  }
 0x7b9   : > { %p21_p4 = scmp.ge.s32.totalorder %s24_s29, 4  }
 0x7bb   :  { %23 = sbr.rel (!%p21_p4) target bundleno = 1 (0x1), region = 109 }

// kernel: hierarchical_transformer.9
= control target key start
LH: loop header
LB: loop body
LE: loop exit
PB: predicated region body
PF: predicated region fallthrough
CT: control target
= control target key end

     0   :  { %s1191_s29 = smov 0   ;;  %s1453_s0 = inlined_call_operand.vmem [shape: f32[2,8,64], index: 0, kind: input, shape index: {}]   ;;  %s1454_s1 = inlined_call_operand.vmem [shape: f32[2,1,8], index: 1, kind: input, shape index: {}]   ;;  %s1455_s2 = inlined_call_operand.vmem [shape: f32[64,192], index: 2, kind: input, shape index: {}]   ;;  %s1456_s3 = inlined_call_operand.vmem [shape: f32[1,192], index: 3, kind: input, shape index: {}]   ;;  %s1457_s4 = inlined_call_operand.vmem [shape: f32[64,64], index: 4, kind: input, shape index: {}]   ;;  %s1458_s5 = inlined_call_operand.vmem [shape: f32[1,64], index: 5, kind: input, shape index: {}]   ;;  %s1459_s6 = inlined_call_operand.vmem [shape: f32[1,64], index: 6, kind: input, shape index: {}]   ;;  %s1460_s7 = inlined_call_operand.vmem [shape: f32[1,64], index: 7, kind: input, shape index: {}]   ;;  %s1461_s8 = inlined_call_operand.vmem [shape: f32[64,128], index: 8, kind: input, shape index: {}]   ;;  %s1462_s9 = inlined_call_operand.vmem [shape: f32[1,128], index: 9, kind: input, shape index: {}]   ;;  %s1463_s10 = inlined_call_operand.vmem [shape: f32[128,64], index: 10, kind: input, shape index: {}]   ;;  %s1464_s11 = inlined_call_operand.vmem [shape: f32[1,64], index: 11, kind: input, shape index: {}]   ;;  %s1465_s12 = inlined_call_operand.vmem [shape: f32[1,64], index: 12, kind: input, shape index: {}]   ;;  %s1466_s13 = inlined_call_operand.vmem [shape: f32[1,64], index: 13, kind: input, shape index: {}]   ;;  %s1467_s14 = inlined_call_operand.vmem [shape: f32[2,8,64], index: 14, kind: output, shape index: {}]  }
   0x1 LB: > { %s1033_s30 = sadd.s32 4294967295, %s1106_s29   ;;  %p1037_p0 = scmp.ge.s32.totalorder %s1106_s29, 1  ;;  %s1106_s29 = sphi %s1191_s29, %s24_s29  }
   0x2   : > { %p419_p1 = scmp.lt.s32.totalorder %s1106_s29, 3 }
   0x4   : > { %p420_p2 = pnand %p1037_p0, %p419_p1 }
   0x5   : > { %p466_p3 = scmp.lt.s32.totalorder (!%p420_p2), %s1033_s30, 1  ;;  %s1108_s23 = smov (!%p420_p2), 80  }
   0x6   : > { %423 = sbr.rel (%p420_p2) target bundleno = 1901 (0x76d), region = 76  ;;  %s1109_s24 = smov (!%p420_p2), 112  }
   0x7   : > { %s1110_s25 = smov (!%p420_p2), 64   ;;  %s1470_s26 = smov (!%p420_p2), 32  }
   0x8   : > { %s1471_s28 = smov (!%p420_p2), 16   ;;  %s1469_s15 = smov (!%p420_p2), 48  }
   0x9   : > { %s1114_s16 = smov (!%p420_p2), 96  }
   0xb   : > { %v492_v0 = vld [vmem:[%s1455_s2 + $0x60] sm:$0xff]  ;;  %v494_v1 = vld [vmem:[%s1455_s2 + $0x70] sm:$0xff]  ;;  %s1477_s30 = smov (!%p466_p3, %s1033_s30), 1  ;;  %vm511_vm0 = vcmask 523264   ;;  %vm548_vm1 = vcmask 130048   ;;  %v493_v31 = vld [vmem:[%s1455_s2 + $0x68] sm:$0xff] }
   0xc   : > { %v488_v2 = vld [vmem:[%s1455_s2 + $0x40] sm:$0xff]  ;;  %v503_v3 = vpack.c.bf16 %v494_v1, %v492_v0  ;;  %v490_v4 = vld [vmem:[%s1455_s2 + $0x50] sm:$0xff]  ;;  %s1468_s27 = sshll.u32 %s1477_s30, 3  ;;  %s472_s19 = scalar_lea.vmem %s1454_s1, %s1477_s30  ;;  %v495_v32 = vld [vmem:[%s1455_s2 + $0x78] sm:$0xff]  ;;  %vm568_vm2 = vcmask 64512   ;;  %vm585_vm3 = vcmask 1043456  }
   0xd   : > { %v501_v5 = vpack.c.bf16 %v490_v4, %v488_v2  ;;  %v484_v6 = vld [vmem:[%s1455_s2 + $0x20] sm:$0xff]  ;;  %v486_v7 = vld [vmem:[%s1455_s2 + $0x30] sm:$0xff]  ;;  %s469_s20 = scalar_lea.vmem %s1453_s0, %s1468_s27  ;;  %v504_v33 = vpack.c.bf16 %v495_v32, %v493_v31  ;;  %v489_v34 = vld [vmem:[%s1455_s2 + $0x48] sm:$0xff]  ;;  %vm784_vm4 = vcmask 261120   ;;  %vm786_vm5 = vcmask 392192   ;;  %s1475_s18 = sshll.u32 %s1477_s30, 3 }
   0xe   : > { %519 = vmatpush.bf16.msra.mxu0 %v503_v3  ;;  %v499_v8 = vpack.c.bf16 %v486_v7, %v484_v6  ;;  %v480_v9 = vld [vmem:[%s1455_s2] sm:$0xff]  ;;  %v482_v10 = vld [vmem:[%s1455_s2 + $0x10] sm:$0xff]  ;;  %v491_v35 = vld [vmem:[%s1455_s2 + $0x58] sm:$0xff] }
   0xf   : > { %v497_v11 = vpack.c.bf16 %v482_v10, %v480_v9  ;;  %v1231_v12 = vld [vmem:[%s469_s20] sm:$0xff]  ;;  %532 = vmatpush.bf16.msra.mxu1 %v504_v33  ;;  %v502_v36 = vpack.c.bf16 %v491_v35, %v489_v34  ;;  %v485_v37 = vld [vmem:[%s1455_s2 + $0x28] sm:$0xff]  ;;  %v487_v38 = vld [vmem:[%s1455_s2 + $0x38] sm:$0xff] }
  0x10   : > { %v496_v13 = vpack.c.bf16 %v1231_v12, %v1231_v12  ;;  %v1239_v14 = vld [vmem:[%s1456_s3] sm:$0x3]  ;;  %v500_v39 = vpack.c.bf16 %v487_v38, %v485_v37  ;;  %v481_v40 = vld [vmem:[%s1455_s2 + $0x8] sm:$0xff]  ;;  %v483_v41 = vld [vmem:[%s1455_s2 + $0x18] sm:$0xff] }
  0x11   : > { %v507_v15 = vperm.slane %v1239_v14, 0  ;;  %v498_v42 = vpack.c.bf16 %v483_v41, %v481_v40  ;;  %v1070_v43 = vld [vmem:[%s472_s19] ss:$0 sm:$0xff]  ;;  %v508_v60 = vperm.slane %v1239_v14, 1 }
  0x12   : > { %520 = vmatpush.bf16.msra.mxu0 %v501_v5 }
  0x13   : > { %533 = vmatpush.bf16.msra.mxu1 %v502_v36 }
  0x16   : > { %521 = vmatpush.bf16.msra.mxu0 %v499_v8 }
  0x17   : > { %534 = vmatpush.bf16.msra.mxu1 %v500_v39 }
  0x1a   : > { %522 = vmatpush.bf16.msra.mxu0 %v497_v11 }
  0x1b   : > { %535 = vmatpush.bf16.msra.mxu1 %v498_v42 }
  0x1d   : > { %1040 = vmatmul.msk.bf16.vlgmr.msra.gmra.mxu0 %vm511_vm0, %v496_v13 }
  0x1e   : > { %1041 = vmatmul.msk.bf16.vlgmr.msra.gmra.mxu1 %vm511_vm0, %v496_v13 }
  0x9a   : > { %v524_v16 = vpop.f32.mrf.mxu0 }
  0x9b   : > { %v525_v17 = vadd.f32 %v524_v16, %v507_v15  ;;  %v537_v63 = vpop.f32.mrf.mxu1 }
  0x9c   : > { %v538_v0 = vadd.f32 %v537_v63, %v508_v60  ;;  %v791_v60 = vld [vmem:[%s1457_s4 + $0x18] sm:$0xff]  ;;  %v789_v63 = vld [vmem:[%s1457_s4 + $0x8] sm:$0xff] }
  0x9d   : > { %v541_v18 = vpack.c.bf16 %v525_v17, %v525_v17 }
  0x9e   : > { %v581_v2 = vpack.c.bf16 %v538_v0, %v538_v0 }
  0x9f   : > { %715 = vrot.lane.b32.xlu2 %v541_v18, %s1108_s23  ;;  %602 = vrot.lane.b32.xlu1 %v541_v18, %s1109_s24 }
  0xa0   : > { %546 = vrot.lane.b32.xlu0 %v541_v18, %s1110_s25  ;;  %v587_v3 = vsel %vm585_vm3, %v581_v2, 0 }
  0xa2   : > { %v526_v19 = vpop.f32.mrf.mxu0 }
  0xa3   : > { %v539_v5 = vpop.f32.mrf.mxu1 }
  0xa7   : > { %661 = vrot.lane.b32.xlu2 %v541_v18, %s1470_s26  ;;  %717 = vrot.lane.b32.xlu1 %v541_v18, %s1471_s28  ;;  %s1474_s28 = smov 48  }
  0xa8   : > { %604 = vrot.lane.b32.xlu0 %v541_v18, %s1469_s15 }
  0xb0   : > { %659 = vrot.lane.b32.xlu0 %v541_v18, %s1114_s16 }
  0xf9   : > { %v716_v20 = vpop.permute.xlu2 %715 }
 0x101   : > { %v662_v21 = vpop.permute.xlu2 %661 }
 0x102   : > { %v667_v22 = vsel %vm548_vm1, %v662_v21, 0 }
 0x103   : > { %676 = vmatpush.bf16.xpose.msrb.mxu0 %v667_v22 }
 0x111   : > { %v603_v23 = vpop.permute.xlu1 %602 }
 0x112   : > { %v547_v24 = vpop.permute.xlu0 %546 }
 0x113   : > { %v553_v25 = vsel %vm548_vm1, %v547_v24, 0 }
 0x114   : > { %562 = vmatpush.bf16.xpose.msra.mxu2 %v553_v25 }
 0x119   : > { %v718_v26 = vpop.permute.xlu1 %717 }
 0x11a   : > { %v605_v27 = vpop.permute.xlu0 %604  ;;  %v723_v28 = vsel %vm548_vm1, %v718_v26, 0 }
 0x11b   : > { %1042 = vmatmul.msk.bf16.vlgmr.msra.gmra.mxu2 %vm548_vm1, %v541_v18  ;;  %v610_v29 = vsel %vm548_vm1, %v605_v27, 0 }
 0x11c   : > { %619 = vmatpush.bf16.xpose.msra.mxu3 %v610_v29  ;;  %596 = vmatpush.bf16.msrb.mxu2 %v587_v3 }
 0x122   : > { %v660_v30 = vpop.permute.xlu0 %659 }
 0x123   : > { %1044 = vmatmul.msk.bf16.vlgmr.msra.gmra.mxu3 %vm548_vm1, %v603_v23  ;;  %1046 = vmatmul.msk.bf16.vlgmr.msrb.gmra.mxu0 %vm548_vm1, %v660_v30 }
 0x124   : > { %732 = vmatpush.bf16.xpose.msrb.mxu3 %v723_v28 }
 0x133   : > { %1048 = vmatmul.msk.bf16.vlgmr.msrb.gmra.mxu3 %vm548_vm1, %v716_v20 }
 0x19e   : > { %v564_v44 = vpop.f32.mrf.mxu2 }
 0x19f   : > { %v565_v45 = vadd.f32 %v1070_v43, %v564_v44 }
 0x1a0   : > { %v678_v46 = vpop.f32.mrf.mxu0 }
 0x1a1   : > { %v569_v47 = vsel %vm568_vm2, %v565_v45, -inf  ;;  %v679_v53 = vadd.f32 %v1070_v43, %v678_v46 }
 0x1a2   : > { %570 = vmax.xlane.f32.xlu1 %v569_v47 }
 0x1a3   : > { %v682_v55 = vsel %vm568_vm2, %v679_v53, -inf }
 0x1a6   : > { %v566_v48 = vpop.f32.mrf.mxu2  ;;  %v621_v49 = vpop.f32.mrf.mxu3 }
 0x1a7   : > { %v622_v50 = vadd.f32 %v1070_v43, %v621_v49 }
 0x1a8   : > { %v680_v51 = vpop.f32.mrf.mxu0 }
 0x1a9   : > { %v625_v52 = vsel %vm568_vm2, %v622_v50, -inf }
 0x1aa   : > { %626 = vmax.xlane.f32.xlu2 %v625_v52 }
 0x1ae   : > { %v623_v54 = vpop.f32.mrf.mxu3 }
 0x1af   : > { %v795_v54 = vld [vmem:[%s1457_s4 + $0x38] sm:$0xff] }
 0x1b2   : > { %683 = vmax.xlane.f32.xlu2 %v682_v55 }
 0x1b6   : > { %v734_v56 = vpop.f32.mrf.mxu3 }
 0x1b7   : > { %v735_v57 = vadd.f32 %v1070_v43, %v734_v56  ;;  %v792_v56 = vld [vmem:[%s1457_s4 + $0x20] sm:$0xff] }
 0x1b9   : > { %v738_v58 = vsel %vm568_vm2, %v735_v57, -inf }
 0x1ba   : > { %739 = vmax.xlane.f32.xlu0 %v738_v58 }
 0x1be   : > { %v736_v59 = vpop.f32.mrf.mxu3 }
 0x1bf   : > { %v790_v59 = vld [vmem:[%s1457_s4 + $0x10] sm:$0xff] }
 0x1ce   : > { %638 = vrot.lane.b32.xlu0 %v581_v2, %s1109_s24  ;;  %s1473_s24 = smov 32  }
 0x215   : > { %v571_v61 = vpop.xlane.xlu1 %570 }
 0x216   : > { %v572_v62 = vsub.f32 %v565_v45, %v571_v61  ;;  %v798_v61 = vpack.c.bf16 %v791_v60, %v790_v59  ;;  %v899_v59 = vld [vmem:[%s1463_s10 + $0x20] sm:$0xff]  ;;  %v900_v60 = vld [vmem:[%s1463_s10 + $0x28] sm:$0xff] }
 0x218   : > { %v573_v1 = vmul.f32 1.442695, %v572_v62  ;;  %v788_v62 = vld [vmem:[%s1457_s4] sm:$0xff] }
 0x219   : > { %v797_v0 = vpack.c.bf16 %v789_v63, %v788_v62  ;;  %v914_v63 = vpack.c.bf16 %v900_v60, %v899_v59 }
 0x21a   : > { %1078 = vpow2.f32 %v573_v1 }
 0x21d   : > { %v627_v4 = vpop.xlane.xlu2 %626 }
 0x21e   : > { %v628_v10 = vsub.f32 %v622_v50, %v627_v4 }
 0x220   : > { %v1079_v6 = vpop.eup %1078  ;;  %v629_v13 = vmul.f32 1.442695, %v628_v10 }
 0x221   : > { %v575_v7 = vsel %vm568_vm2, %v1079_v6, 0.0 }
 0x222   : > { %576 = vadd.xlane.f32.xlu1 %v575_v7 }
 0x225   : > { %v684_v8 = vpop.xlane.xlu2 %683 }
 0x226   : > { %v685_v9 = vsub.f32 %v679_v53, %v684_v8  ;;  %v794_v53 = vld [vmem:[%s1457_s4 + $0x30] sm:$0xff]  ;;  %v1071_v8 = vld [vmem:[%s1458_s5] ss:$0 sm:$0xff] }
 0x227   : > { %v800_v55 = vpack.c.bf16 %v795_v54, %v794_v53  ;;  %v901_v54 = vld [vmem:[%s1463_s10 + $0x30] sm:$0xff] }
 0x228   : > { %v686_v11 = vmul.f32 1.442695, %v685_v9 }
 0x229   : > { %812 = vmatpush.bf16.msra.mxu0 %v800_v55  ;;  %v902_v55 = vld [vmem:[%s1463_s10 + $0x38] sm:$0xff] }
 0x22a   : > { %1080 = vpow2.f32 %v686_v11 }
 0x22b   : > { %1082 = vpow2.f32 %v629_v13 }
 0x22d   : > { %v740_v14 = vpop.xlane.xlu0 %739 }
 0x22e   : > { %v741_v15 = vsub.f32 %v735_v57, %v740_v14  ;;  %v793_v57 = vld [vmem:[%s1457_s4 + $0x28] sm:$0xff] }
 0x22f   : > { %v799_v58 = vpack.c.bf16 %v793_v57, %v792_v56 }
 0x230   : > { %v1081_v16 = vpop.eup %1080  ;;  %v742_v17 = vmul.f32 1.442695, %v741_v15  ;;  %v1115_v15 = vmov 64.0  }
 0x231   : > { %v688_v18 = vsel %vm568_vm2, %v1081_v16, 0.0  ;;  %v1083_v19 = vpop.eup %1082  ;;  %813 = vmatpush.bf16.msra.mxu0 %v799_v58  ;;  %v915_v58 = vpack.c.bf16 %v902_v55, %v901_v54 }
 0x232   : > { %1084 = vpow2.f32 %v742_v17  ;;  %689 = vadd.xlane.f32.xlu2 %v688_v18  ;;  %v631_v21 = vsel %vm568_vm2, %v1083_v19, 0.0 }
 0x235   : > { %814 = vmatpush.bf16.msra.mxu0 %v798_v61 }
 0x238   : > { %v1085_v20 = vpop.eup %1084 }
 0x239   : > { %v744_v22 = vsel %vm568_vm2, %v1085_v20, 0.0  ;;  %815 = vmatpush.bf16.msra.mxu0 %v797_v0 }
 0x23a   : > { %632 = vadd.xlane.f32.xlu2 %v631_v21  ;;  %745 = vadd.xlane.f32.xlu1 %v744_v22 }
 0x240   : > { %v639_v24 = vpop.permute.xlu0 %638 }
 0x241   : > { %v644_v25 = vsel %vm585_vm3, %v639_v24, 0 }
 0x242   : > { %653 = vmatpush.bf16.msra.mxu2 %v644_v25 }
 0x252   : > { %694 = vrot.lane.b32.xlu2 %v581_v2, %s1114_s16 }
 0x253   : > { %750 = vrot.lane.b32.xlu1 %v581_v2, %s1108_s23  ;;  %s1472_s23 = smov 16  }
 0x295   : > { %v577_v23 = vpop.xlane.xlu1 %576 }
 0x296   : > { %1086 = vrcp.f32 %v577_v23 }
 0x29c   : > { %v1087_v26 = vpop.eup %1086 }
 0x29d   : > { %v579_v27 = vmul.f32 %v1087_v26, %v1079_v6  ;;  %v867_v26 = vld [vmem:[%s1461_s8 + $0x30] sm:$0xff] }
 0x29f   : > { %v580_v28 = vpack.c.bf16 %v579_v27, %v579_v27  ;;  %v868_v27 = vld [vmem:[%s1461_s8 + $0x38] sm:$0xff] }
 0x2a1   : > { %1043 = vmatmul.msk.bf16.vlgmr.msrb.gmra.mxu2 %vm568_vm2, %v580_v28  ;;  %v873_v28 = vpack.c.bf16 %v868_v27, %v867_v26 }
 0x2a5   : > { %v690_v29 = vpop.xlane.xlu2 %689 }
 0x2a6   : > { %1088 = vrcp.f32 %v690_v29  ;;  %v865_v29 = vld [vmem:[%s1461_s8 + $0x20] sm:$0xff] }
 0x2ac   : > { %v1089_v31 = vpop.eup %1088 }
 0x2ad   : > { %v633_v30 = vpop.xlane.xlu2 %632  ;;  %v692_v33 = vmul.f32 %v1089_v31, %v1081_v16  ;;  %v746_v38 = vpop.xlane.xlu1 %745 }
 0x2ae   : > { %1090 = vrcp.f32 %v633_v30  ;;  %v866_v30 = vld [vmem:[%s1461_s8 + $0x28] sm:$0xff] }
 0x2af   : > { %v693_v39 = vpack.c.bf16 %v692_v33, %v692_v33  ;;  %1092 = vrcp.f32 %v746_v38  ;;  %v872_v31 = vpack.c.bf16 %v866_v30, %v865_v29  ;;  %v864_v33 = vld [vmem:[%s1461_s8 + $0x18] sm:$0xff]  ;;  %v909_v38 = vld [vmem:[%s1463_s10 + $0x70] sm:$0xff] }
 0x2b0   : > { %1094 = vrcp.f32 %v1115_v15  ;;  %v1074_v15 = vld [vmem:[%s1462_s9] ss:$0 sm:$0xff] }
 0x2b4   : > { %v1091_v32 = vpop.eup %1090 }
 0x2b5   : > { %v635_v34 = vmul.f32 %v1091_v32, %v1083_v19  ;;  %v695_v35 = vpop.permute.xlu2 %694  ;;  %v1093_v40 = vpop.eup %1092  ;;  %v863_v32 = vld [vmem:[%s1461_s8 + $0x10] sm:$0xff] }
 0x2b6   : > { %v700_v36 = vsel %vm585_vm3, %v695_v35, 0  ;;  %v748_v41 = vmul.f32 %v1093_v40, %v1085_v20  ;;  %v1095_v16 = vpop.eup %1094  ;;  %v861_v35 = vld [vmem:[%s1461_s8] sm:$0xff] }
 0x2b7   : > { %v636_v37 = vpack.c.bf16 %v635_v34, %v635_v34  ;;  %709 = vmatpush.bf16.msrb.mxu1 %v700_v36  ;;  %v828_v17 = vmul.f32 64.0, %v1095_v16  ;;  %vm832_vm6 = vweird.f32 %v1095_v16  ;;  %v871_v34 = vpack.c.bf16 %v864_v33, %v863_v32  ;;  %v862_v36 = vld [vmem:[%s1461_s8 + $0x8] sm:$0xff]  ;;  %v907_v40 = vld [vmem:[%s1463_s10 + $0x60] sm:$0xff] }
 0x2b8   : > { %v749_v44 = vpack.c.bf16 %v748_v41, %v748_v41 }
 0x2b9   : > { %1045 = vmatmul.msk.bf16.vlgmr.msra.gmra.mxu2 %vm568_vm2, %v636_v37  ;;  %v829_v18 = vsub.f32 1.0, %v828_v17  ;;  %v870_v37 = vpack.c.bf16 %v862_v36, %v861_v35 }
 0x2ba   : > { %1047 = vmatmul.msk.bf16.vlgmr.msrb.gmra.mxu1 %vm568_vm2, %v693_v39  ;;  %v910_v39 = vld [vmem:[%s1463_s10 + $0x78] sm:$0xff] }
 0x2bb   : > { %v830_v19 = vmul.f32 %v1095_v16, %v829_v18  ;;  %885 = vmatpush.bf16.msra.mxu1 %v873_v28 }
 0x2bd   : > { %v831_v20 = vadd.f32 %v1095_v16, %v830_v19 }
 0x2bf   : > { %v1344_v21 = vsel %vm832_vm6, %v1095_v16, %v831_v20  ;;  %886 = vmatpush.bf16.msra.mxu1 %v872_v31 }
 0x2c3   : > { %887 = vmatpush.bf16.msra.mxu1 %v871_v34 }
 0x2c5   : > { %v751_v42 = vpop.permute.xlu1 %750 }
 0x2c6   : > { %v756_v43 = vsel %vm585_vm3, %v751_v42, 0  ;;  %v919_v42 = vpack.c.bf16 %v910_v39, %v909_v38 }
 0x2c7   : > { %765 = vmatpush.bf16.msrb.mxu2 %v756_v43  ;;  %888 = vmatpush.bf16.msra.mxu1 %v870_v37  ;;  %v908_v43 = vld [vmem:[%s1463_s10 + $0x68] sm:$0xff] }
 0x2c8   : > { %924 = vmatpush.bf16.msra.mxu3 %v919_v42 }
 0x2ca   : > { %1049 = vmatmul.msk.bf16.vlgmr.msrb.gmra.mxu2 %vm568_vm2, %v749_v44 }
 0x324   : > { %v598_v45 = vpop.f32.mrf.mxu2 }
 0x32c   : > { %v600_v46 = vpop.f32.mrf.mxu2 }
 0x337   : > { %v711_v47 = vpop.f32.mrf.mxu1 }
 0x33c   : > { %v655_v48 = vpop.f32.mrf.mxu2 }
 0x33d   : > { %772 = vrot.lane.b32.xlu0 %v655_v48, %s1472_s23  ;;  %v906_v48 = vld [vmem:[%s1463_s10 + $0x58] sm:$0xff]  ;;  %s476_s23 = scalar_lea.vmem %s1467_s14, %s1475_s18 }
 0x33f   : > { %v713_v49 = vpop.f32.mrf.mxu1 }
 0x344   : > { %v657_v50 = vpop.f32.mrf.mxu2 }
 0x345   : > { %776 = vrot.lane.b32.xlu0 %v711_v47, %s1473_s24  ;;  %v905_v47 = vld [vmem:[%s1463_s10 + $0x50] sm:$0xff]  ;;  %v903_v50 = vld [vmem:[%s1463_s10 + $0x40] sm:$0xff] }
 0x346   : > { %v917_v49 = vpack.c.bf16 %v906_v48, %v905_v47 }
 0x34d   : > { %v767_v51 = vpop.f32.mrf.mxu2 }
 0x34e   : > { %780 = vrot.lane.b32.xlu1 %v767_v51, %s1474_s28  ;;  %v904_v51 = vld [vmem:[%s1463_s10 + $0x48] sm:$0xff] }
 0x355   : > { %v769_v52 = vpop.f32.mrf.mxu2 }
 0x356   : > { %v916_v52 = vpack.c.bf16 %v904_v51, %v903_v50 }
 0x3af   : > { %v773_v1 = vpop.permute.xlu0 %772 }
 0x3b0   : > { %v783_v3 = vsel %vm548_vm1, %v598_v45, %v773_v1  ;;  %v918_v45 = vpack.c.bf16 %v908_v43, %v907_v40  ;;  %v1072_v1 = vld [vmem:[%s1459_s6] ss:$0 sm:$0xff] }
 0x3b2   : > { %925 = vmatpush.bf16.msra.mxu3 %v918_v45 }
 0x3b6   : > { %926 = vmatpush.bf16.msra.mxu3 %v917_v49 }
 0x3b7   : > { %v777_v2 = vpop.permute.xlu0 %776 }
 0x3b8   : > { %v785_v4 = vsel %vm784_vm4, %v783_v3, %v777_v2  ;;  %v1073_v3 = vld [vmem:[%s1460_s7] ss:$0 sm:$0xff] }
 0x3ba   : > { %927 = vmatpush.bf16.msra.mxu3 %v916_v52 }
 0x3be   : > { %928 = vmatpush.bf16.msra.mxu3 %v915_v58 }
 0x3c0   : > { %v781_v5 = vpop.permute.xlu1 %780 }
 0x3c1   : > { %v787_v6 = vsel %vm786_vm5, %v785_v4, %v781_v5 }
 0x3c2   : > { %v796_v7 = vpack.c.bf16 %v787_v6, %v787_v6  ;;  %929 = vmatpush.bf16.msra.mxu3 %v914_v63 }
 0x3c4   : > { %1050 = vmatmul.msk.bf16.vlgmr.msra.gmra.mxu0 %vm511_vm0, %v796_v7 }
 0x441   : > { %v817_v9 = vpop.f32.mrf.mxu0 }
 0x442   : > { %v818_v10 = vadd.f32 %v1071_v8, %v817_v9  ;;  %v897_v8 = vld [vmem:[%s1463_s10 + $0x10] sm:$0xff]  ;;  %v898_v9 = vld [vmem:[%s1463_s10 + $0x18] sm:$0xff] }
 0x444   : > { %v821_v11 = vadd.f32 %v818_v10, %v1231_v12  ;;  %v913_v10 = vpack.c.bf16 %v898_v9, %v897_v8 }
 0x446   : > { %v824_v13 = vsel %vm511_vm0, %v821_v11, 0.0  ;;  %930 = vmatpush.bf16.msra.mxu3 %v913_v10 }
 0x447   : > { %825 = vadd.xlane.f32.xlu0 %v824_v13  ;;  %v896_v13 = vld [vmem:[%s1463_s10 + $0x8] sm:$0xff] }
 0x449   : > { %v819_v14 = vpop.f32.mrf.mxu0 }
 0x4ba   : > { %v826_v22 = vpop.xlane.xlu0 %825 }
 0x4bb   : > { %v834_v23 = vmul.f32 %v1344_v21, %v826_v22  ;;  %v1075_v22 = vld [vmem:[%s1464_s11] ss:$0 sm:$0xff] }
 0x4bd   : > { %v835_v24 = vsub.f32 %v821_v11, %v834_v23  ;;  %v895_v11 = vld [vmem:[%s1463_s10] sm:$0xff] }
 0x4be   : > { %v912_v14 = vpack.c.bf16 %v896_v13, %v895_v11 }
 0x4bf   : > { %v836_v25 = vmul.f32 %v835_v24, %v835_v24 }
 0x4c0   : > { %931 = vmatpush.bf16.msra.mxu3 %v912_v14 }
 0x4c1   : > { %v837_v12 = vsel %vm511_vm0, %v836_v25, 0.0 }
 0x4c2   : > { %838 = vadd.xlane.f32.xlu2 %v837_v12 }
 0x535   : > { %v839_v41 = vpop.xlane.xlu2 %838 }
 0x536   : > { %v840_v44 = vmul.f32 %v839_v41, %v1344_v21  ;;  %v1076_v41 = vld [vmem:[%s1465_s12] ss:$0 sm:$0xff] }
 0x538   : > { %v841_v46 = vadd.f32 1e-12, %v840_v44 }
 0x53a   : > { %1096 = vrsqrt.f32 %v841_v46  ;;  %vm848_vm8 = vweird.f32 %v841_v46 }
 0x540   : > { %v1097_v53 = vpop.eup %1096 }
 0x541   : > { %v843_v56 = vmul.f32 %v1097_v53, %v841_v46  ;;  %vm849_vm7 = vweird.f32 %v1097_v53 }
 0x542   : > { %vm850_vm9 = vmor %vm848_vm8, %vm849_vm7 }
 0x543   : > { %v844_v57 = vmul.f32 %v1097_v53, %v843_v56 }
 0x545   : > { %v845_v61 = vmul.f32 0.5, %v844_v57 }
 0x547   : > { %v846_v62 = vsub.f32 1.5, %v845_v61 }
 0x549   : > { %v847_v0 = vmul.f32 %v1097_v53, %v846_v62 }
 0x54b   : > { %v851_v2 = vsel %vm850_vm9, %v1097_v53, %v847_v0 }
 0x54c   : > { %v852_v4 = vmul.f32 %v851_v2, %v835_v24 }
 0x54e   : > { %v856_v5 = vmul.f32 %v1072_v1, %v852_v4 }
 0x550   : > { %v860_v6 = vadd.f32 %v1073_v3, %v856_v5 }
 0x552   : > { %v869_v7 = vpack.c.bf16 %v860_v6, %v860_v6 }
 0x554   : > { %1051 = vmatmul.msk.bf16.vlgmr.msra.gmra.mxu1 %vm511_vm0, %v869_v7 }
 0x5d1   : > { %v890_v16 = vpop.f32.mrf.mxu1 }
 0x5d2   : > { %v891_v17 = vadd.f32 %v1074_v15, %v890_v16 }
 0x5d4   : > { %v894_v18 = vmax.f32 %v891_v17, 0.0 }
 0x5d6   : > { %v911_v19 = vpack.c.bf16 %v894_v18, %v894_v18 }
 0x5d8   : > { %932 = vmatmul.bf16.vlgmr.msra.gmra.mxu3 %v911_v19 }
 0x5d9   : > { %v892_v20 = vpop.f32.mrf.mxu1 }
 0x65b   : > { %v933_v23 = vpop.f32.mrf.mxu3 }
 0x65c   : > { %v934_v24 = vadd.f32 %v1075_v22, %v933_v23 }
 0x65e   : > { %v937_v25 = vadd.f32 %v934_v24, %v860_v6 }
 0x660   : > { %v940_v12 = vsel %vm511_vm0, %v937_v25, 0.0 }
 0x661   : > { %941 = vadd.xlane.f32.xlu1 %v940_v12 }
 0x663   : > { %v935_v26 = vpop.f32.mrf.mxu3 }
 0x6d4   : > { %v942_v27 = vpop.xlane.xlu1 %941 }
 0x6d5   : > { %v943_v28 = vmul.f32 %v942_v27, %v1344_v21 }
 0x6d7   : > { %v944_v29 = vsub.f32 %v937_v25, %v943_v28 }
 0x6d9   : > { %v945_v30 = vmul.f32 %v944_v29, %v944_v29 }
 0x6db   : > { %v946_v31 = vsel %vm511_vm0, %v945_v30, 0.0 }
 0x6dc   : > { %947 = vadd.xlane.f32.xlu0 %v946_v31 }
 0x74f   : > { %v948_v32 = vpop.xlane.xlu0 %947 }
 0x750   : > { %v949_v33 = vmul.f32 %v948_v32, %v1344_v21  ;;  %v1077_v21 = vld [vmem:[%s1466_s13] ss:$0 sm:$0xff] }
 0x752   : > { %v950_v34 = vadd.f32 1e-12, %v949_v33 }
 0x754   : > { %1098 = vrsqrt.f32 %v950_v34  ;;  %vm957_vm11 = vweird.f32 %v950_v34 }
 0x75a   : > { %v1099_v35 = vpop.eup %1098 }
 0x75b   : > { %v952_v36 = vmul.f32 %v1099_v35, %v950_v34  ;;  %vm958_vm10 = vweird.f32 %v1099_v35 }
 0x75c   : > { %vm959_vm12 = vmor %vm957_vm11, %vm958_vm10 }
 0x75d   : > { %v953_v37 = vmul.f32 %v1099_v35, %v952_v36 }
 0x75f   : > { %v954_v38 = vmul.f32 0.5, %v953_v37 }
 0x761   : > { %v955_v39 = vsub.f32 1.5, %v954_v38 }
 0x763   : > { %v956_v40 = vmul.f32 %v1099_v35, %v955_v39 }
 0x765   : > { %v960_v42 = vsel %vm959_vm12, %v1099_v35, %v956_v40 }
 0x766   : > { %v961_v43 = vmul.f32 %v960_v42, %v944_v29 }
 0x768   : > { %v965_v44 = vmul.f32 %v1076_v41, %v961_v43 }
 0x76a   : > { %v969_v45 = vadd.f32 %v1077_v21, %v965_v44 }
 0x76c   : > { %970 = vst.msk [vmem:[%s476_s23] sm:$0xff] %vm511_vm0, %v969_v45 }
 0x76d PF: > { %s24_s29 = sadd.s32 1, %s1106_s29  }
 0x76e   : > { %p21_p4 = scmp.ge.s32.totalorder %s24_s29, 4  }
 0x770   :  { %23 = sbr.rel (!%p21_p4) target bundleno = 1 (0x1), region = 109 }

// kernel: hierarchical_transformer.11
= control target key start
LH: loop header
LB: loop body
LE: loop exit
PB: predicated region body
PF: predicated region fallthrough
CT: control target
= control target key end

     0   :  { %vm34_vm0 = vcmask 523264   ;;  %s119_s1 = inlined_call_operand.vmem [shape: f32[64,128], index: 1, kind: input, shape index: {}]   ;;  %s120_s2 = inlined_call_operand.vmem [shape: f32[1,128], index: 2, kind: input, shape index: {}]   ;;  %s121_s0 = inlined_call_operand.vmem [shape: f32[16,64], index: 0, kind: input, shape index: {}]   ;;  %s122_s3 = inlined_call_operand.vmem [shape: f32[16,128], index: 3, kind: output, shape index: {}]  }
   0x1   :  { %v23_v0 = vld [vmem:[%s119_s1 + $0x30] sm:$0xff]  ;;  %v24_v1 = vld [vmem:[%s119_s1 + $0x38] sm:$0xff]  ;;  %v21_v2 = vld [vmem:[%s119_s1 + $0x20] sm:$0xff] }
   0x2   :  { %v29_v3 = vpack.c.bf16 %v24_v1, %v23_v0  ;;  %v22_v4 = vld [vmem:[%s119_s1 + $0x28] sm:$0xff]  ;;  %v19_v6 = vld [vmem:[%s119_s1 + $0x10] sm:$0xff]  ;;  %v20_v7 = vld [vmem:[%s119_s1 + $0x18] sm:$0xff] }
   0x3   :  { %v28_v5 = vpack.c.bf16 %v22_v4, %v21_v2  ;;  %v27_v8 = vpack.c.bf16 %v20_v7, %v19_v6  ;;  %v17_v9 = vld [vmem:[%s119_s1] sm:$0xff]  ;;  %v18_v10 = vld [vmem:[%s119_s1 + $0x8] sm:$0xff] }
   0x4   :  { %42 = vmatpush.bf16.msra.mxu0 %v29_v3  ;;  %v26_v11 = vpack.c.bf16 %v18_v10, %v17_v9  ;;  %v15_v12 = vld [vmem:[%s121_s0] sm:$0xff]  ;;  %v16_v13 = vld [vmem:[%s121_s0 + $0x8] sm:$0xff] }
   0x5   :  { %v25_v14 = vpack.c.bf16 %v16_v13, %v15_v12  ;;  %v59_v15 = vld [vmem:[%s120_s2] ss:$0 sm:$0xff] }
   0x8   :  { %43 = vmatpush.bf16.msra.mxu0 %v28_v5 }
   0xc   :  { %44 = vmatpush.bf16.msra.mxu0 %v27_v8 }
  0x10   :  { %45 = vmatpush.bf16.msra.mxu0 %v26_v11 }
  0x13   :  { %58 = vmatmul.msk.bf16.vlgmr.msra.gmra.mxu0 %vm34_vm0, %v25_v14 }
  0x90   :  { %v47_v16 = vpop.f32.mrf.mxu0 }
  0x91   :  { %v48_v17 = vadd.f32 %v59_v15, %v47_v16 }
  0x93   :  { %52 = vst [vmem:[%s122_s3] sm:$0xff] %v48_v17 }
  0x98   :  { %v49_v18 = vpop.f32.mrf.mxu0 }
  0x99   :  { %v50_v19 = vadd.f32 %v59_v15, %v49_v18 }
  0x9b   :  { %53 = vst [vmem:[%s122_s3 + $0x8] sm:$0xff] %v50_v19 }

// kernel: hierarchical_transformer.10
= control target key start
LH: loop header
LB: loop body
LE: loop exit
PB: predicated region body
PF: predicated region fallthrough
CT: control target
= control target key end

     0   :  { %s2410_s0 = inlined_call_operand.vmem [shape: f32[2,8,64], index: 0, kind: input, shape index: {}]   ;;  %s2411_s1 = inlined_call_operand.vmem [shape: f32[2,8,64], index: 1, kind: input, shape index: {}]   ;;  %s2412_s2 = inlined_call_operand.vmem [shape: f32[2,8,8], index: 2, kind: input, shape index: {}]   ;;  %s2413_s3 = inlined_call_operand.vmem [shape: f32[2,1,8], index: 3, kind: input, shape index: {}]   ;;  %s2414_s4 = inlined_call_operand.vmem [shape: f32[64,192], index: 4, kind: input, shape index: {}]   ;;  %s2415_s5 = inlined_call_operand.vmem [shape: f32[1,192], index: 5, kind: input, shape index: {}]   ;;  %s2416_s6 = inlined_call_operand.vmem [shape: f32[64,64], index: 6, kind: input, shape index: {}]   ;;  %s2417_s7 = inlined_call_operand.vmem [shape: f32[1,64], index: 7, kind: input, shape index: {}]   ;;  %s2418_s8 = inlined_call_operand.vmem [shape: f32[1,64], index: 8, kind: input, shape index: {}]   ;;  %s2419_s9 = inlined_call_operand.vmem [shape: f32[1,64], index: 9, kind: input, shape index: {}]   ;;  %s2420_s10 = inlined_call_operand.vmem [shape: f32[64,64], index: 10, kind: input, shape index: {}]   ;;  %s2421_s11 = inlined_call_operand.vmem [shape: f32[1,64], index: 11, kind: input, shape index: {}]   ;;  %s2422_s12 = inlined_call_operand.vmem [shape: f32[64,128], index: 12, kind: input, shape index: {}]   ;;  %s2423_s13 = inlined_call_operand.vmem [shape: f32[1,128], index: 13, kind: input, shape index: {}]   ;;  %s2424_s14 = inlined_call_operand.vmem [shape: f32[64,64], index: 14, kind: input, shape index: {}]   ;;  %s2425_s15 = inlined_call_operand.vmem [shape: f32[1,64], index: 15, kind: input, shape index: {}]   ;;  %s2426_s16 = inlined_call_operand.vmem [shape: f32[1,64], index: 16, kind: input, shape index: {}]   ;;  %s2427_s17 = inlined_call_operand.vmem [shape: f32[1,64], index: 17, kind: input, shape index: {}]   ;;  %s2428_s18 = inlined_call_operand.vmem [shape: f32[64,128], index: 18, kind: input, shape index: {}]   ;;  %s2429_s19 = inlined_call_operand.vmem [shape: f32[1,128], index: 19, kind: input, shape index: {}]   ;;  %s2430_s20 = inlined_call_operand.vmem [shape: f32[128,64], index: 20, kind: input, shape index: {}]   ;;  %s2431_s21 = inlined_call_operand.vmem [shape: f32[1,64], index: 21, kind: input, shape index: {}]   ;;  %s2432_s22 = inlined_call_operand.vmem [shape: f32[1,64], index: 22, kind: input, shape index: {}]   ;;  %s2433_s23 = inlined_call_operand.vmem [shape: f32[1,64], index: 23, kind: input, shape index: {}]   ;;  %s2434_s24 = inlined_call_operand.vmem [shape: f32[2,8,64], index: 24, kind: output, shape index: {}]  }
   0x1   :  { %2452 = sst [smem:[#allocation2_spill]] %s2410_s0 }
   0x2   :  { %2453 = sst [smem:[#allocation3_spill]] %s2411_s1 }
   0x3   :  { %2454 = sst [smem:[#allocation4_spill]] %s2412_s2 }
   0x4   :  { %2455 = sst [smem:[#allocation5_spill]] %s2413_s3 }
   0x5   :  { %2456 = sst [smem:[#allocation6_spill]] %s2414_s4 }
   0x6   :  { %2457 = sst [smem:[#allocation7_spill]] %s2415_s5  ;;  %s1978_s5 = smov 0  }
   0x7   :  { %2458 = sst [smem:[#allocation8_spill]] %s2416_s6 }
   0x8   :  { %2459 = sst [smem:[#allocation9_spill]] %s2417_s7 }
   0x9   :  { %2460 = sst [smem:[#allocation10_spill]] %s2418_s8 }
   0xa LB: > { %s1734_s26 = sadd.s32 4294967295, %s1843_s5   ;;  %p1738_p0 = scmp.ge.s32.totalorder %s1843_s5, 1  ;;  %s1843_s5 = sphi %s1978_s5, %s34_s5  }
   0xb   : > { %p687_p1 = scmp.lt.s32.totalorder %s1843_s5, 3 }
   0xd   : > { %p688_p2 = pnand %p1738_p0, %p687_p1 }
   0xe   : > { %s2461_s6 = sld [smem:[#allocation6_spill]] (!%p688_p2)  ;;  %p762_p3 = scmp.lt.s32.totalorder (!%p688_p2), %s1734_s26, 1 }
   0xf   : > { %691 = sbr.rel (%p688_p2) target bundleno = 3560 (0xde8), region = 116  ;;  %s2462_s3 = sld [smem:[#allocation2_spill]] (!%p688_p2) }
  0x10   : > { %s2463_s0 = sld [smem:[#allocation7_spill]] (!%p688_p2)  ;;  %s2440_s7 = smov (!%p688_p2), 96  }
  0x11   : > { %s2439_s30 = smov (!%p688_p2), 64   ;;  %s2464_s27 = sld [smem:[#allocation4_spill]] (!%p688_p2) }
  0x12   : > { %s2444_s2 = smov (!%p688_p2), 80   ;;  %s2448_s29 = smov (!%p688_p2), 112  }
  0x13   : > { %s2471_s4 = sld [smem:[#allocation5_spill]] (!%p688_p2) }
  0x14   : > { %v796_v0 = vld [vmem:[%s2461_s6 + $0x60] sm:$0xff]  ;;  %v798_v1 = vld [vmem:[%s2461_s6 + $0x70] sm:$0xff]  ;;  %s2478_s26 = smov (!%p762_p3, %s1734_s26), 1  ;;  %v797_v5 = vld [vmem:[%s2461_s6 + $0x68] sm:$0xff]  ;;  %vm815_vm0 = vcmask 523264   ;;  %vm887_vm1 = vcmask 1043456  }
  0x15   : > { %v792_v2 = vld [vmem:[%s2461_s6 + $0x40] sm:$0xff]  ;;  %v807_v3 = vpack.c.bf16 %v798_v1, %v796_v0  ;;  %v794_v4 = vld [vmem:[%s2461_s6 + $0x50] sm:$0xff]  ;;  %v799_v7 = vld [vmem:[%s2461_s6 + $0x78] sm:$0xff]  ;;  %s2019_s25 = sshll.u32 %s2478_s26, 3  ;;  %vm850_vm2 = vcmask 130048   ;;  %vm870_vm3 = vcmask 64512  }
  0x16   : > { %v805_v6 = vpack.c.bf16 %v794_v4, %v792_v2  ;;  %v793_v8 = vld [vmem:[%s2461_s6 + $0x48] sm:$0xff]  ;;  %v795_v9 = vld [vmem:[%s2461_s6 + $0x58] sm:$0xff]  ;;  %v788_v10 = vld [vmem:[%s2461_s6 + $0x20] sm:$0xff]  ;;  %v808_v12 = vpack.c.bf16 %v799_v7, %v797_v5  ;;  %s765_s8 = scalar_lea.vmem %s2462_s3, %s2019_s25  ;;  %s2437_s3 = smov 32   ;;  %vm1086_vm4 = vcmask 261120   ;;  %vm1088_vm5 = vcmask 392192  }
  0x17   : > { %823 = vmatpush.bf16.msra.mxu0 %v807_v3  ;;  %v790_v11 = vld [vmem:[%s2461_s6 + $0x30] sm:$0xff]  ;;  %v789_v13 = vld [vmem:[%s2461_s6 + $0x28] sm:$0xff]  ;;  %v784_v14 = vld [vmem:[%s2461_s6] sm:$0xff]  ;;  %v806_v16 = vpack.c.bf16 %v795_v9, %v793_v8  ;;  %s773_s28 = scalar_lea.vmem %s2464_s27, %s2019_s25  ;;  %s2465_s27 = sld [smem:[#allocation8_spill]] }
  0x18   : > { %v786_v15 = vld [vmem:[%s2461_s6 + $0x10] sm:$0xff]  ;;  %836 = vmatpush.bf16.msra.mxu1 %v808_v12  ;;  %v791_v17 = vld [vmem:[%s2461_s6 + $0x38] sm:$0xff]  ;;  %v803_v18 = vpack.c.bf16 %v790_v11, %v788_v10  ;;  %v2037_v21 = vld [vmem:[%s765_s8] sm:$0xff]  ;;  %s2446_s8 = smov 48  }
  0x19   : > { %v804_v19 = vpack.c.bf16 %v791_v17, %v789_v13  ;;  %v801_v20 = vpack.c.bf16 %v786_v15, %v784_v14  ;;  %v800_v22 = vpack.c.bf16 %v2037_v21, %v2037_v21  ;;  %v785_v23 = vld [vmem:[%s2461_s6 + $0x8] sm:$0xff]  ;;  %v787_v24 = vld [vmem:[%s2461_s6 + $0x18] sm:$0xff]  ;;  %v809_v26 = vld [vmem:[%s2463_s0] sm:$0x3]  ;;  %s2442_s0 = smov 16   ;;  %s2467_s6 = sld [smem:[#allocation3_spill]] }
  0x1a   : > { %v802_v25 = vpack.c.bf16 %v787_v24, %v785_v23  ;;  %v811_v27 = vperm.slane %v809_v26, 0  ;;  %v812_v32 = vperm.slane %v809_v26, 1  ;;  %v2073_v45 = vld [vmem:[%s773_s28] sm:$0xff]  ;;  %s776_s1 = scalar_lea.vmem %s2471_s4, %s2478_s26  ;;  %s2472_s28 = smov 96  }
  0x1b   : > { %824 = vmatpush.bf16.msra.mxu0 %v805_v6  ;;  %s2473_s26 = smov 64  }
  0x1c   : > { %837 = vmatpush.bf16.msra.mxu1 %v806_v16 }
  0x1f   : > { %825 = vmatpush.bf16.msra.mxu0 %v803_v18 }
  0x20   : > { %838 = vmatpush.bf16.msra.mxu1 %v804_v19 }
  0x23   : > { %826 = vmatpush.bf16.msra.mxu0 %v801_v20 }
  0x24   : > { %839 = vmatpush.bf16.msra.mxu1 %v802_v25 }
  0x26   : > { %1743 = vmatmul.msk.bf16.vlgmr.msra.gmra.mxu0 %vm815_vm0, %v800_v22 }
  0x27   : > { %1744 = vmatmul.msk.bf16.vlgmr.msra.gmra.mxu1 %vm815_vm0, %v800_v22 }
  0xa3   : > { %v828_v28 = vpop.f32.mrf.mxu0 }
  0xa4   : > { %v829_v29 = vadd.f32 %v828_v28, %v811_v27  ;;  %v841_v33 = vpop.f32.mrf.mxu1 }
  0xa5   : > { %v842_v34 = vadd.f32 %v841_v33, %v812_v32 }
  0xa6   : > { %v2052_v30 = vpack.c.bf16 %v829_v29, %v829_v29 }
  0xa7   : > { %v883_v35 = vpack.c.bf16 %v842_v34, %v842_v34 }
  0xa8   : > { %961 = vrot.lane.b32.xlu1 %v2052_v30, %s2440_s7  ;;  %848 = vrot.lane.b32.xlu0 %v2052_v30, %s2439_s30  ;;  %s2476_s30 = smov 16  }
  0xa9   : > { %v889_v36 = vsel %vm887_vm1, %v883_v35, 0 }
  0xaa   : > { %898 = vmatpush.bf16.msra.mxu3 %v889_v36 }
  0xab   : > { %v830_v31 = vpop.f32.mrf.mxu0 }
  0xac   : > { %v843_v37 = vpop.f32.mrf.mxu1 }
  0xb0   : > { %963 = vrot.lane.b32.xlu0 %v2052_v30, %s2437_s3 }
  0xb8   : > { %906 = vrot.lane.b32.xlu0 %v2052_v30, %s2446_s8 }
 0x11a   : > { %v849_v38 = vpop.permute.xlu0 %848  ;;  %v962_v42 = vpop.permute.xlu1 %961 }
 0x11b   : > { %v855_v39 = vsel %vm850_vm2, %v849_v38, 0 }
 0x11c   : > { %864 = vmatpush.bf16.xpose.msra.mxu2 %v855_v39 }
 0x122   : > { %v964_v40 = vpop.permute.xlu0 %963 }
 0x123   : > { %1745 = vmatmul.msk.bf16.vlgmr.msra.gmra.mxu2 %vm850_vm2, %v2052_v30  ;;  %v969_v41 = vsel %vm850_vm2, %v964_v40, 0 }
 0x124   : > { %978 = vmatpush.bf16.xpose.msrb.mxu0 %v969_v41 }
 0x12a   : > { %v907_v43 = vpop.permute.xlu0 %906 }
 0x12b   : > { %1749 = vmatmul.msk.bf16.vlgmr.msrb.gmra.mxu0 %vm850_vm2, %v962_v42  ;;  %v912_v44 = vsel %vm850_vm2, %v907_v43, 0 }
 0x12c   : > { %921 = vmatpush.bf16.xpose.msrb.mxu3 %v912_v44 }
 0x1a6   : > { %v866_v46 = vpop.f32.mrf.mxu2 }
 0x1a7   : > { %v867_v47 = vadd.f32 %v866_v46, %v2073_v45 }
 0x1a8   : > { %v980_v48 = vpop.f32.mrf.mxu0 }
 0x1a9   : > { %v981_v49 = vadd.f32 %v980_v48, %v2073_v45  ;;  %v871_v50 = vsel %vm870_vm3, %v867_v47, -inf }
 0x1aa   : > { %872 = vmax.xlane.f32.xlu1 %v871_v50 }
 0x1ab   : > { %v984_v51 = vsel %vm870_vm3, %v981_v49, -inf }
 0x1ac   : > { %985 = vmax.xlane.f32.xlu2 %v984_v51  ;;  %v1096_v51 = vld [vmem:[%s2465_s27 + $0x30] sm:$0xff] }
 0x1ae   : > { %v868_v52 = vpop.f32.mrf.mxu2 }
 0x1af   : > { %v1097_v52 = vld [vmem:[%s2465_s27 + $0x38] sm:$0xff] }
 0x1b0   : > { %v982_v53 = vpop.f32.mrf.mxu0 }
 0x1b1   : > { %v1102_v53 = vpack.c.bf16 %v1097_v52, %v1096_v51 }
 0x1b3   : > { %1114 = vmatpush.bf16.msra.mxu0 %v1102_v53 }
 0x1c3   : > { %1017 = vrot.lane.b32.xlu1 %v2052_v30, %s2444_s2 }
 0x1c4   : > { %904 = vrot.lane.b32.xlu2 %v2052_v30, %s2448_s29 }
 0x1cb   : > { %940 = vrot.lane.b32.xlu1 %v883_v35, %s2448_s29  ;;  %s2466_s29 = sld [smem:[#allocation9_spill]] }
 0x1d3   : > { %1052 = vrot.lane.b32.xlu1 %v883_v35, %s2444_s2  ;;  %s2470_s2 = smov 80  }
 0x21d   : > { %v873_v54 = vpop.xlane.xlu1 %872 }
 0x21e   : > { %v874_v55 = vsub.f32 %v867_v47, %v873_v54 }
 0x21f   : > { %v986_v56 = vpop.xlane.xlu2 %985 }
 0x220   : > { %v875_v57 = vmul.f32 1.442695, %v874_v55  ;;  %v987_v58 = vsub.f32 %v981_v49, %v986_v56  ;;  %v1094_v56 = vld [vmem:[%s2465_s27 + $0x20] sm:$0xff] }
 0x222   : > { %1797 = vpow2.f32 %v875_v57  ;;  %v988_v59 = vmul.f32 1.442695, %v987_v58  ;;  %v1095_v57 = vld [vmem:[%s2465_s27 + $0x28] sm:$0xff] }
 0x223   : > { %v1101_v58 = vpack.c.bf16 %v1095_v57, %v1094_v56 }
 0x224   : > { %1799 = vpow2.f32 %v988_v59  ;;  %v1092_v59 = vld [vmem:[%s2465_s27 + $0x10] sm:$0xff] }
 0x225   : > { %1115 = vmatpush.bf16.msra.mxu0 %v1101_v58 }
 0x227   : > { %v905_v0 = vpop.permute.xlu2 %904 }
 0x228   : > { %v1798_v60 = vpop.eup %1797 }
 0x229   : > { %v877_v61 = vsel %vm870_vm3, %v1798_v60, 0.0 }
 0x22a   : > { %v1800_v62 = vpop.eup %1799  ;;  %878 = vadd.xlane.f32.xlu2 %v877_v61 }
 0x22b   : > { %v990_v63 = vsel %vm870_vm3, %v1800_v62, 0.0 }
 0x22c   : > { %991 = vadd.xlane.f32.xlu0 %v990_v63  ;;  %v1091_v63 = vld [vmem:[%s2465_s27 + $0x8] sm:$0xff] }
 0x235   : > { %v1018_v5 = vpop.permute.xlu1 %1017 }
 0x23d   : > { %v941_v8 = vpop.permute.xlu1 %940 }
 0x23e   : > { %v946_v13 = vsel %vm887_vm1, %v941_v8, 0  ;;  %v1784_v8 = vld [vmem:[%s2466_s29] ss:$0 sm:$0xff]  ;;  %s780_s29 = scalar_lea.vmem %s2434_s24, %s2019_s25 }
 0x23f   : > { %955 = vmatpush.bf16.msrb.mxu2 %v946_v13 }
 0x242   : > { %996 = vrot.lane.b32.xlu2 %v883_v35, %s2440_s7  ;;  %s2475_s7 = smov 48  }
 0x245   : > { %v1053_v12 = vpop.permute.xlu1 %1052 }
 0x246   : > { %v1058_v14 = vsel %vm887_vm1, %v1053_v12, 0 }
 0x247   : > { %1067 = vmatpush.bf16.msra.mxu2 %v1058_v14  ;;  %v1852_v14 = vmov 64.0  }
 0x24a   : > { %1019 = vrot.lane.b32.xlu2 %v2052_v30, %s2442_s0 }
 0x29d   : > { %v879_v1 = vpop.xlane.xlu2 %878 }
 0x29e   : > { %1801 = vrcp.f32 %v879_v1 }
 0x29f   : > { %v992_v10 = vpop.xlane.xlu0 %991 }
 0x2a0   : > { %1803 = vrcp.f32 %v992_v10 }
 0x2a4   : > { %v1802_v2 = vpop.eup %1801 }
 0x2a5   : > { %v881_v3 = vmul.f32 %v1802_v2, %v1798_v60  ;;  %v997_v4 = vpop.permute.xlu2 %996  ;;  %v1093_v60 = vld [vmem:[%s2465_s27 + $0x18] sm:$0xff] }
 0x2a6   : > { %v1002_v6 = vsel %vm887_vm1, %v997_v4, 0  ;;  %v1804_v15 = vpop.eup %1803  ;;  %v1100_v61 = vpack.c.bf16 %v1093_v60, %v1092_v59 }
 0x2a7   : > { %v882_v7 = vpack.c.bf16 %v881_v3, %v881_v3  ;;  %v994_v16 = vmul.f32 %v1804_v15, %v1800_v62  ;;  %v1090_v62 = vld [vmem:[%s2465_s27] sm:$0xff]  ;;  %v1202_v15 = vld [vmem:[%s2422_s12 + $0x30] sm:$0xff]  ;;  %s769_s27 = scalar_lea.vmem %s2467_s6, %s2019_s25  ;;  %s2468_s6 = sld [smem:[#allocation10_spill]] }
 0x2a8   : > { %1116 = vmatpush.bf16.msra.mxu0 %v1100_v61 }
 0x2a9   : > { %1746 = vmatmul.msk.bf16.vlgmr.msra.gmra.mxu3 %vm870_vm3, %v882_v7  ;;  %v995_v17 = vpack.c.bf16 %v994_v16, %v994_v16  ;;  %v1203_v16 = vld [vmem:[%s2422_s12 + $0x38] sm:$0xff] }
 0x2aa   : > { %1011 = vmatpush.bf16.msra.mxu3 %v1002_v6 }
 0x2ad   : > { %v1020_v9 = vpop.permute.xlu2 %1019  ;;  %v1785_v61 = vld [vmem:[%s2468_s6] ss:$0 sm:$0xff] }
 0x2ae   : > { %v1025_v11 = vsel %vm850_vm2, %v1020_v9, 0 }
 0x2b9   : > { %1747 = vmatmul.msk.bf16.vlgmr.msrb.gmra.mxu3 %vm850_vm2, %v905_v0  ;;  %v1099_v0 = vpack.c.bf16 %v1091_v63, %v1090_v62 }
 0x2ba   : > { %1034 = vmatpush.bf16.xpose.msrb.mxu3 %v1025_v11 }
 0x2bb   : > { %1117 = vmatpush.bf16.msra.mxu0 %v1099_v0  ;;  %v1786_v0 = vld [vmem:[%s2419_s9] ss:$0 sm:$0xff] }
 0x2c9   : > { %1750 = vmatmul.msk.bf16.vlgmr.msra.gmra.mxu3 %vm870_vm3, %v995_v17  ;;  %v1200_v17 = vld [vmem:[%s2422_s12 + $0x20] sm:$0xff] }
 0x2d9   : > { %1751 = vmatmul.msk.bf16.vlgmr.msrb.gmra.mxu3 %vm850_vm2, %v1018_v5 }
 0x32c   : > { %v2098_v18 = vpop.f32.mrf.mxu3 }
 0x334   : > { %v902_v19 = vpop.f32.mrf.mxu3 }
 0x33c   : > { %v923_v20 = vpop.f32.mrf.mxu3 }
 0x33d   : > { %v924_v22 = vadd.f32 %v923_v20, %v2073_v45 }
 0x33f   : > { %v927_v23 = vsel %vm870_vm3, %v924_v22, -inf }
 0x340   : > { %928 = vmax.xlane.f32.xlu2 %v927_v23 }
 0x344   : > { %v925_v24 = vpop.f32.mrf.mxu3 }
 0x34c   : > { %v1013_v25 = vpop.f32.mrf.mxu3 }
 0x34d   : > { %1078 = vrot.lane.b32.xlu1 %v1013_v25, %s2437_s3 }
 0x354   : > { %v1015_v26 = vpop.f32.mrf.mxu3 }
 0x35c   : > { %v1036_v27 = vpop.f32.mrf.mxu3 }
 0x35d   : > { %v1037_v28 = vadd.f32 %v1036_v27, %v2073_v45 }
 0x35f   : > { %v1040_v29 = vsel %vm870_vm3, %v1037_v28, -inf }
 0x360   : > { %1041 = vmax.xlane.f32.xlu0 %v1040_v29 }
 0x364   : > { %v1038_v30 = vpop.f32.mrf.mxu3 }
 0x3b3   : > { %v929_v31 = vpop.xlane.xlu2 %928 }
 0x3b4   : > { %v930_v32 = vsub.f32 %v924_v22, %v929_v31 }
 0x3b6   : > { %v931_v33 = vmul.f32 1.442695, %v930_v32  ;;  %v1198_v32 = vld [vmem:[%s2422_s12 + $0x10] sm:$0xff] }
 0x3b8   : > { %1805 = vpow2.f32 %v931_v33  ;;  %v1199_v33 = vld [vmem:[%s2422_s12 + $0x18] sm:$0xff] }
 0x3be   : > { %v1806_v34 = vpop.eup %1805 }
 0x3bf   : > { %v933_v35 = vsel %vm870_vm3, %v1806_v34, 0.0  ;;  %v1079_v3 = vpop.permute.xlu1 %1078 }
 0x3c0   : > { %934 = vadd.xlane.f32.xlu0 %v933_v35  ;;  %v1196_v35 = vld [vmem:[%s2422_s12] sm:$0xff] }
 0x3d3   : > { %v1042_v36 = vpop.xlane.xlu0 %1041 }
 0x3d4   : > { %v1043_v37 = vsub.f32 %v1037_v28, %v1042_v36  ;;  %v1197_v36 = vld [vmem:[%s2422_s12 + $0x8] sm:$0xff] }
 0x3d6   : > { %v1044_v38 = vmul.f32 1.442695, %v1043_v37  ;;  %v1205_v37 = vpack.c.bf16 %v1197_v36, %v1196_v35 }
 0x3d8   : > { %1807 = vpow2.f32 %v1044_v38  ;;  %v783_v38 = vld [vmem:[%s769_s27] sm:$0xff]  ;;  %s2474_s27 = smov 32  }
 0x3de   : > { %v1808_v39 = vpop.eup %1807 }
 0x3df   : > { %v1046_v40 = vsel %vm870_vm3, %v1808_v39, 0.0 }
 0x3e0   : > { %1047 = vadd.xlane.f32.xlu0 %v1046_v40  ;;  %v1169_v40 = vld [vmem:[%s2420_s10 + $0x30] sm:$0xff] }
 0x433   : > { %v935_v41 = vpop.xlane.xlu0 %934 }
 0x434   : > { %1809 = vrcp.f32 %v935_v41  ;;  %v1170_v41 = vld [vmem:[%s2420_s10 + $0x38] sm:$0xff] }
 0x43a   : > { %v1810_v42 = vpop.eup %1809 }
 0x43b   : > { %v937_v43 = vmul.f32 %v1810_v42, %v1806_v34  ;;  %v1206_v34 = vpack.c.bf16 %v1199_v33, %v1198_v32  ;;  %v1175_v42 = vpack.c.bf16 %v1170_v41, %v1169_v40 }
 0x43d   : > { %v938_v44 = vpack.c.bf16 %v937_v43, %v937_v43  ;;  %1187 = vmatpush.bf16.msrb.mxu1 %v1175_v42  ;;  %v1167_v43 = vld [vmem:[%s2420_s10 + $0x20] sm:$0xff] }
 0x43f   : > { %1748 = vmatmul.msk.bf16.vlgmr.msrb.gmra.mxu2 %vm870_vm3, %v938_v44  ;;  %v1168_v44 = vld [vmem:[%s2420_s10 + $0x28] sm:$0xff] }
 0x453   : > { %v1048_v45 = vpop.xlane.xlu0 %1047 }
 0x454   : > { %1811 = vrcp.f32 %v1048_v45  ;;  %v1174_v45 = vpack.c.bf16 %v1168_v44, %v1167_v43 }
 0x455   : > { %1813 = vrcp.f32 %v1852_v14 }
 0x456   : > { %1188 = vmatpush.bf16.msrb.mxu1 %v1174_v45 }
 0x45a   : > { %v1812_v46 = vpop.eup %1811 }
 0x45b   : > { %v1050_v47 = vmul.f32 %v1812_v46, %v1808_v39  ;;  %v1814_v19 = vpop.eup %1813  ;;  %v1204_v39 = vpack.c.bf16 %v783_v38, %v783_v38  ;;  %v1165_v46 = vld [vmem:[%s2420_s10 + $0x10] sm:$0xff] }
 0x45c   : > { %v1130_v22 = vmul.f32 64.0, %v1814_v19  ;;  %vm1134_vm6 = vweird.f32 %v1814_v19 }
 0x45d   : > { %v1051_v48 = vpack.c.bf16 %v1050_v47, %v1050_v47  ;;  %v1166_v47 = vld [vmem:[%s2420_s10 + $0x18] sm:$0xff] }
 0x45e   : > { %v1131_v23 = vsub.f32 1.0, %v1130_v22 }
 0x45f   : > { %1752 = vmatmul.msk.bf16.vlgmr.msra.gmra.mxu2 %vm870_vm3, %v1051_v48  ;;  %v1173_v48 = vpack.c.bf16 %v1166_v47, %v1165_v46 }
 0x460   : > { %v1132_v24 = vmul.f32 %v1814_v19, %v1131_v23 }
 0x461   : > { %1189 = vmatpush.bf16.msrb.mxu1 %v1173_v48 }
 0x462   : > { %v1133_v25 = vadd.f32 %v1814_v19, %v1132_v24  ;;  %v1789_v24 = vld [vmem:[%s776_s1] ss:$0 sm:$0xff] }
 0x464   : > { %v2157_v26 = vsel %vm1134_vm6, %v1814_v19, %v1133_v25 }
 0x4c2   : > { %v957_v49 = vpop.f32.mrf.mxu2 }
 0x4c3   : > { %1074 = vrot.lane.b32.xlu0 %v957_v49, %s2442_s0  ;;  %v1163_v49 = vld [vmem:[%s2420_s10] sm:$0xff] }
 0x4ca   : > { %v959_v50 = vpop.f32.mrf.mxu2 }
 0x4cb   : > { %v1164_v50 = vld [vmem:[%s2420_s10 + $0x8] sm:$0xff] }
 0x4cc   : > { %v1172_v51 = vpack.c.bf16 %v1164_v50, %v1163_v49 }
 0x4ce   : > { %1190 = vmatpush.bf16.msrb.mxu1 %v1172_v51 }
 0x4e2   : > { %v1069_v54 = vpop.f32.mrf.mxu2 }
 0x4e3   : > { %1082 = vrot.lane.b32.xlu2 %v1069_v54, %s2446_s8  ;;  %s2469_s8 = smov 112  }
 0x4ea   : > { %v1071_v55 = vpop.f32.mrf.mxu2 }
 0x535   : > { %v1075_v1 = vpop.permute.xlu0 %1074 }
 0x536   : > { %v1085_v2 = vsel %vm850_vm2, %v2098_v18, %v1075_v1  ;;  %v1208_v18 = vpack.c.bf16 %v1203_v16, %v1202_v15 }
 0x537   : > { %v1087_v5 = vsel %vm1086_vm4, %v1085_v2, %v1079_v3 }
 0x538   : > { %1220 = vmatpush.bf16.msra.mxu3 %v1208_v18 }
 0x53d   : > { %v1083_v4 = vpop.permute.xlu2 %1082 }
 0x53e   : > { %v1089_v6 = vsel %vm1088_vm5, %v1087_v5, %v1083_v4  ;;  %v1787_v4 = vld [vmem:[%s2423_s13] ss:$0 sm:$0xff] }
 0x53f   : > { %v1098_v7 = vpack.c.bf16 %v1089_v6, %v1089_v6 }
 0x541   : > { %1753 = vmatmul.msk.bf16.vlgmr.msra.gmra.mxu0 %vm815_vm0, %v1098_v7 }
 0x5be   : > { %v1119_v9 = vpop.f32.mrf.mxu0 }
 0x5bf   : > { %v1120_v10 = vadd.f32 %v1784_v8, %v1119_v9 }
 0x5c1   : > { %v1123_v11 = vadd.f32 %v1120_v10, %v2037_v21  ;;  %v1201_v21 = vld [vmem:[%s2422_s12 + $0x28] sm:$0xff]  ;;  %v1788_v10 = vld [vmem:[%s2421_s11] ss:$0 sm:$0xff] }
 0x5c2   : > { %v1207_v20 = vpack.c.bf16 %v1201_v21, %v1200_v17 }
 0x5c3   : > { %v1126_v12 = vsel %vm815_vm0, %v1123_v11, 0.0 }
 0x5c4   : > { %1127 = vadd.xlane.f32.xlu1 %v1126_v12  ;;  %1221 = vmatpush.bf16.msra.mxu3 %v1207_v20 }
 0x5c6   : > { %v1121_v13 = vpop.f32.mrf.mxu0 }
 0x5c8   : > { %1222 = vmatpush.bf16.msra.mxu3 %v1206_v34 }
 0x5cc   : > { %1223 = vmatpush.bf16.msra.mxu3 %v1205_v37 }
 0x5cf   : > { %1755 = vmatmul.msk.bf16.vlgmr.msra.gmra.mxu3 %vm815_vm0, %v1204_v39 }
 0x637   : > { %v1128_v27 = vpop.xlane.xlu1 %1127 }
 0x638   : > { %v1136_v28 = vmul.f32 %v2157_v26, %v1128_v27 }
 0x63a   : > { %v1137_v29 = vsub.f32 %v1123_v11, %v1136_v28 }
 0x63c   : > { %v1138_v30 = vmul.f32 %v1137_v29, %v1137_v29 }
 0x63e   : > { %v1139_v31 = vsel %vm815_vm0, %v1138_v30, 0.0 }
 0x63f   : > { %1140 = vadd.xlane.f32.xlu0 %v1139_v31 }
 0x652   : > { %v1225_v5 = vpop.f32.mrf.mxu3 }
 0x653   : > { %v1226_v6 = vadd.f32 %v1787_v4, %v1225_v5 }
 0x655   : > { %v2217_v7 = vpack.c.bf16 %v1226_v6, %v1226_v6 }
 0x657   : > { %1291 = vrot.lane.b32.xlu2 %v2217_v7, %s2469_s8  ;;  %1403 = vrot.lane.b32.xlu1 %v2217_v7, %s2470_s2  ;;  %v1239_v8 = vsel %vm850_vm2, %v2217_v7, 0 }
 0x658   : > { %1248 = vmatpush.bf16.xpose.msrb.mxu2 %v1239_v8 }
 0x65a   : > { %v1227_v9 = vpop.f32.mrf.mxu3 }
 0x6b1   : > { %v1292_v15 = vpop.permute.xlu2 %1291 }
 0x6b2   : > { %v1141_v52 = vpop.xlane.xlu0 %1140  ;;  %v1297_v16 = vsel %vm850_vm2, %v1292_v15, 0 }
 0x6b3   : > { %v1142_v53 = vmul.f32 %v1141_v52, %v2157_v26  ;;  %1306 = vmatpush.bf16.xpose.msra.mxu1 %v1297_v16 }
 0x6b5   : > { %v1143_v54 = vadd.f32 1e-12, %v1142_v53 }
 0x6b7   : > { %1815 = vrsqrt.f32 %v1143_v54  ;;  %vm1150_vm8 = vweird.f32 %v1143_v54 }
 0x6bd   : > { %v1816_v55 = vpop.eup %1815 }
 0x6be   : > { %v1145_v56 = vmul.f32 %v1816_v55, %v1143_v54  ;;  %vm1151_vm7 = vweird.f32 %v1816_v55 }
 0x6bf   : > { %vm1152_vm9 = vmor %vm1150_vm8, %vm1151_vm7 }
 0x6c0   : > { %v1146_v57 = vmul.f32 %v1816_v55, %v1145_v56 }
 0x6c2   : > { %v1147_v58 = vmul.f32 0.5, %v1146_v57 }
 0x6c4   : > { %v1148_v59 = vsub.f32 1.5, %v1147_v58 }
 0x6c6   : > { %v1149_v60 = vmul.f32 %v1816_v55, %v1148_v59 }
 0x6c8   : > { %v1153_v62 = vsel %vm1152_vm9, %v1816_v55, %v1149_v60 }
 0x6c9   : > { %v1154_v63 = vmul.f32 %v1153_v62, %v1137_v29  ;;  %v1404_v17 = vpop.permute.xlu1 %1403 }
 0x6ca   : > { %v1409_v18 = vsel %vm850_vm2, %v1404_v17, 0 }
 0x6cb   : > { %v1158_v1 = vmul.f32 %v1785_v61, %v1154_v63 }
 0x6cd   : > { %v2209_v2 = vadd.f32 %v1786_v0, %v1158_v1 }
 0x6cf   : > { %v1171_v3 = vpack.c.bf16 %v2209_v2, %v2209_v2 }
 0x6d1   : > { %1754 = vmatmul.msk.bf16.vlgmr.msrb.gmra.mxu1 %vm815_vm0, %v1171_v3 }
 0x6d2   : > { %1418 = vmatpush.bf16.xpose.msrb.mxu1 %v1409_v18 }
 0x74e   : > { %v1192_v11 = vpop.f32.mrf.mxu1 }
 0x74f   : > { %v1193_v12 = vadd.f32 %v1788_v10, %v1192_v11 }
 0x751   : > { %v1230_v13 = vpack.c.bf16 %v1193_v12, %v1193_v12 }
 0x753   : > { %1401 = vrot.lane.b32.xlu0 %v1230_v13, %s2470_s2  ;;  %1289 = vrot.lane.b32.xlu2 %v1230_v13, %s2469_s8 }
 0x754   : > { %1756 = vmatmul.msk.bf16.vlgmr.msrb.gmra.mxu2 %vm850_vm2, %v1230_v13 }
 0x756   : > { %v1194_v14 = vpop.f32.mrf.mxu1 }
 0x75b   : > { %1347 = vrot.lane.b32.xlu2 %v2217_v7, %s2472_s28 }
 0x763   : > { %1345 = vrot.lane.b32.xlu2 %v1230_v13, %s2472_s28 }
 0x7ad   : > { %v1290_v21 = vpop.permute.xlu2 %1289 }
 0x7ae   : > { %1758 = vmatmul.msk.bf16.vlgmr.msra.gmra.mxu1 %vm850_vm2, %v1290_v21 }
 0x7b5   : > { %v1348_v19 = vpop.permute.xlu2 %1347 }
 0x7b6   : > { %v1353_v20 = vsel %vm850_vm2, %v1348_v19, 0 }
 0x7b7   : > { %1362 = vmatpush.bf16.xpose.msra.mxu2 %v1353_v20 }
 0x7bd   : > { %v1346_v22 = vpop.permute.xlu2 %1345 }
 0x7be   : > { %1760 = vmatmul.msk.bf16.vlgmr.msra.gmra.mxu2 %vm850_vm2, %v1346_v22 }
 0x7c5   : > { %v1402_v23 = vpop.permute.xlu0 %1401 }
 0x7c6   : > { %1762 = vmatmul.msk.bf16.vlgmr.msrb.gmra.mxu1 %vm850_vm2, %v1402_v23 }
 0x7d7   : > { %v1250_v25 = vpop.f32.mrf.mxu2 }
 0x7d8   : > { %v1251_v27 = vadd.f32 %v1789_v24, %v1250_v25 }
 0x7da   : > { %v1254_v28 = vsel %vm870_vm3, %v1251_v27, -inf }
 0x7db   : > { %1255 = vmax.xlane.f32.xlu1 %v1254_v28 }
 0x7df   : > { %v1252_v29 = vpop.f32.mrf.mxu2 }
 0x82b   : > { %v1308_v30 = vpop.f32.mrf.mxu1 }
 0x82c   : > { %v1309_v31 = vadd.f32 %v1789_v24, %v1308_v30 }
 0x82e   : > { %v1312_v32 = vsel %vm870_vm3, %v1309_v31, -inf }
 0x82f   : > { %1313 = vmax.xlane.f32.xlu2 %v1312_v32  ;;  %v1478_v32 = vld [vmem:[%s2424_s14 + $0x30] sm:$0xff] }
 0x833   : > { %v1310_v33 = vpop.f32.mrf.mxu1 }
 0x834   : > { %v1479_v33 = vld [vmem:[%s2424_s14 + $0x38] sm:$0xff] }
 0x841   : > { %v1364_v34 = vpop.f32.mrf.mxu2 }
 0x842   : > { %v1365_v35 = vadd.f32 %v1789_v24, %v1364_v34  ;;  %v1476_v34 = vld [vmem:[%s2424_s14 + $0x20] sm:$0xff] }
 0x843   : > { %v1420_v36 = vpop.f32.mrf.mxu1 }
 0x844   : > { %v1421_v37 = vadd.f32 %v1789_v24, %v1420_v36  ;;  %v1368_v38 = vsel %vm870_vm3, %v1365_v35, -inf  ;;  %v1477_v36 = vld [vmem:[%s2424_s14 + $0x28] sm:$0xff] }
 0x845   : > { %1369 = vmax.xlane.f32.xlu2 %v1368_v38  ;;  %v1474_v38 = vld [vmem:[%s2424_s14 + $0x10] sm:$0xff] }
 0x846   : > { %v1424_v39 = vsel %vm870_vm3, %v1421_v37, -inf }
 0x847   : > { %1425 = vmax.xlane.f32.xlu0 %v1424_v39  ;;  %v1475_v39 = vld [vmem:[%s2424_s14 + $0x18] sm:$0xff] }
 0x849   : > { %v1366_v40 = vpop.f32.mrf.mxu2 }
 0x84a   : > { %v1482_v40 = vpack.c.bf16 %v1475_v39, %v1474_v38  ;;  %v1791_v38 = vld [vmem:[%s2426_s16] ss:$0 sm:$0xff] }
 0x84b   : > { %v1422_v41 = vpop.f32.mrf.mxu1 }
 0x84c   : > { %v1472_v41 = vld [vmem:[%s2424_s14] sm:$0xff] }
 0x84e   : > { %v1256_v42 = vpop.xlane.xlu1 %1255 }
 0x84f   : > { %v1257_v43 = vsub.f32 %v1251_v27, %v1256_v42  ;;  %v1473_v42 = vld [vmem:[%s2424_s14 + $0x8] sm:$0xff] }
 0x851   : > { %v1258_v44 = vmul.f32 1.442695, %v1257_v43  ;;  %v1481_v43 = vpack.c.bf16 %v1473_v42, %v1472_v41 }
 0x853   : > { %1817 = vpow2.f32 %v1258_v44 }
 0x859   : > { %v1818_v45 = vpop.eup %1817 }
 0x85a   : > { %v1260_v46 = vsel %vm870_vm3, %v1818_v45, 0.0 }
 0x85b   : > { %1261 = vadd.xlane.f32.xlu1 %v1260_v46  ;;  %1267 = vrot.lane.b32.xlu0 %v2217_v7, %s2473_s26 }
 0x863   : > { %1380 = vrot.lane.b32.xlu0 %v2217_v7, %s2474_s27 }
 0x8a2   : > { %v1314_v47 = vpop.xlane.xlu2 %1313 }
 0x8a3   : > { %v1315_v48 = vsub.f32 %v1309_v31, %v1314_v47 }
 0x8a5   : > { %v1316_v49 = vmul.f32 1.442695, %v1315_v48 }
 0x8a7   : > { %1819 = vpow2.f32 %v1316_v49 }
 0x8ad   : > { %v1820_v50 = vpop.eup %1819 }
 0x8ae   : > { %v1318_v51 = vsel %vm870_vm3, %v1820_v50, 0.0 }
 0x8af   : > { %1319 = vadd.xlane.f32.xlu2 %v1318_v51  ;;  %v1790_v51 = vld [vmem:[%s2425_s15] ss:$0 sm:$0xff] }
 0x8b8   : > { %v1370_v52 = vpop.xlane.xlu2 %1369 }
 0x8b9   : > { %v1371_v53 = vsub.f32 %v1365_v35, %v1370_v52  ;;  %v1484_v35 = vpack.c.bf16 %v1479_v33, %v1478_v32  ;;  %v1576_v32 = vld [vmem:[%s2430_s20 + $0x20] sm:$0xff]  ;;  %v1577_v33 = vld [vmem:[%s2430_s20 + $0x28] sm:$0xff] }
 0x8ba   : > { %v1426_v54 = vpop.xlane.xlu0 %1425 }
 0x8bb   : > { %v1372_v55 = vmul.f32 1.442695, %v1371_v53  ;;  %v1427_v56 = vsub.f32 %v1421_v37, %v1426_v54  ;;  %1496 = vmatpush.bf16.msrb.mxu2 %v1484_v35  ;;  %v1483_v37 = vpack.c.bf16 %v1477_v36, %v1476_v34  ;;  %v1591_v36 = vpack.c.bf16 %v1577_v33, %v1576_v32 }
 0x8bd   : > { %1821 = vpow2.f32 %v1372_v55  ;;  %v1428_v57 = vmul.f32 1.442695, %v1427_v56 }
 0x8bf   : > { %1823 = vpow2.f32 %v1428_v57  ;;  %1497 = vmatpush.bf16.msrb.mxu2 %v1483_v37 }
 0x8c3   : > { %v1822_v58 = vpop.eup %1821  ;;  %1498 = vmatpush.bf16.msrb.mxu2 %v1482_v40  ;;  %v1792_v40 = vld [vmem:[%s2427_s17] ss:$0 sm:$0xff] }
 0x8c4   : > { %v1374_v59 = vsel %vm870_vm3, %v1822_v58, 0.0 }
 0x8c5   : > { %1375 = vadd.xlane.f32.xlu1 %v1374_v59  ;;  %v1824_v60 = vpop.eup %1823 }
 0x8c6   : > { %v1430_v61 = vsel %vm870_vm3, %v1824_v60, 0.0 }
 0x8c7   : > { %1324 = vrot.lane.b32.xlu2 %v2217_v7, %s2475_s7  ;;  %1499 = vmatpush.bf16.msrb.mxu2 %v1481_v43 }
 0x8cd   : > { %v1268_v62 = vpop.permute.xlu0 %1267  ;;  %1431 = vadd.xlane.f32.xlu1 %v1430_v61 }
 0x8ce   : > { %v1273_v63 = vsel %vm887_vm1, %v1268_v62, 0  ;;  %v1262_v0 = vpop.xlane.xlu1 %1261  ;;  %v1544_v62 = vld [vmem:[%s2428_s18 + $0x30] sm:$0xff] }
 0x8cf   : > { %1825 = vrcp.f32 %v1262_v0  ;;  %1282 = vmatpush.bf16.msrb.mxu0 %v1273_v63  ;;  %v1542_v0 = vld [vmem:[%s2428_s18 + $0x20] sm:$0xff] }
 0x8d5   : > { %v1826_v1 = vpop.eup %1825  ;;  %v1381_v3 = vpop.permute.xlu0 %1380 }
 0x8d6   : > { %v1264_v4 = vmul.f32 %v1826_v1, %v1818_v45  ;;  %v1386_v5 = vsel %vm887_vm1, %v1381_v3, 0  ;;  %v1543_v1 = vld [vmem:[%s2428_s18 + $0x28] sm:$0xff] }
 0x8d7   : > { %1395 = vmatpush.bf16.msra.mxu0 %v1386_v5  ;;  %v1549_v3 = vpack.c.bf16 %v1543_v1, %v1542_v0  ;;  %v1541_v5 = vld [vmem:[%s2428_s18 + $0x18] sm:$0xff] }
 0x8d8   : > { %v1265_v6 = vpack.c.bf16 %v1264_v4, %v1264_v4  ;;  %v1540_v4 = vld [vmem:[%s2428_s18 + $0x10] sm:$0xff] }
 0x8da   : > { %1757 = vmatmul.msk.bf16.vlgmr.msrb.gmra.mxu0 %vm870_vm3, %v1265_v6  ;;  %v1548_v6 = vpack.c.bf16 %v1541_v5, %v1540_v4 }
 0x8e6   : > { %1436 = vrot.lane.b32.xlu1 %v2217_v7, %s2476_s30 }
 0x922   : > { %v1320_v8 = vpop.xlane.xlu2 %1319 }
 0x923   : > { %1827 = vrcp.f32 %v1320_v8  ;;  %v1538_v8 = vld [vmem:[%s2428_s18] sm:$0xff] }
 0x929   : > { %v1828_v9 = vpop.eup %1827 }
 0x92a   : > { %v1322_v10 = vmul.f32 %v1828_v9, %v1820_v50  ;;  %v1325_v11 = vpop.permute.xlu2 %1324  ;;  %v1539_v9 = vld [vmem:[%s2428_s18 + $0x8] sm:$0xff] }
 0x92b   : > { %v1330_v12 = vsel %vm887_vm1, %v1325_v11, 0  ;;  %v1586_v11 = vld [vmem:[%s2430_s20 + $0x70] sm:$0xff] }
 0x92c   : > { %v1323_v13 = vpack.c.bf16 %v1322_v10, %v1322_v10  ;;  %1339 = vmatpush.bf16.msrb.mxu3 %v1330_v12  ;;  %v1547_v10 = vpack.c.bf16 %v1539_v9, %v1538_v8  ;;  %v1587_v12 = vld [vmem:[%s2430_s20 + $0x78] sm:$0xff] }
 0x92f   : > { %1759 = vmatmul.msk.bf16.vlgmr.msrb.gmra.mxu3 %vm870_vm3, %v1323_v13  ;;  %v1584_v13 = vld [vmem:[%s2430_s20 + $0x60] sm:$0xff] }
 0x938   : > { %v1376_v14 = vpop.xlane.xlu1 %1375 }
 0x939   : > { %1829 = vrcp.f32 %v1376_v14 }
 0x93f   : > { %v1830_v15 = vpop.eup %1829 }
 0x940   : > { %v1378_v16 = vmul.f32 %v1830_v15, %v1822_v58  ;;  %v1432_v18 = vpop.xlane.xlu1 %1431  ;;  %v1596_v15 = vpack.c.bf16 %v1587_v12, %v1586_v11 }
 0x941   : > { %1831 = vrcp.f32 %v1432_v18 }
 0x942   : > { %v1379_v17 = vpack.c.bf16 %v1378_v16, %v1378_v16  ;;  %v1585_v16 = vld [vmem:[%s2430_s20 + $0x68] sm:$0xff]  ;;  %1601 = vmatpush.bf16.msra.mxu1 %v1596_v15 }
 0x943   : > { %v1595_v18 = vpack.c.bf16 %v1585_v16, %v1584_v13 }
 0x944   : > { %1761 = vmatmul.msk.bf16.vlgmr.msra.gmra.mxu0 %vm870_vm3, %v1379_v17 }
 0x946   : > { %1602 = vmatpush.bf16.msra.mxu1 %v1595_v18 }
 0x947   : > { %v1832_v7 = vpop.eup %1831 }
 0x948   : > { %v1434_v21 = vmul.f32 %v1832_v7, %v1824_v60 }
 0x94a   : > { %v1435_v23 = vpack.c.bf16 %v1434_v21, %v1434_v21  ;;  %v1582_v21 = vld [vmem:[%s2430_s20 + $0x50] sm:$0xff] }
 0x957   : > { %v1284_v19 = vpop.f32.mrf.mxu0 }
 0x958   : > { %v1437_v20 = vpop.permute.xlu1 %1436 }
 0x959   : > { %v1442_v22 = vsel %vm887_vm1, %v1437_v20, 0 }
 0x95a   : > { %1451 = vmatpush.bf16.msra.mxu3 %v1442_v22  ;;  %v1580_v22 = vld [vmem:[%s2430_s20 + $0x40] sm:$0xff] }
 0x95d   : > { %1763 = vmatmul.msk.bf16.vlgmr.msra.gmra.mxu3 %vm870_vm3, %v1435_v23  ;;  %v1581_v23 = vld [vmem:[%s2430_s20 + $0x48] sm:$0xff] }
 0x95f   : > { %v1286_v24 = vpop.f32.mrf.mxu0 }
 0x960   : > { %v1593_v24 = vpack.c.bf16 %v1581_v23, %v1580_v22 }
 0x9b2   : > { %v1341_v25 = vpop.f32.mrf.mxu3 }
 0x9b3   : > { %1458 = vrot.lane.b32.xlu2 %v1341_v25, %s2476_s30 }
 0x9ba   : > { %v1343_v27 = vpop.f32.mrf.mxu3 }
 0x9bb   : > { %v1578_v27 = vld [vmem:[%s2430_s20 + $0x30] sm:$0xff] }
 0x9c1   : > { %v1397_v28 = vpop.f32.mrf.mxu0 }
 0x9c2   : > { %1462 = vrot.lane.b32.xlu0 %v1397_v28, %s2474_s27  ;;  %v1579_v28 = vld [vmem:[%s2430_s20 + $0x38] sm:$0xff] }
 0x9c9   : > { %v1399_v29 = vpop.f32.mrf.mxu0 }
 0x9e0   : > { %v1453_v30 = vpop.f32.mrf.mxu3 }
 0x9e1   : > { %1466 = vrot.lane.b32.xlu2 %v1453_v30, %s2475_s7 }
 0x9e8   : > { %v1455_v31 = vpop.f32.mrf.mxu3 }
 0x9e9   : > { %v1592_v31 = vpack.c.bf16 %v1579_v28, %v1578_v27 }
 0xa0d   : > { %v1459_v44 = vpop.permute.xlu2 %1458 }
 0xa0e   : > { %v1469_v46 = vsel %vm850_vm2, %v1284_v19, %v1459_v44  ;;  %v1583_v19 = vld [vmem:[%s2430_s20 + $0x58] sm:$0xff] }
 0xa0f   : > { %v1594_v20 = vpack.c.bf16 %v1583_v19, %v1582_v21 }
 0xa11   : > { %1603 = vmatpush.bf16.msra.mxu1 %v1594_v20 }
 0xa15   : > { %1604 = vmatpush.bf16.msra.mxu1 %v1593_v24 }
 0xa19   : > { %1605 = vmatpush.bf16.msra.mxu1 %v1592_v31 }
 0xa1d   : > { %1606 = vmatpush.bf16.msra.mxu1 %v1591_v36 }
 0xa34   : > { %v1463_v45 = vpop.permute.xlu0 %1462 }
 0xa35   : > { %v1470_v47 = vsel %vm1086_vm4, %v1469_v46, %v1463_v45  ;;  %v1574_v45 = vld [vmem:[%s2430_s20 + $0x10] sm:$0xff]  ;;  %v1575_v46 = vld [vmem:[%s2430_s20 + $0x18] sm:$0xff] }
 0xa3b   : > { %v1467_v48 = vpop.permute.xlu2 %1466 }
 0xa3c   : > { %v1471_v49 = vsel %vm1088_vm5, %v1470_v47, %v1467_v48  ;;  %v1590_v47 = vpack.c.bf16 %v1575_v46, %v1574_v45  ;;  %v1572_v48 = vld [vmem:[%s2430_s20] sm:$0xff] }
 0xa3d   : > { %v1480_v50 = vpack.c.bf16 %v1471_v49, %v1471_v49  ;;  %v1573_v49 = vld [vmem:[%s2430_s20 + $0x8] sm:$0xff] }
 0xa3e   : > { %1607 = vmatpush.bf16.msra.mxu1 %v1590_v47 }
 0xa3f   : > { %1764 = vmatmul.msk.bf16.vlgmr.msrb.gmra.mxu2 %vm815_vm0, %v1480_v50  ;;  %v1589_v50 = vpack.c.bf16 %v1573_v49, %v1572_v48 }
 0xa42   : > { %1608 = vmatpush.bf16.msra.mxu1 %v1589_v50 }
 0xac2   : > { %v1501_v52 = vpop.f32.mrf.mxu2 }
 0xac3   : > { %v1502_v53 = vadd.f32 %v1790_v51, %v1501_v52  ;;  %v1793_v51 = vld [vmem:[%s2429_s19] ss:$0 sm:$0xff] }
 0xac5   : > { %v1505_v54 = vadd.f32 %v1502_v53, %v2209_v2  ;;  %v1545_v2 = vld [vmem:[%s2428_s18 + $0x38] sm:$0xff] }
 0xac6   : > { %v1550_v63 = vpack.c.bf16 %v1545_v2, %v1544_v62 }
 0xac7   : > { %v1508_v55 = vsel %vm815_vm0, %v1505_v54, 0.0 }
 0xac8   : > { %1509 = vadd.xlane.f32.xlu0 %v1508_v55  ;;  %1562 = vmatpush.bf16.msrb.mxu0 %v1550_v63 }
 0xaca   : > { %v1503_v56 = vpop.f32.mrf.mxu2 }
 0xacc   : > { %1563 = vmatpush.bf16.msrb.mxu0 %v1549_v3 }
 0xad0   : > { %1564 = vmatpush.bf16.msrb.mxu0 %v1548_v6 }
 0xad4   : > { %1565 = vmatpush.bf16.msrb.mxu0 %v1547_v10 }
 0xb3b   : > { %v1510_v57 = vpop.xlane.xlu0 %1509 }
 0xb3c   : > { %v1511_v58 = vmul.f32 %v1510_v57, %v2157_v26  ;;  %v1794_v57 = vld [vmem:[%s2431_s21] ss:$0 sm:$0xff] }
 0xb3e   : > { %v1512_v59 = vsub.f32 %v1505_v54, %v1511_v58 }
 0xb40   : > { %v1513_v60 = vmul.f32 %v1512_v59, %v1512_v59 }
 0xb42   : > { %v1514_v61 = vsel %vm815_vm0, %v1513_v60, 0.0 }
 0xb43   : > { %1515 = vadd.xlane.f32.xlu2 %v1514_v61 }
 0xbb6   : > { %v1516_v14 = vpop.xlane.xlu2 %1515 }
 0xbb7   : > { %v1517_v17 = vmul.f32 %v1516_v14, %v2157_v26  ;;  %v1795_v14 = vld [vmem:[%s2432_s22] ss:$0 sm:$0xff] }
 0xbb9   : > { %v1518_v7 = vadd.f32 1e-12, %v1517_v17 }
 0xbbb   : > { %1833 = vrsqrt.f32 %v1518_v7  ;;  %vm1525_vm11 = vweird.f32 %v1518_v7 }
 0xbc1   : > { %v1834_v25 = vpop.eup %1833 }
 0xbc2   : > { %v1520_v29 = vmul.f32 %v1834_v25, %v1518_v7  ;;  %vm1526_vm10 = vweird.f32 %v1834_v25 }
 0xbc3   : > { %vm1527_vm12 = vmor %vm1525_vm11, %vm1526_vm10 }
 0xbc4   : > { %v1521_v30 = vmul.f32 %v1834_v25, %v1520_v29 }
 0xbc6   : > { %v1522_v34 = vmul.f32 0.5, %v1521_v30 }
 0xbc8   : > { %v1523_v35 = vsub.f32 1.5, %v1522_v34 }
 0xbca   : > { %v1524_v37 = vmul.f32 %v1834_v25, %v1523_v35 }
 0xbcc   : > { %v1528_v39 = vsel %vm1527_vm12, %v1834_v25, %v1524_v37 }
 0xbcd   : > { %v1529_v41 = vmul.f32 %v1528_v39, %v1512_v59 }
 0xbcf   : > { %v1533_v42 = vmul.f32 %v1791_v38, %v1529_v41 }
 0xbd1   : > { %v1537_v43 = vadd.f32 %v1792_v40, %v1533_v42 }
 0xbd3   : > { %v1546_v44 = vpack.c.bf16 %v1537_v43, %v1537_v43 }
 0xbd5   : > { %1765 = vmatmul.msk.bf16.vlgmr.msrb.gmra.mxu0 %vm815_vm0, %v1546_v44 }
 0xc52   : > { %v1567_v52 = vpop.f32.mrf.mxu0 }
 0xc53   : > { %v1568_v53 = vadd.f32 %v1793_v51, %v1567_v52 }
 0xc55   : > { %v1571_v54 = vmax.f32 %v1568_v53, 0.0 }
 0xc57   : > { %v1588_v55 = vpack.c.bf16 %v1571_v54, %v1571_v54 }
 0xc59   : > { %1609 = vmatmul.bf16.vlgmr.msra.gmra.mxu1 %v1588_v55 }
 0xc5a   : > { %v1569_v56 = vpop.f32.mrf.mxu0 }
 0xcd6   : > { %v1610_v58 = vpop.f32.mrf.mxu1 }
 0xcd7   : > { %v1611_v59 = vadd.f32 %v1794_v57, %v1610_v58 }
 0xcd9   : > { %v1614_v60 = vadd.f32 %v1611_v59, %v1537_v43 }
 0xcdb   : > { %v1617_v61 = vsel %vm815_vm0, %v1614_v60, 0.0 }
 0xcdc   : > { %1618 = vadd.xlane.f32.xlu1 %v1617_v61 }
 0xcde   : > { %v1612_v62 = vpop.f32.mrf.mxu1 }
 0xd4f   : > { %v1619_v2 = vpop.xlane.xlu1 %1618 }
 0xd50   : > { %v1620_v63 = vmul.f32 %v1619_v2, %v2157_v26 }
 0xd52   : > { %v1621_v0 = vsub.f32 %v1614_v60, %v1620_v63 }
 0xd54   : > { %v1622_v1 = vmul.f32 %v1621_v0, %v1621_v0 }
 0xd56   : > { %v1623_v3 = vsel %vm815_vm0, %v1622_v1, 0.0 }
 0xd57   : > { %1624 = vadd.xlane.f32.xlu2 %v1623_v3 }
 0xdca   : > { %v1625_v4 = vpop.xlane.xlu2 %1624 }
 0xdcb   : > { %v1626_v5 = vmul.f32 %v1625_v4, %v2157_v26  ;;  %v1796_v26 = vld [vmem:[%s2433_s23] ss:$0 sm:$0xff] }
 0xdcd   : > { %v1627_v6 = vadd.f32 1e-12, %v1626_v5 }
 0xdcf   : > { %1835 = vrsqrt.f32 %v1627_v6  ;;  %vm1634_vm14 = vweird.f32 %v1627_v6 }
 0xdd5   : > { %v1836_v8 = vpop.eup %1835 }
 0xdd6   : > { %v1629_v9 = vmul.f32 %v1836_v8, %v1627_v6  ;;  %vm1635_vm13 = vweird.f32 %v1836_v8 }
 0xdd7   : > { %vm1636_vm15 = vmor %vm1634_vm14, %vm1635_vm13 }
 0xdd8   : > { %v1630_v10 = vmul.f32 %v1836_v8, %v1629_v9 }
 0xdda   : > { %v1631_v11 = vmul.f32 0.5, %v1630_v10 }
 0xddc   : > { %v1632_v12 = vsub.f32 1.5, %v1631_v11 }
 0xdde   : > { %v1633_v13 = vmul.f32 %v1836_v8, %v1632_v12 }
 0xde0   : > { %v1637_v15 = vsel %vm1636_vm15, %v1836_v8, %v1633_v13 }
 0xde1   : > { %v1638_v16 = vmul.f32 %v1637_v15, %v1621_v0 }
 0xde3   : > { %v1642_v17 = vmul.f32 %v1795_v14, %v1638_v16 }
 0xde5   : > { %v1646_v18 = vadd.f32 %v1796_v26, %v1642_v17 }
 0xde7   : > { %1647 = vst.msk [vmem:[%s780_s29] sm:$0xff] %vm815_vm0, %v1646_v18 }
 0xde8 PF: > { %s34_s5 = sadd.s32 1, %s1843_s5  }
 0xde9   : > { %p31_p4 = scmp.ge.s32.totalorder %s34_s5, 4  }
 0xdeb   :  { %33 = sbr.rel (!%p31_p4) target bundleno = 10 (0xa), region = 155 }

</bundles_post_ra>
